<compile_context>
chip_gen: v6e
topology: v6e:2x2x1
jax: 0.10.0
libtpu: 0.0.40
codegen_flags: <defaults>
</compile_context>

<pallas_src>
import jax
import jax.numpy as jnp
import numpy as np
from jax import lax
from jax.experimental import pallas as pl
from jax.experimental.pallas import tpu as pltpu

EPS = 1e-5                 # BatchNorm2d default eps
SLOPE = 0.01               # LeakyReLU default negative_slope
MXU_DTYPE = jnp.bfloat16   # MXU operand dtype (f32 accumulate)
ACT_DTYPE = jnp.bfloat16   # inter-stage activation storage dtype


def _round_up(x, m):
    return (x + m - 1) // m * m


# ---------------------------------------------------------------------------
# Kernel 1: per-column sum / sum-of-squares of an (M, C) slab (BN statistics).
# Single pass, f32 accumulation directly in the revisited output blocks.
# ---------------------------------------------------------------------------
def bn_sums(x2d, tile_rows=1024):
    M, C = x2d.shape
    tm = min(tile_rows, M)
    Mp = _round_up(M, tm)
    if Mp != M:
        # zero rows contribute nothing to either sum
        x2d = jnp.pad(x2d, ((0, Mp - M), (0, 0)))
    grid = (Mp // tm,)

    def kernel(x_ref, s_ref, q_ref):
        @pl.when(pl.program_id(0) == 0)
        def _init():
            s_ref[...] = jnp.zeros_like(s_ref)
            q_ref[...] = jnp.zeros_like(q_ref)

        x = x_ref[...].astype(jnp.float32)
        s_ref[...] += jnp.sum(x, axis=0, keepdims=True)
        q_ref[...] += jnp.sum(x * x, axis=0, keepdims=True)

    # TODO(synk): on multi-TensorCore parts (v7x) add a leading size-2 'parallel'
    # axis producing per-core partial sums combined in the wrapper.
    return pl.pallas_call(
        kernel,
        out_shape=(jax.ShapeDtypeStruct((1, C), jnp.float32),
                   jax.ShapeDtypeStruct((1, C), jnp.float32)),
        grid=grid,
        in_specs=[pl.BlockSpec((tm, C), lambda i: (i, 0))],
        out_specs=(pl.BlockSpec((1, C), lambda i: (0, 0)),
                   pl.BlockSpec((1, C), lambda i: (0, 0))),
        compiler_params=pltpu.CompilerParams(
            dimension_semantics=("arbitrary",)),
    )(x2d)


# ---------------------------------------------------------------------------
# Kernel 2: fused  BN-affine + LeakyReLU + 1px zero-pad + 3x3/s1 conv + bias,
# with optional per-channel sum / sum-of-squares of the conv output (so the
# next BatchNorm needs no extra pass over the activation).
#
#   a      : (N, H, W, Ci)  input activation (pre-BN), any float dtype
#   scale  : (1, Ci) f32    gamma * rsqrt(var + eps)
#   shift  : (1, Ci) f32    beta - mean * scale
#   w_mat  : (9*Ci, Co)     weights (MXU dtype), rows ordered (ki, kj, ci)
#   bias   : (1, Co) f32
# Output spatial size equals input spatial size (3x3, stride 1, pad 1).
# ---------------------------------------------------------------------------
def conv3x3_bn_lrelu(a, scale, shift, w_mat, bias, *, out_dtype, collect_stats):
    N, H, W, Ci = a.shape
    K, Co = w_mat.shape
    assert K == 9 * Ci

    def kernel(a_ref, sc_ref, sh_ref, w_ref, b_ref, *rest):
        if collect_stats:
            o_ref, sum_ref, sq_ref, pad_buf = rest
        else:
            o_ref, pad_buf = rest
        n = pl.program_id(0)

        if collect_stats:
            @pl.when(n == 0)
            def _init_stats():
                sum_ref[...] = jnp.zeros_like(sum_ref)
                sq_ref[...] = jnp.zeros_like(sq_ref)

        # ---- fused BN affine + LeakyReLU, written into zero-padded scratch ----
        # (border is re-zeroed every step so the kernel is safe under any
        #  grid-axis scheduling / megacore split)
        pad_buf[...] = jnp.zeros_like(pad_buf)
        x = a_ref[...].astype(jnp.float32)
        y = x * sc_ref[...] + sh_ref[...]
        y = jnp.where(y >= 0.0, y, SLOPE * y)
        pad_buf[pl.ds(1, H), pl.ds(1, W), :] = y.astype(pad_buf.dtype)

        # ---- per-tap MXU accumulation (no K-wide patch slab, unit-stride) ----
        acc = jnp.zeros((H * W, Co), jnp.float32)
        for ki in range(3):
            for kj in range(3):
                tap = pad_buf[pl.ds(ki, H), pl.ds(kj, W), :]
                tap = tap.reshape(H * W, Ci).astype(MXU_DTYPE)
                wt = w_ref[pl.ds((ki * 3 + kj) * Ci, Ci), :]
                acc = acc + jnp.dot(tap, wt, preferred_element_type=jnp.float32)

        out = (acc + b_ref[...]).astype(out_dtype)          # bias added once
        o_ref[...] = out.reshape(H, W, Co)

        if collect_stats:
            # next-BatchNorm partial statistics of the values actually stored
            of = out.astype(jnp.float32)
            sum_ref[...] += jnp.sum(of, axis=0, keepdims=True)
            sq_ref[...] += jnp.sum(of * of, axis=0, keepdims=True)

    vec = lambda n: (0, 0)
    in_specs = [
        pl.BlockSpec((None, H, W, Ci), lambda n: (n, 0, 0, 0)),
        pl.BlockSpec((1, Ci), vec),
        pl.BlockSpec((1, Ci), vec),
        pl.BlockSpec((K, Co), vec),
        pl.BlockSpec((1, Co), vec),
    ]
    scratch = [pltpu.VMEM((H + 2, W + 2, Ci), MXU_DTYPE)]
    if collect_stats:
        out_shape = (jax.ShapeDtypeStruct((N, H, W, Co), out_dtype),
                     jax.ShapeDtypeStruct((1, Co), jnp.float32),
                     jax.ShapeDtypeStruct((1, Co), jnp.float32))
        out_specs = (pl.BlockSpec((None, H, W, Co), lambda n: (n, 0, 0, 0)),
                     pl.BlockSpec((1, Co), vec),
                     pl.BlockSpec((1, Co), vec))
        semantics = ("arbitrary",)   # stats accumulate across the batch axis
    else:
        out_shape = jax.ShapeDtypeStruct((N, H, W, Co), out_dtype)
        out_specs = pl.BlockSpec((None, H, W, Co), lambda n: (n, 0, 0, 0))
        semantics = ("parallel",)

    # TODO(synk): for large images, replace the whole-image-per-batch-element
    # block with output-row tiles + a (toh+2)-row halo fetched via manual DMA
    # (memory_space=pl.ANY + make_async_copy) and raise vmem_limit_bytes per
    # generation (v5e/v6e ~96 MiB, v7x ~40 MiB); at these test shapes the
    # default scoped-VMEM limit is ample.
    return pl.pallas_call(
        kernel,
        out_shape=out_shape,
        grid=(N,),
        in_specs=in_specs,
        out_specs=out_specs,
        scratch_shapes=scratch,
        compiler_params=pltpu.CompilerParams(dimension_semantics=semantics),
    )(a, scale, shift, w_mat, bias)


# ---------------------------------------------------------------------------
# Weight preparation (trace-time layout plumbing; MXU dtype)
# ---------------------------------------------------------------------------
def _prep_w1(w1, cin, cout):
    """(Cout, Cin, 4, 4) stride-2 weights -> (9*4*Cin, Cout) matrix for the
    equivalent 3x3/stride-1 conv over the space-to-depth(2) input layout.
    Row order: (ki, kj, di, dj, cin); invalid (ki, di)/(kj, dj) combos are 0."""
    w6 = jnp.zeros((3, 3, 2, 2, cin, cout), dtype=jnp.float32)
    for i in range(4):
        ki, di = (i - 1) // 2 + 1, (i - 1) % 2
        for j in range(4):
            kj, dj = (j - 1) // 2 + 1, (j - 1) % 2
            w6 = w6.at[ki, kj, di, dj].set(jnp.transpose(w1[:, :, i, j]))
    return w6.reshape(9 * 4 * cin, cout).astype(MXU_DTYPE)


def _prep_w2(w2):
    """(Cout, Ci, 3, 3) OIHW -> (9*Ci, Cout); rows ordered (ki, kj, ci)."""
    cout, ci = w2.shape[0], w2.shape[1]
    return jnp.transpose(w2, (2, 3, 1, 0)).reshape(9 * ci, cout).astype(MXU_DTYPE)


# ---------------------------------------------------------------------------
# EncoderBlock forward
# ---------------------------------------------------------------------------
@jax.jit
def encoder_block_forward(x_nchw, params):
    N, Cin, H, W = x_nchw.shape
    assert H % 2 == 0 and W % 2 == 0, "stride-2 space-to-depth recast needs even H, W"
    Cout = params["w1"].shape[0]
    Ho, Wo = H // 2, W // 2
    Ci1 = 4 * Cin

    # Space-to-depth(2) view of the RAW input; a single layout transform that XLA
    # fuses with the NCHW->NHWC transpose it needs anyway.  Last-dim order: (di, dj, c).
    xs = x_nchw.astype(jnp.float32).reshape(N, Cin, Ho, 2, Wo, 2)
    xs = jnp.transpose(xs, (0, 2, 4, 3, 5, 1)).reshape(N, Ho, Wo, Ci1)

    # ---- BN1 statistics (single-pass Pallas reduction, f32 accumulation) ----
    # NOTE: single-pass E[x^2]-mean^2 in f32; fine for normalized-scale inputs.
    s1, q1 = bn_sums(xs.reshape(N * Ho * Wo, Ci1))
    s1 = jnp.sum(s1.reshape(4, Cin), axis=0)      # combine the 4 sub-pixel planes
    q1 = jnp.sum(q1.reshape(4, Cin), axis=0)
    cnt1 = float(N * H * W)
    mean1 = s1 / cnt1
    var1 = jnp.maximum(q1 / cnt1 - mean1 * mean1, 0.0)
    scale1 = params["bn1_gamma"] * lax.rsqrt(var1 + EPS)
    shift1 = params["bn1_beta"] - mean1 * scale1

    # ---- conv1: BN1-apply + LeakyReLU + pad + (4x4/s2 conv as 3x3/s1) + bias,
    #      with BN2 partial sums produced in the same kernel's epilogue ----
    w1m = _prep_w1(params["w1"], Cin, Cout)
    y1, s2, q2 = conv3x3_bn_lrelu(
        xs,
        jnp.tile(scale1, 4).reshape(1, Ci1).astype(jnp.float32),
        jnp.tile(shift1, 4).reshape(1, Ci1).astype(jnp.float32),
        w1m,
        params["b1"].astype(jnp.float32).reshape(1, Cout),
        out_dtype=ACT_DTYPE, collect_stats=True)

    cnt2 = float(N * Ho * Wo)
    mean2 = s2.reshape(Cout) / cnt2
    var2 = jnp.maximum(q2.reshape(Cout) / cnt2 - mean2 * mean2, 0.0)
    scale2 = params["bn2_gamma"] * lax.rsqrt(var2 + EPS)
    shift2 = params["bn2_beta"] - mean2 * scale2

    # ---- conv2: BN2-apply + LeakyReLU + pad + 3x3/s1 conv + bias ----
    w2m = _prep_w2(params["w2"])
    y2 = conv3x3_bn_lrelu(
        y1,
        scale2.reshape(1, Cout).astype(jnp.float32),
        shift2.reshape(1, Cout).astype(jnp.float32),
        w2m,
        params["b2"].astype(jnp.float32).reshape(1, Cout),
        out_dtype=jnp.float32, collect_stats=False)

    # TODO(synk): use_spect / use_coord / use_CS branches (SpectralNorm, CoordConv,
    # Channel/Spatial attention) are Identity in the default config and not implemented.
    return jnp.transpose(y2, (0, 3, 1, 2))        # NHWC -> NCHW


# ---------------------------------------------------------------------------
# Pure-JAX f32 reference (PyTorch semantics) for the correctness check
# ---------------------------------------------------------------------------
def reference_forward(x, params):
    def bn_lrelu_ref(v, g, b):
        mean = jnp.mean(v, axis=(0, 2, 3), keepdims=True)
        var = jnp.mean((v - mean) ** 2, axis=(0, 2, 3), keepdims=True)
        y = (v - mean) / jnp.sqrt(var + EPS) * g.reshape(1, -1, 1, 1) + b.reshape(1, -1, 1, 1)
        return jnp.where(y >= 0, y, SLOPE * y)

    def conv(v, w, b, stride, pad):
        o = lax.conv_general_dilated(
            v, w, (stride, stride), ((pad, pad), (pad, pad)),
            dimension_numbers=("NCHW", "OIHW", "NCHW"))
        return o + b.reshape(1, -1, 1, 1)

    y = bn_lrelu_ref(x, params["bn1_gamma"], params["bn1_beta"])
    y = conv(y, params["w1"], params["b1"], 2, 1)
    y = bn_lrelu_ref(y, params["bn2_gamma"], params["bn2_beta"])
    y = conv(y, params["w2"], params["b2"], 1, 1)
    return y


if __name__ == "__main__":
    key = jax.random.PRNGKey(0)
    ks = jax.random.split(key, 9)
    N, Cin, Cout, H, W = 2, 4, 8, 16, 16

    x = jax.random.normal(ks[0], (N, Cin, H, W), jnp.float32)
    params = dict(
        bn1_gamma=1.0 + 0.1 * jax.random.normal(ks[1], (Cin,), jnp.float32),
        bn1_beta=0.1 * jax.random.normal(ks[2], (Cin,), jnp.float32),
        w1=0.1 * jax.random.normal(ks[3], (Cout, Cin, 4, 4), jnp.float32),
        b1=0.1 * jax.random.normal(ks[4], (Cout,), jnp.float32),
        bn2_gamma=1.0 + 0.1 * jax.random.normal(ks[5], (Cout,), jnp.float32),
        bn2_beta=0.1 * jax.random.normal(ks[6], (Cout,), jnp.float32),
        w2=0.1 * jax.random.normal(ks[7], (Cout, Cout, 3, 3), jnp.float32),
        b2=0.1 * jax.random.normal(ks[8], (Cout,), jnp.float32),
    )

    out = jax.block_until_ready(encoder_block_forward(x, params))
    ref = jax.block_until_ready(reference_forward(x, params))

    assert out.shape == (N, Cout, H // 2, W // 2), out.shape
    # bf16 MXU operands + bf16 inter-stage activation -> compare at 3e-2;
    # setting MXU_DTYPE = ACT_DTYPE = jnp.float32 recovers <2e-3 agreement.
    np.testing.assert_allclose(np.asarray(out), np.asarray(ref), rtol=3e-2, atol=3e-2)
    print("KERNEL_OK")
</pallas_src>

<mosaic_0001>
module attributes {stable_mosaic.version = 11 : i64} {
  func.func @kernel(%arg0: i32, %arg1: memref<128x16xf32, #tpu.memory_space<vmem>>, %arg2: memref<1x16xf32, #tpu.memory_space<vmem>>, %arg3: memref<1x16xf32, #tpu.memory_space<vmem>>) attributes {dimension_semantics = [#tpu.dimension_semantics<arbitrary>], iteration_bounds = array<i64: 1>, scalar_prefetch = 0 : i64, scratch_operands = 0 : i64, tpu.core_type = #tpu.core_type<tc>, window_params = [{transform_indices = @transform_0, window_bounds = array<i64: 128, 16>}, {pipeline_mode = #tpu.pipeline_mode<synchronous>, transform_indices = @transform_1, window_bounds = array<i64: 1, 16>}, {pipeline_mode = #tpu.pipeline_mode<synchronous>, transform_indices = @transform_2, window_bounds = array<i64: 1, 16>}]} {
    %c0_i32 = arith.constant 0 : i32
    %0 = arith.cmpi eq, %arg0, %c0_i32 : i32
    %1 = arith.extui %0 : i1 to i32
    %c0_i32_0 = arith.constant 0 : i32
    %2 = arith.cmpi ne, %1, %c0_i32_0 : i32
    scf.if %2 {
      %cst_11 = arith.constant 0.000000e+00 : f32
      %15 = vector.broadcast %cst_11 : f32 to vector<1x16xf32>
      %c0_12 = arith.constant 0 : index
      %c0_13 = arith.constant 0 : index
      %16 = vector.load %arg2[%c0_12, %c0_13] : memref<1x16xf32, #tpu.memory_space<vmem>>, vector<1x16xf32>
      tpu.vector_store %arg2[%c0_12, %c0_13], %15 {strides = array<i32>} : memref<1x16xf32, #tpu.memory_space<vmem>>, vector<1x16xf32>,
      %cst_14 = arith.constant 0.000000e+00 : f32
      %17 = vector.broadcast %cst_14 : f32 to vector<1x16xf32>
      %c0_15 = arith.constant 0 : index
      %c0_16 = arith.constant 0 : index
      %18 = vector.load %arg3[%c0_15, %c0_16] : memref<1x16xf32, #tpu.memory_space<vmem>>, vector<1x16xf32>
      tpu.vector_store %arg3[%c0_15, %c0_16], %17 {strides = array<i32>} : memref<1x16xf32, #tpu.memory_space<vmem>>, vector<1x16xf32>,
    } else {
    }
    %c0 = arith.constant 0 : index
    %c0_1 = arith.constant 0 : index
    %3 = vector.load %arg1[%c0, %c0_1] : memref<128x16xf32, #tpu.memory_space<vmem>>, vector<128x16xf32>
    %c0_2 = arith.constant 0 : index
    %c0_3 = arith.constant 0 : index
    %4 = vector.load %arg2[%c0_2, %c0_3] : memref<1x16xf32, #tpu.memory_space<vmem>>, vector<1x16xf32>
    %cst = arith.constant dense<0.000000e+00> : vector<16xf32>
    %5 = vector.multi_reduction <add>, %3, %cst [0] : vector<128x16xf32> to vector<16xf32>
    %6 = vector.shape_cast %5 : vector<16xf32> to vector<1x16xf32>
    %7 = arith.addf %4, %6 : vector<1x16xf32>
    %c0_4 = arith.constant 0 : index
    %c0_5 = arith.constant 0 : index
    %8 = vector.load %arg2[%c0_4, %c0_5] : memref<1x16xf32, #tpu.memory_space<vmem>>, vector<1x16xf32>
    tpu.vector_store %arg2[%c0_4, %c0_5], %7 {strides = array<i32>} : memref<1x16xf32, #tpu.memory_space<vmem>>, vector<1x16xf32>,
    %c0_6 = arith.constant 0 : index
    %c0_7 = arith.constant 0 : index
    %9 = vector.load %arg3[%c0_6, %c0_7] : memref<1x16xf32, #tpu.memory_space<vmem>>, vector<1x16xf32>
    %10 = arith.mulf %3, %3 : vector<128x16xf32>
    %cst_8 = arith.constant dense<0.000000e+00> : vector<16xf32>
    %11 = vector.multi_reduction <add>, %10, %cst_8 [0] : vector<128x16xf32> to vector<16xf32>
    %12 = vector.shape_cast %11 : vector<16xf32> to vector<1x16xf32>
    %13 = arith.addf %9, %12 : vector<1x16xf32>
    %c0_9 = arith.constant 0 : index
    %c0_10 = arith.constant 0 : index
    %14 = vector.load %arg3[%c0_9, %c0_10] : memref<1x16xf32, #tpu.memory_space<vmem>>, vector<1x16xf32>
    tpu.vector_store %arg3[%c0_9, %c0_10], %13 {strides = array<i32>} : memref<1x16xf32, #tpu.memory_space<vmem>>, vector<1x16xf32>,
    return
  }
  func.func @transform_0(%arg0: i32) -> (i32, i32) {
    %c0_i32 = arith.constant 0 : i32
    %c0_i32_0 = arith.constant 0 : i32
    return %arg0, %c0_i32 : i32, i32
  }
  func.func @transform_1(%arg0: i32) -> (i32, i32) {
    %c0_i32 = arith.constant 0 : i32
    %c0_i32_0 = arith.constant 0 : i32
    %c0_i32_1 = arith.constant 0 : i32
    return %c0_i32, %c0_i32_0 : i32, i32
  }
  func.func @transform_2(%arg0: i32) -> (i32, i32) {
    %c0_i32 = arith.constant 0 : i32
    %c0_i32_0 = arith.constant 0 : i32
    %c0_i32_1 = arith.constant 0 : i32
    return %c0_i32, %c0_i32_0 : i32, i32
  }
}

module attributes {stable_mosaic.version = 11 : i64} {
  func.func @kernel(%arg0: i32, %arg1: memref<1x8x8x16xf32, #tpu.memory_space<vmem>>, %arg2: memref<1x16xf32, #tpu.memory_space<vmem>>, %arg3: memref<1x16xf32, #tpu.memory_space<vmem>>, %arg4: memref<144x8xbf16, #tpu.memory_space<vmem>>, %arg5: memref<1x8xf32, #tpu.memory_space<vmem>>, %arg6: memref<1x8x8x8xbf16, #tpu.memory_space<vmem>>, %arg7: memref<1x8xf32, #tpu.memory_space<vmem>>, %arg8: memref<1x8xf32, #tpu.memory_space<vmem>>, %arg9: memref<10x10x16xbf16, #tpu.memory_space<vmem>>) attributes {dimension_semantics = [#tpu.dimension_semantics<arbitrary>], iteration_bounds = array<i64: 2>, scalar_prefetch = 0 : i64, scratch_operands = 1 : i64, tpu.core_type = #tpu.core_type<tc>, window_params = [{transform_indices = @transform_0, window_bounds = array<i64: 1, 8, 8, 16>}, {pipeline_mode = #tpu.pipeline_mode<synchronous>, transform_indices = @transform_1, window_bounds = array<i64: 1, 16>}, {pipeline_mode = #tpu.pipeline_mode<synchronous>, transform_indices = @transform_2, window_bounds = array<i64: 1, 16>}, {pipeline_mode = #tpu.pipeline_mode<synchronous>, transform_indices = @transform_3, window_bounds = array<i64: 144, 8>}, {pipeline_mode = #tpu.pipeline_mode<synchronous>, transform_indices = @transform_4, window_bounds = array<i64: 1, 8>}, {transform_indices = @transform_5, window_bounds = array<i64: 1, 8, 8, 8>}, {pipeline_mode = #tpu.pipeline_mode<synchronous>, transform_indices = @transform_6, window_bounds = array<i64: 1, 8>}, {pipeline_mode = #tpu.pipeline_mode<synchronous>, transform_indices = @transform_7, window_bounds = array<i64: 1, 8>}]} {
    %c0_i32 = arith.constant 0 : i32
    %0 = arith.cmpi eq, %arg0, %c0_i32 : i32
    %1 = arith.extui %0 : i1 to i32
    %c0_i32_0 = arith.constant 0 : i32
    %2 = arith.cmpi ne, %1, %c0_i32_0 : i32
    scf.if %2 {
      %cst_77 = arith.constant 0.000000e+00 : f32
      %88 = vector.broadcast %cst_77 : f32 to vector<1x8xf32>
      %c0_78 = arith.constant 0 : index
      %c0_79 = arith.constant 0 : index
      %89 = vector.load %arg7[%c0_78, %c0_79] : memref<1x8xf32, #tpu.memory_space<vmem>>, vector<1x8xf32>
      tpu.vector_store %arg7[%c0_78, %c0_79], %88 {strides = array<i32>} : memref<1x8xf32, #tpu.memory_space<vmem>>, vector<1x8xf32>,
      %cst_80 = arith.constant 0.000000e+00 : f32
      %90 = vector.broadcast %cst_80 : f32 to vector<1x8xf32>
      %c0_81 = arith.constant 0 : index
      %c0_82 = arith.constant 0 : index
      %91 = vector.load %arg8[%c0_81, %c0_82] : memref<1x8xf32, #tpu.memory_space<vmem>>, vector<1x8xf32>
      tpu.vector_store %arg8[%c0_81, %c0_82], %90 {strides = array<i32>} : memref<1x8xf32, #tpu.memory_space<vmem>>, vector<1x8xf32>,
    } else {
    }
    %cst = arith.constant 0.000000e+00 : bf16
    %3 = vector.broadcast %cst : bf16 to vector<10x10x16xbf16>
    %c0 = arith.constant 0 : index
    %c0_1 = arith.constant 0 : index
    %c0_2 = arith.constant 0 : index
    %4 = vector.load %arg9[%c0, %c0_1, %c0_2] : memref<10x10x16xbf16, #tpu.memory_space<vmem>>, vector<10x10x16xbf16>
    tpu.vector_store %arg9[%c0, %c0_1, %c0_2], %3 {strides = array<i32>} : memref<10x10x16xbf16, #tpu.memory_space<vmem>>, vector<10x10x16xbf16>,
    %c0_3 = arith.constant 0 : index
    %c0_4 = arith.constant 0 : index
    %c0_5 = arith.constant 0 : index
    %c0_6 = arith.constant 0 : index
    %5 = vector.load %arg1[%c0_3, %c0_4, %c0_5, %c0_6] : memref<1x8x8x16xf32, #tpu.memory_space<vmem>>, vector<1x8x8x16xf32>
    %6 = vector.shape_cast %5 : vector<1x8x8x16xf32> to vector<8x8x16xf32>
    %c0_7 = arith.constant 0 : index
    %c0_8 = arith.constant 0 : index
    %7 = vector.load %arg2[%c0_7, %c0_8] : memref<1x16xf32, #tpu.memory_space<vmem>>, vector<1x16xf32>
    %8 = vector.shape_cast %7 : vector<1x16xf32> to vector<1x1x16xf32>
    %9 = vector.broadcast %8 : vector<1x1x16xf32> to vector<8x8x16xf32>
    %10 = arith.mulf %6, %9 : vector<8x8x16xf32>
    %c0_9 = arith.constant 0 : index
    %c0_10 = arith.constant 0 : index
    %11 = vector.load %arg3[%c0_9, %c0_10] : memref<1x16xf32, #tpu.memory_space<vmem>>, vector<1x16xf32>
    %12 = vector.shape_cast %11 : vector<1x16xf32> to vector<1x1x16xf32>
    %13 = vector.broadcast %12 : vector<1x1x16xf32> to vector<8x8x16xf32>
    %14 = arith.addf %10, %13 : vector<8x8x16xf32>
    %cst_11 = arith.constant 0.000000e+00 : f32
    %15 = vector.broadcast %cst_11 : f32 to vector<8x8x16xf32>
    %16 = arith.cmpf oge, %14, %15 : vector<8x8x16xf32>
    %cst_12 = arith.constant 0.00999999977 : f32
    %17 = vector.broadcast %cst_12 : f32 to vector<8x8x16xf32>
    %18 = arith.mulf %17, %14 : vector<8x8x16xf32>
    %19 = arith.select %16, %14, %18 : vector<8x8x16xi1>, vector<8x8x16xf32>
    %20 = arith.truncf %19 : vector<8x8x16xf32> to vector<8x8x16xbf16>
    %c1 = arith.constant 1 : index
    %c1_13 = arith.constant 1 : index
    %c0_14 = arith.constant 0 : index
    %21 = vector.load %arg9[%c1, %c1_13, %c0_14] : memref<10x10x16xbf16, #tpu.memory_space<vmem>>, vector<8x8x16xbf16>
    tpu.vector_store %arg9[%c1, %c1_13, %c0_14], %20 {strides = array<i32>} : memref<10x10x16xbf16, #tpu.memory_space<vmem>>, vector<8x8x16xbf16>,
    %cst_15 = arith.constant 0.000000e+00 : f32
    %22 = vector.broadcast %cst_15 : f32 to vector<64x8xf32>
    %c0_16 = arith.constant 0 : index
    %c0_17 = arith.constant 0 : index
    %c0_18 = arith.constant 0 : index
    %23 = vector.load %arg9[%c0_16, %c0_17, %c0_18] : memref<10x10x16xbf16, #tpu.memory_space<vmem>>, vector<8x8x16xbf16>
    %24 = vector.shape_cast %23 : vector<8x8x16xbf16> to vector<64x16xbf16>
    %c0_19 = arith.constant 0 : index
    %c0_20 = arith.constant 0 : index
    %25 = vector.load %arg4[%c0_19, %c0_20] : memref<144x8xbf16, #tpu.memory_space<vmem>>, vector<16x8xbf16>
    %cst_21 = arith.constant dense<0.000000e+00> : vector<64x8xf32>
    %26 = tpu.matmul %24, %25, %cst_21 {dimension_numbers = #tpu.dot_dimension_numbers<[1], [0], [0], [1], [0, 0, 1, 1], [], []>} : vector<64x16xbf16>, vector<16x8xbf16>, vector<64x8xf32> -> vector<64x8xf32>
    %27 = arith.addf %22, %26 : vector<64x8xf32>
    %c0_22 = arith.constant 0 : index
    %c1_23 = arith.constant 1 : index
    %c0_24 = arith.constant 0 : index
    %28 = vector.load %arg9[%c0_22, %c1_23, %c0_24] : memref<10x10x16xbf16, #tpu.memory_space<vmem>>, vector<8x8x16xbf16>
    %29 = vector.shape_cast %28 : vector<8x8x16xbf16> to vector<64x16xbf16>
    %c16 = arith.constant 16 : index
    %c0_25 = arith.constant 0 : index
    %30 = vector.load %arg4[%c16, %c0_25] : memref<144x8xbf16, #tpu.memory_space<vmem>>, vector<16x8xbf16>
    %cst_26 = arith.constant dense<0.000000e+00> : vector<64x8xf32>
    %31 = tpu.matmul %29, %30, %cst_26 {dimension_numbers = #tpu.dot_dimension_numbers<[1], [0], [0], [1], [0, 0, 1, 1], [], []>} : vector<64x16xbf16>, vector<16x8xbf16>, vector<64x8xf32> -> vector<64x8xf32>
    %32 = arith.addf %27, %31 : vector<64x8xf32>
    %c0_27 = arith.constant 0 : index
    %c2 = arith.constant 2 : index
    %c0_28 = arith.constant 0 : index
    %33 = vector.load %arg9[%c0_27, %c2, %c0_28] : memref<10x10x16xbf16, #tpu.memory_space<vmem>>, vector<8x8x16xbf16>
    %34 = vector.shape_cast %33 : vector<8x8x16xbf16> to vector<64x16xbf16>
    %c32 = arith.constant 32 : index
    %c0_29 = arith.constant 0 : index
    %35 = vector.load %arg4[%c32, %c0_29] : memref<144x8xbf16, #tpu.memory_space<vmem>>, vector<16x8xbf16>
    %cst_30 = arith.constant dense<0.000000e+00> : vector<64x8xf32>
    %36 = tpu.matmul %34, %35, %cst_30 {dimension_numbers = #tpu.dot_dimension_numbers<[1], [0], [0], [1], [0, 0, 1, 1], [], []>} : vector<64x16xbf16>, vector<16x8xbf16>, vector<64x8xf32> -> vector<64x8xf32>
    %37 = arith.addf %32, %36 : vector<64x8xf32>
    %c1_31 = arith.constant 1 : index
    %c0_32 = arith.constant 0 : index
    %c0_33 = arith.constant 0 : index
    %38 = vector.load %arg9[%c1_31, %c0_32, %c0_33] : memref<10x10x16xbf16, #tpu.memory_space<vmem>>, vector<8x8x16xbf16>
    %39 = vector.shape_cast %38 : vector<8x8x16xbf16> to vector<64x16xbf16>
    %c48 = arith.constant 48 : index
    %c0_34 = arith.constant 0 : index
    %40 = vector.load %arg4[%c48, %c0_34] : memref<144x8xbf16, #tpu.memory_space<vmem>>, vector<16x8xbf16>
    %cst_35 = arith.constant dense<0.000000e+00> : vector<64x8xf32>
    %41 = tpu.matmul %39, %40, %cst_35 {dimension_numbers = #tpu.dot_dimension_numbers<[1], [0], [0], [1], [0, 0, 1, 1], [], []>} : vector<64x16xbf16>, vector<16x8xbf16>, vector<64x8xf32> -> vector<64x8xf32>
    %42 = arith.addf %37, %41 : vector<64x8xf32>
    %c1_36 = arith.constant 1 : index
    %c1_37 = arith.constant 1 : index
    %c0_38 = arith.constant 0 : index
    %43 = vector.load %arg9[%c1_36, %c1_37, %c0_38] : memref<10x10x16xbf16, #tpu.memory_space<vmem>>, vector<8x8x16xbf16>
    %44 = vector.shape_cast %43 : vector<8x8x16xbf16> to vector<64x16xbf16>
    %c64 = arith.constant 64 : index
    %c0_39 = arith.constant 0 : index
    %45 = vector.load %arg4[%c64, %c0_39] : memref<144x8xbf16, #tpu.memory_space<vmem>>, vector<16x8xbf16>
    %cst_40 = arith.constant dense<0.000000e+00> : vector<64x8xf32>
    %46 = tpu.matmul %44, %45, %cst_40 {dimension_numbers = #tpu.dot_dimension_numbers<[1], [0], [0], [1], [0, 0, 1, 1], [], []>} : vector<64x16xbf16>, vector<16x8xbf16>, vector<64x8xf32> -> vector<64x8xf32>
    %47 = arith.addf %42, %46 : vector<64x8xf32>
    %c1_41 = arith.constant 1 : index
    %c2_42 = arith.constant 2 : index
    %c0_43 = arith.constant 0 : index
    %48 = vector.load %arg9[%c1_41, %c2_42, %c0_43] : memref<10x10x16xbf16, #tpu.memory_space<vmem>>, vector<8x8x16xbf16>
    %49 = vector.shape_cast %48 : vector<8x8x16xbf16> to vector<64x16xbf16>
    %c80 = arith.constant 80 : index
    %c0_44 = arith.constant 0 : index
    %50 = vector.load %arg4[%c80, %c0_44] : memref<144x8xbf16, #tpu.memory_space<vmem>>, vector<16x8xbf16>
    %cst_45 = arith.constant dense<0.000000e+00> : vector<64x8xf32>
    %51 = tpu.matmul %49, %50, %cst_45 {dimension_numbers = #tpu.dot_dimension_numbers<[1], [0], [0], [1], [0, 0, 1, 1], [], []>} : vector<64x16xbf16>, vector<16x8xbf16>, vector<64x8xf32> -> vector<64x8xf32>
    %52 = arith.addf %47, %51 : vector<64x8xf32>
    %c2_46 = arith.constant 2 : index
    %c0_47 = arith.constant 0 : index
    %c0_48 = arith.constant 0 : index
    %53 = vector.load %arg9[%c2_46, %c0_47, %c0_48] : memref<10x10x16xbf16, #tpu.memory_space<vmem>>, vector<8x8x16xbf16>
    %54 = vector.shape_cast %53 : vector<8x8x16xbf16> to vector<64x16xbf16>
    %c96 = arith.constant 96 : index
    %c0_49 = arith.constant 0 : index
    %55 = vector.load %arg4[%c96, %c0_49] : memref<144x8xbf16, #tpu.memory_space<vmem>>, vector<16x8xbf16>
    %cst_50 = arith.constant dense<0.000000e+00> : vector<64x8xf32>
    %56 = tpu.matmul %54, %55, %cst_50 {dimension_numbers = #tpu.dot_dimension_numbers<[1], [0], [0], [1], [0, 0, 1, 1], [], []>} : vector<64x16xbf16>, vector<16x8xbf16>, vector<64x8xf32> -> vector<64x8xf32>
    %57 = arith.addf %52, %56 : vector<64x8xf32>
    %c2_51 = arith.constant 2 : index
    %c1_52 = arith.constant 1 : index
    %c0_53 = arith.constant 0 : index
    %58 = vector.load %arg9[%c2_51, %c1_52, %c0_53] : memref<10x10x16xbf16, #tpu.memory_space<vmem>>, vector<8x8x16xbf16>
    %59 = vector.shape_cast %58 : vector<8x8x16xbf16> to vector<64x16xbf16>
    %c112 = arith.constant 112 : index
    %c0_54 = arith.constant 0 : index
    %60 = vector.load %arg4[%c112, %c0_54] : memref<144x8xbf16, #tpu.memory_space<vmem>>, vector<16x8xbf16>
    %cst_55 = arith.constant dense<0.000000e+00> : vector<64x8xf32>
    %61 = tpu.matmul %59, %60, %cst_55 {dimension_numbers = #tpu.dot_dimension_numbers<[1], [0], [0], [1], [0, 0, 1, 1], [], []>} : vector<64x16xbf16>, vector<16x8xbf16>, vector<64x8xf32> -> vector<64x8xf32>
    %62 = arith.addf %57, %61 : vector<64x8xf32>
    %c2_56 = arith.constant 2 : index
    %c2_57 = arith.constant 2 : index
    %c0_58 = arith.constant 0 : index
    %63 = vector.load %arg9[%c2_56, %c2_57, %c0_58] : memref<10x10x16xbf16, #tpu.memory_space<vmem>>, vector<8x8x16xbf16>
    %64 = vector.shape_cast %63 : vector<8x8x16xbf16> to vector<64x16xbf16>
    %c128 = arith.constant 128 : index
    %c0_59 = arith.constant 0 : index
    %65 = vector.load %arg4[%c128, %c0_59] : memref<144x8xbf16, #tpu.memory_space<vmem>>, vector<16x8xbf16>
    %cst_60 = arith.constant dense<0.000000e+00> : vector<64x8xf32>
    %66 = tpu.matmul %64, %65, %cst_60 {dimension_numbers = #tpu.dot_dimension_numbers<[1], [0], [0], [1], [0, 0, 1, 1], [], []>} : vector<64x16xbf16>, vector<16x8xbf16>, vector<64x8xf32> -> vector<64x8xf32>
    %67 = arith.addf %62, %66 : vector<64x8xf32>
    %c0_61 = arith.constant 0 : index
    %c0_62 = arith.constant 0 : index
    %68 = vector.load %arg5[%c0_61, %c0_62] : memref<1x8xf32, #tpu.memory_space<vmem>>, vector<1x8xf32>
    %69 = vector.broadcast %68 : vector<1x8xf32> to vector<64x8xf32>
    %70 = arith.addf %67, %69 : vector<64x8xf32>
    %71 = arith.truncf %70 : vector<64x8xf32> to vector<64x8xbf16>
    %72 = vector.shape_cast %71 : vector<64x8xbf16> to vector<8x8x8xbf16>
    %c0_63 = arith.constant 0 : index
    %c0_64 = arith.constant 0 : index
    %c0_65 = arith.constant 0 : index
    %c0_66 = arith.constant 0 : index
    %73 = vector.load %arg6[%c0_63, %c0_64, %c0_65, %c0_66] : memref<1x8x8x8xbf16, #tpu.memory_space<vmem>>, vector<1x8x8x8xbf16>
    %74 = vector.shape_cast %73 : vector<1x8x8x8xbf16> to vector<8x8x8xbf16>
    %75 = vector.shape_cast %72 : vector<8x8x8xbf16> to vector<1x8x8x8xbf16>
    tpu.vector_store %arg6[%c0_63, %c0_64, %c0_65, %c0_66], %75 {strides = array<i32>} : memref<1x8x8x8xbf16, #tpu.memory_space<vmem>>, vector<1x8x8x8xbf16>,
    %76 = arith.extf %71 : vector<64x8xbf16> to vector<64x8xf32>
    %c0_67 = arith.constant 0 : index
    %c0_68 = arith.constant 0 : index
    %77 = vector.load %arg7[%c0_67, %c0_68] : memref<1x8xf32, #tpu.memory_space<vmem>>, vector<1x8xf32>
    %cst_69 = arith.constant dense<0.000000e+00> : vector<8xf32>
    %78 = vector.multi_reduction <add>, %76, %cst_69 [0] : vector<64x8xf32> to vector<8xf32>
    %79 = vector.shape_cast %78 : vector<8xf32> to vector<1x8xf32>
    %80 = arith.addf %77, %79 : vector<1x8xf32>
    %c0_70 = arith.constant 0 : index
    %c0_71 = arith.constant 0 : index
    %81 = vector.load %arg7[%c0_70, %c0_71] : memref<1x8xf32, #tpu.memory_space<vmem>>, vector<1x8xf32>
    tpu.vector_store %arg7[%c0_70, %c0_71], %80 {strides = array<i32>} : memref<1x8xf32, #tpu.memory_space<vmem>>, vector<1x8xf32>,
    %c0_72 = arith.constant 0 : index
    %c0_73 = arith.constant 0 : index
    %82 = vector.load %arg8[%c0_72, %c0_73] : memref<1x8xf32, #tpu.memory_space<vmem>>, vector<1x8xf32>
    %83 = arith.mulf %76, %76 : vector<64x8xf32>
    %cst_74 = arith.constant dense<0.000000e+00> : vector<8xf32>
    %84 = vector.multi_reduction <add>, %83, %cst_74 [0] : vector<64x8xf32> to vector<8xf32>
    %85 = vector.shape_cast %84 : vector<8xf32> to vector<1x8xf32>
    %86 = arith.addf %82, %85 : vector<1x8xf32>
    %c0_75 = arith.constant 0 : index
    %c0_76 = arith.constant 0 : index
    %87 = vector.load %arg8[%c0_75, %c0_76] : memref<1x8xf32, #tpu.memory_space<vmem>>, vector<1x8xf32>
    tpu.vector_store %arg8[%c0_75, %c0_76], %86 {strides = array<i32>} : memref<1x8xf32, #tpu.memory_space<vmem>>, vector<1x8xf32>,
    return
  }
  func.func @transform_0(%arg0: i32) -> (i32, i32, i32, i32) {
    %c0_i32 = arith.constant 0 : i32
    %c0_i32_0 = arith.constant 0 : i32
    %c0_i32_1 = arith.constant 0 : i32
    %c0_i32_2 = arith.constant 0 : i32
    return %arg0, %c0_i32, %c0_i32_0, %c0_i32_1 : i32, i32, i32, i32
  }
  func.func @transform_1(%arg0: i32) -> (i32, i32) {
    %c0_i32 = arith.constant 0 : i32
    %c0_i32_0 = arith.constant 0 : i32
    %c0_i32_1 = arith.constant 0 : i32
    return %c0_i32, %c0_i32_0 : i32, i32
  }
  func.func @transform_2(%arg0: i32) -> (i32, i32) {
    %c0_i32 = arith.constant 0 : i32
    %c0_i32_0 = arith.constant 0 : i32
    %c0_i32_1 = arith.constant 0 : i32
    return %c0_i32, %c0_i32_0 : i32, i32
  }
  func.func @transform_3(%arg0: i32) -> (i32, i32) {
    %c0_i32 = arith.constant 0 : i32
    %c0_i32_0 = arith.constant 0 : i32
    %c0_i32_1 = arith.constant 0 : i32
    return %c0_i32, %c0_i32_0 : i32, i32
  }
  func.func @transform_4(%arg0: i32) -> (i32, i32) {
    %c0_i32 = arith.constant 0 : i32
    %c0_i32_0 = arith.constant 0 : i32
    %c0_i32_1 = arith.constant 0 : i32
    return %c0_i32, %c0_i32_0 : i32, i32
  }
  func.func @transform_5(%arg0: i32) -> (i32, i32, i32, i32) {
    %c0_i32 = arith.constant 0 : i32
    %c0_i32_0 = arith.constant 0 : i32
    %c0_i32_1 = arith.constant 0 : i32
    %c0_i32_2 = arith.constant 0 : i32
    return %arg0, %c0_i32, %c0_i32_0, %c0_i32_1 : i32, i32, i32, i32
  }
  func.func @transform_6(%arg0: i32) -> (i32, i32) {
    %c0_i32 = arith.constant 0 : i32
    %c0_i32_0 = arith.constant 0 : i32
    %c0_i32_1 = arith.constant 0 : i32
    return %c0_i32, %c0_i32_0 : i32, i32
  }
  func.func @transform_7(%arg0: i32) -> (i32, i32) {
    %c0_i32 = arith.constant 0 : i32
    %c0_i32_0 = arith.constant 0 : i32
    %c0_i32_1 = arith.constant 0 : i32
    return %c0_i32, %c0_i32_0 : i32, i32
  }
}

module attributes {stable_mosaic.version = 11 : i64} {
  func.func @kernel(%arg0: i32, %arg1: memref<1x8x8x8xbf16, #tpu.memory_space<vmem>>, %arg2: memref<1x8xf32, #tpu.memory_space<vmem>>, %arg3: memref<1x8xf32, #tpu.memory_space<vmem>>, %arg4: memref<72x8xbf16, #tpu.memory_space<vmem>>, %arg5: memref<1x8xf32, #tpu.memory_space<vmem>>, %arg6: memref<1x8x8x8xf32, #tpu.memory_space<vmem>>, %arg7: memref<10x10x8xbf16, #tpu.memory_space<vmem>>) attributes {dimension_semantics = [#tpu.dimension_semantics<parallel>], iteration_bounds = array<i64: 2>, scalar_prefetch = 0 : i64, scratch_operands = 1 : i64, tpu.core_type = #tpu.core_type<tc>, window_params = [{transform_indices = @transform_0, window_bounds = array<i64: 1, 8, 8, 8>}, {pipeline_mode = #tpu.pipeline_mode<synchronous>, transform_indices = @transform_1, window_bounds = array<i64: 1, 8>}, {pipeline_mode = #tpu.pipeline_mode<synchronous>, transform_indices = @transform_2, window_bounds = array<i64: 1, 8>}, {pipeline_mode = #tpu.pipeline_mode<synchronous>, transform_indices = @transform_3, window_bounds = array<i64: 72, 8>}, {pipeline_mode = #tpu.pipeline_mode<synchronous>, transform_indices = @transform_4, window_bounds = array<i64: 1, 8>}, {transform_indices = @transform_5, window_bounds = array<i64: 1, 8, 8, 8>}]} {
    %cst = arith.constant 0.000000e+00 : bf16
    %0 = vector.broadcast %cst : bf16 to vector<10x10x8xbf16>
    %c0 = arith.constant 0 : index
    %c0_0 = arith.constant 0 : index
    %c0_1 = arith.constant 0 : index
    %1 = vector.load %arg7[%c0, %c0_0, %c0_1] : memref<10x10x8xbf16, #tpu.memory_space<vmem>>, vector<10x10x8xbf16>
    tpu.vector_store %arg7[%c0, %c0_0, %c0_1], %0 {strides = array<i32>} : memref<10x10x8xbf16, #tpu.memory_space<vmem>>, vector<10x10x8xbf16>,
    %c0_2 = arith.constant 0 : index
    %c0_3 = arith.constant 0 : index
    %c0_4 = arith.constant 0 : index
    %c0_5 = arith.constant 0 : index
    %2 = vector.load %arg1[%c0_2, %c0_3, %c0_4, %c0_5] : memref<1x8x8x8xbf16, #tpu.memory_space<vmem>>, vector<1x8x8x8xbf16>
    %3 = vector.shape_cast %2 : vector<1x8x8x8xbf16> to vector<8x8x8xbf16>
    %4 = arith.extf %3 : vector<8x8x8xbf16> to vector<8x8x8xf32>
    %c0_6 = arith.constant 0 : index
    %c0_7 = arith.constant 0 : index
    %5 = vector.load %arg2[%c0_6, %c0_7] : memref<1x8xf32, #tpu.memory_space<vmem>>, vector<1x8xf32>
    %6 = vector.shape_cast %5 : vector<1x8xf32> to vector<1x1x8xf32>
    %7 = vector.broadcast %6 : vector<1x1x8xf32> to vector<8x8x8xf32>
    %8 = arith.mulf %4, %7 : vector<8x8x8xf32>
    %c0_8 = arith.constant 0 : index
    %c0_9 = arith.constant 0 : index
    %9 = vector.load %arg3[%c0_8, %c0_9] : memref<1x8xf32, #tpu.memory_space<vmem>>, vector<1x8xf32>
    %10 = vector.shape_cast %9 : vector<1x8xf32> to vector<1x1x8xf32>
    %11 = vector.broadcast %10 : vector<1x1x8xf32> to vector<8x8x8xf32>
    %12 = arith.addf %8, %11 : vector<8x8x8xf32>
    %cst_10 = arith.constant 0.000000e+00 : f32
    %13 = vector.broadcast %cst_10 : f32 to vector<8x8x8xf32>
    %14 = arith.cmpf oge, %12, %13 : vector<8x8x8xf32>
    %cst_11 = arith.constant 0.00999999977 : f32
    %15 = vector.broadcast %cst_11 : f32 to vector<8x8x8xf32>
    %16 = arith.mulf %15, %12 : vector<8x8x8xf32>
    %17 = arith.select %14, %12, %16 : vector<8x8x8xi1>, vector<8x8x8xf32>
    %18 = arith.truncf %17 : vector<8x8x8xf32> to vector<8x8x8xbf16>
    %c1 = arith.constant 1 : index
    %c1_12 = arith.constant 1 : index
    %c0_13 = arith.constant 0 : index
    %19 = vector.load %arg7[%c1, %c1_12, %c0_13] : memref<10x10x8xbf16, #tpu.memory_space<vmem>>, vector<8x8x8xbf16>
    tpu.vector_store %arg7[%c1, %c1_12, %c0_13], %18 {strides = array<i32>} : memref<10x10x8xbf16, #tpu.memory_space<vmem>>, vector<8x8x8xbf16>,
    %cst_14 = arith.constant 0.000000e+00 : f32
    %20 = vector.broadcast %cst_14 : f32 to vector<64x8xf32>
    %c0_15 = arith.constant 0 : index
    %c0_16 = arith.constant 0 : index
    %c0_17 = arith.constant 0 : index
    %21 = vector.load %arg7[%c0_15, %c0_16, %c0_17] : memref<10x10x8xbf16, #tpu.memory_space<vmem>>, vector<8x8x8xbf16>
    %22 = vector.shape_cast %21 : vector<8x8x8xbf16> to vector<64x8xbf16>
    %c0_18 = arith.constant 0 : index
    %c0_19 = arith.constant 0 : index
    %23 = vector.load %arg4[%c0_18, %c0_19] : memref<72x8xbf16, #tpu.memory_space<vmem>>, vector<8x8xbf16>
    %cst_20 = arith.constant dense<0.000000e+00> : vector<64x8xf32>
    %24 = tpu.matmul %22, %23, %cst_20 {dimension_numbers = #tpu.dot_dimension_numbers<[1], [0], [0], [1], [0, 0, 1, 1], [], []>} : vector<64x8xbf16>, vector<8x8xbf16>, vector<64x8xf32> -> vector<64x8xf32>
    %25 = arith.addf %20, %24 : vector<64x8xf32>
    %c0_21 = arith.constant 0 : index
    %c1_22 = arith.constant 1 : index
    %c0_23 = arith.constant 0 : index
    %26 = vector.load %arg7[%c0_21, %c1_22, %c0_23] : memref<10x10x8xbf16, #tpu.memory_space<vmem>>, vector<8x8x8xbf16>
    %27 = vector.shape_cast %26 : vector<8x8x8xbf16> to vector<64x8xbf16>
    %c8 = arith.constant 8 : index
    %c0_24 = arith.constant 0 : index
    %28 = vector.load %arg4[%c8, %c0_24] : memref<72x8xbf16, #tpu.memory_space<vmem>>, vector<8x8xbf16>
    %cst_25 = arith.constant dense<0.000000e+00> : vector<64x8xf32>
    %29 = tpu.matmul %27, %28, %cst_25 {dimension_numbers = #tpu.dot_dimension_numbers<[1], [0], [0], [1], [0, 0, 1, 1], [], []>} : vector<64x8xbf16>, vector<8x8xbf16>, vector<64x8xf32> -> vector<64x8xf32>
    %30 = arith.addf %25, %29 : vector<64x8xf32>
    %c0_26 = arith.constant 0 : index
    %c2 = arith.constant 2 : index
    %c0_27 = arith.constant 0 : index
    %31 = vector.load %arg7[%c0_26, %c2, %c0_27] : memref<10x10x8xbf16, #tpu.memory_space<vmem>>, vector<8x8x8xbf16>
    %32 = vector.shape_cast %31 : vector<8x8x8xbf16> to vector<64x8xbf16>
    %c16 = arith.constant 16 : index
    %c0_28 = arith.constant 0 : index
    %33 = vector.load %arg4[%c16, %c0_28] : memref<72x8xbf16, #tpu.memory_space<vmem>>, vector<8x8xbf16>
    %cst_29 = arith.constant dense<0.000000e+00> : vector<64x8xf32>
    %34 = tpu.matmul %32, %33, %cst_29 {dimension_numbers = #tpu.dot_dimension_numbers<[1], [0], [0], [1], [0, 0, 1, 1], [], []>} : vector<64x8xbf16>, vector<8x8xbf16>, vector<64x8xf32> -> vector<64x8xf32>
    %35 = arith.addf %30, %34 : vector<64x8xf32>
    %c1_30 = arith.constant 1 : index
    %c0_31 = arith.constant 0 : index
    %c0_32 = arith.constant 0 : index
    %36 = vector.load %arg7[%c1_30, %c0_31, %c0_32] : memref<10x10x8xbf16, #tpu.memory_space<vmem>>, vector<8x8x8xbf16>
    %37 = vector.shape_cast %36 : vector<8x8x8xbf16> to vector<64x8xbf16>
    %c24 = arith.constant 24 : index
    %c0_33 = arith.constant 0 : index
    %38 = vector.load %arg4[%c24, %c0_33] : memref<72x8xbf16, #tpu.memory_space<vmem>>, vector<8x8xbf16>
    %cst_34 = arith.constant dense<0.000000e+00> : vector<64x8xf32>
    %39 = tpu.matmul %37, %38, %cst_34 {dimension_numbers = #tpu.dot_dimension_numbers<[1], [0], [0], [1], [0, 0, 1, 1], [], []>} : vector<64x8xbf16>, vector<8x8xbf16>, vector<64x8xf32> -> vector<64x8xf32>
    %40 = arith.addf %35, %39 : vector<64x8xf32>
    %c1_35 = arith.constant 1 : index
    %c1_36 = arith.constant 1 : index
    %c0_37 = arith.constant 0 : index
    %41 = vector.load %arg7[%c1_35, %c1_36, %c0_37] : memref<10x10x8xbf16, #tpu.memory_space<vmem>>, vector<8x8x8xbf16>
    %42 = vector.shape_cast %41 : vector<8x8x8xbf16> to vector<64x8xbf16>
    %c32 = arith.constant 32 : index
    %c0_38 = arith.constant 0 : index
    %43 = vector.load %arg4[%c32, %c0_38] : memref<72x8xbf16, #tpu.memory_space<vmem>>, vector<8x8xbf16>
    %cst_39 = arith.constant dense<0.000000e+00> : vector<64x8xf32>
    %44 = tpu.matmul %42, %43, %cst_39 {dimension_numbers = #tpu.dot_dimension_numbers<[1], [0], [0], [1], [0, 0, 1, 1], [], []>} : vector<64x8xbf16>, vector<8x8xbf16>, vector<64x8xf32> -> vector<64x8xf32>
    %45 = arith.addf %40, %44 : vector<64x8xf32>
    %c1_40 = arith.constant 1 : index
    %c2_41 = arith.constant 2 : index
    %c0_42 = arith.constant 0 : index
    %46 = vector.load %arg7[%c1_40, %c2_41, %c0_42] : memref<10x10x8xbf16, #tpu.memory_space<vmem>>, vector<8x8x8xbf16>
    %47 = vector.shape_cast %46 : vector<8x8x8xbf16> to vector<64x8xbf16>
    %c40 = arith.constant 40 : index
    %c0_43 = arith.constant 0 : index
    %48 = vector.load %arg4[%c40, %c0_43] : memref<72x8xbf16, #tpu.memory_space<vmem>>, vector<8x8xbf16>
    %cst_44 = arith.constant dense<0.000000e+00> : vector<64x8xf32>
    %49 = tpu.matmul %47, %48, %cst_44 {dimension_numbers = #tpu.dot_dimension_numbers<[1], [0], [0], [1], [0, 0, 1, 1], [], []>} : vector<64x8xbf16>, vector<8x8xbf16>, vector<64x8xf32> -> vector<64x8xf32>
    %50 = arith.addf %45, %49 : vector<64x8xf32>
    %c2_45 = arith.constant 2 : index
    %c0_46 = arith.constant 0 : index
    %c0_47 = arith.constant 0 : index
    %51 = vector.load %arg7[%c2_45, %c0_46, %c0_47] : memref<10x10x8xbf16, #tpu.memory_space<vmem>>, vector<8x8x8xbf16>
    %52 = vector.shape_cast %51 : vector<8x8x8xbf16> to vector<64x8xbf16>
    %c48 = arith.constant 48 : index
    %c0_48 = arith.constant 0 : index
    %53 = vector.load %arg4[%c48, %c0_48] : memref<72x8xbf16, #tpu.memory_space<vmem>>, vector<8x8xbf16>
    %cst_49 = arith.constant dense<0.000000e+00> : vector<64x8xf32>
    %54 = tpu.matmul %52, %53, %cst_49 {dimension_numbers = #tpu.dot_dimension_numbers<[1], [0], [0], [1], [0, 0, 1, 1], [], []>} : vector<64x8xbf16>, vector<8x8xbf16>, vector<64x8xf32> -> vector<64x8xf32>
    %55 = arith.addf %50, %54 : vector<64x8xf32>
    %c2_50 = arith.constant 2 : index
    %c1_51 = arith.constant 1 : index
    %c0_52 = arith.constant 0 : index
    %56 = vector.load %arg7[%c2_50, %c1_51, %c0_52] : memref<10x10x8xbf16, #tpu.memory_space<vmem>>, vector<8x8x8xbf16>
    %57 = vector.shape_cast %56 : vector<8x8x8xbf16> to vector<64x8xbf16>
    %c56 = arith.constant 56 : index
    %c0_53 = arith.constant 0 : index
    %58 = vector.load %arg4[%c56, %c0_53] : memref<72x8xbf16, #tpu.memory_space<vmem>>, vector<8x8xbf16>
    %cst_54 = arith.constant dense<0.000000e+00> : vector<64x8xf32>
    %59 = tpu.matmul %57, %58, %cst_54 {dimension_numbers = #tpu.dot_dimension_numbers<[1], [0], [0], [1], [0, 0, 1, 1], [], []>} : vector<64x8xbf16>, vector<8x8xbf16>, vector<64x8xf32> -> vector<64x8xf32>
    %60 = arith.addf %55, %59 : vector<64x8xf32>
    %c2_55 = arith.constant 2 : index
    %c2_56 = arith.constant 2 : index
    %c0_57 = arith.constant 0 : index
    %61 = vector.load %arg7[%c2_55, %c2_56, %c0_57] : memref<10x10x8xbf16, #tpu.memory_space<vmem>>, vector<8x8x8xbf16>
    %62 = vector.shape_cast %61 : vector<8x8x8xbf16> to vector<64x8xbf16>
    %c64 = arith.constant 64 : index
    %c0_58 = arith.constant 0 : index
    %63 = vector.load %arg4[%c64, %c0_58] : memref<72x8xbf16, #tpu.memory_space<vmem>>, vector<8x8xbf16>
    %cst_59 = arith.constant dense<0.000000e+00> : vector<64x8xf32>
    %64 = tpu.matmul %62, %63, %cst_59 {dimension_numbers = #tpu.dot_dimension_numbers<[1], [0], [0], [1], [0, 0, 1, 1], [], []>} : vector<64x8xbf16>, vector<8x8xbf16>, vector<64x8xf32> -> vector<64x8xf32>
    %65 = arith.addf %60, %64 : vector<64x8xf32>
    %c0_60 = arith.constant 0 : index
    %c0_61 = arith.constant 0 : index
    %66 = vector.load %arg5[%c0_60, %c0_61] : memref<1x8xf32, #tpu.memory_space<vmem>>, vector<1x8xf32>
    %67 = vector.broadcast %66 : vector<1x8xf32> to vector<64x8xf32>
    %68 = arith.addf %65, %67 : vector<64x8xf32>
    %69 = vector.shape_cast %68 : vector<64x8xf32> to vector<8x8x8xf32>
    %c0_62 = arith.constant 0 : index
    %c0_63 = arith.constant 0 : index
    %c0_64 = arith.constant 0 : index
    %c0_65 = arith.constant 0 : index
    %70 = vector.load %arg6[%c0_62, %c0_63, %c0_64, %c0_65] : memref<1x8x8x8xf32, #tpu.memory_space<vmem>>, vector<1x8x8x8xf32>
    %71 = vector.shape_cast %70 : vector<1x8x8x8xf32> to vector<8x8x8xf32>
    %72 = vector.shape_cast %69 : vector<8x8x8xf32> to vector<1x8x8x8xf32>
    tpu.vector_store %arg6[%c0_62, %c0_63, %c0_64, %c0_65], %72 {strides = array<i32>} : memref<1x8x8x8xf32, #tpu.memory_space<vmem>>, vector<1x8x8x8xf32>,
    return
  }
  func.func @transform_0(%arg0: i32) -> (i32, i32, i32, i32) {
    %c0_i32 = arith.constant 0 : i32
    %c0_i32_0 = arith.constant 0 : i32
    %c0_i32_1 = arith.constant 0 : i32
    %c0_i32_2 = arith.constant 0 : i32
    return %arg0, %c0_i32, %c0_i32_0, %c0_i32_1 : i32, i32, i32, i32
  }
  func.func @transform_1(%arg0: i32) -> (i32, i32) {
    %c0_i32 = arith.constant 0 : i32
    %c0_i32_0 = arith.constant 0 : i32
    %c0_i32_1 = arith.constant 0 : i32
    return %c0_i32, %c0_i32_0 : i32, i32
  }
  func.func @transform_2(%arg0: i32) -> (i32, i32) {
    %c0_i32 = arith.constant 0 : i32
    %c0_i32_0 = arith.constant 0 : i32
    %c0_i32_1 = arith.constant 0 : i32
    return %c0_i32, %c0_i32_0 : i32, i32
  }
  func.func @transform_3(%arg0: i32) -> (i32, i32) {
    %c0_i32 = arith.constant 0 : i32
    %c0_i32_0 = arith.constant 0 : i32
    %c0_i32_1 = arith.constant 0 : i32
    return %c0_i32, %c0_i32_0 : i32, i32
  }
  func.func @transform_4(%arg0: i32) -> (i32, i32) {
    %c0_i32 = arith.constant 0 : i32
    %c0_i32_0 = arith.constant 0 : i32
    %c0_i32_1 = arith.constant 0 : i32
    return %c0_i32, %c0_i32_0 : i32, i32
  }
  func.func @transform_5(%arg0: i32) -> (i32, i32, i32, i32) {
    %c0_i32 = arith.constant 0 : i32
    %c0_i32_0 = arith.constant 0 : i32
    %c0_i32_1 = arith.constant 0 : i32
    %c0_i32_2 = arith.constant 0 : i32
    return %arg0, %c0_i32, %c0_i32_0, %c0_i32_1 : i32, i32, i32, i32
  }
}

</mosaic_0001>

<bundles_post_ra>
// kernel: tile.13
= control target key start
LH: loop header
LB: loop body
LE: loop exit
PB: predicated region body
PF: predicated region fallthrough
CT: control target
= control target key end

     0   :  { %s22_s0 = inlined_call_operand.vmem [shape: f32[4], index: 0, kind: input, shape index: {}]   ;;  %s23_s1 = inlined_call_operand.vmem [shape: f32[4,4], index: 1, kind: output, shape index: {}]  }
   0x1   :  { %v4_v0 = vld [vmem:[%s22_s0] ss:$0 sm:$0xff] }
   0x2   :  { %5 = vst [vmem:[%s23_s1] sm:$0xf] %v4_v0 }

// kernel: tile.14
= control target key start
LH: loop header
LB: loop body
LE: loop exit
PB: predicated region body
PF: predicated region fallthrough
CT: control target
= control target key end

     0   :  { %vm8_vm0 = vcmask 31744   ;;  %s40_s8 = smov 4   ;;  %s41_s9 = smov 8   ;;  %vm14_vm1 = vcmask 130144   ;;  %vm20_vm2 = vcmask 97344   ;;  %vm26_vm3 = vcmask 64544   ;;  %s58_s0 = inlined_call_operand.vmem [shape: f32[4,4], index: 0, kind: input, shape index: {}]   ;;  %s59_s1 = inlined_call_operand.vmem [shape: f32[1,16], index: 1, kind: output, shape index: {}]  }
   0x1   :  { %v5_v0 = vld [vmem:[%s58_s0] sm:$0xf]  ;;  %s39_s0 = smov 12  }
   0x2   :  { %6 = vst [vmem:[#allocation1] sm:$0xf] %v5_v0 }
   0x9   :  { %v11_v1 = vld [vmem:[#allocation1 + $0x3] sm:$0x1]   ;;  %v23_v2 = vld [vmem:[#allocation1 + $0x1] sm:$0x1]   ;;  %v7_v3 = vld [vmem:[#allocation1] sm:$0x1]  }
   0xa   :  { %12 = vrot.lane.b32.xlu0 %v11_v1, %s39_s0  ;;  %24 = vrot.lane.b32.xlu1 %v23_v2, %s40_s8  ;;  %v17_v4 = vld [vmem:[#allocation1 + $0x2] sm:$0x1]   ;;  %9 = vst.msk [vmem:[#allocation0] sm:$0x1] %vm8_vm0, %v7_v3  }
   0xe   :  { %18 = vrot.lane.b32.xlu0 %v17_v4, %s41_s9 }
  0x7c   :  { %v13_v5 = vpop.permute.xlu0 %12   ;;  %v25_v6 = vpop.permute.xlu1 %24  }
  0x7d   :  { %15 = vst.msk [vmem:[#allocation0] sm:$0x1] %vm14_vm1, %v13_v5  }
  0x80   :  { %v19_v7 = vpop.permute.xlu0 %18  }
  0x81   :  { %21 = vst.msk [vmem:[#allocation0] sm:$0x1] %vm20_vm2, %v19_v7  }
  0x82   :  { %27 = vst.msk [vmem:[#allocation0] sm:$0x1] %vm26_vm3, %v25_v6  }
  0x89   :  { %v32_v8 = vld [vmem:[#allocation0] sm:$0x1] }
  0x8a   :  { %35 = vst [vmem:[%s59_s1] sm:$0x1] %v32_v8 }

// kernel: encoder_block_forward.3
= control target key start
LH: loop header
LB: loop body
LE: loop exit
PB: predicated region body
PF: predicated region fallthrough
CT: control target
= control target key end

     0   :  { %vm14_vm0 = vcmask 122880   ;;  %vm34_vm1 = vcmask 130048   ;;  %v140_v0 = vmov 0.0   ;;  %s258_s0 = inlined_call_operand.vmem [shape: f32[128,16], index: 0, kind: input, shape index: {}]   ;;  %s259_s1 = inlined_call_operand.vmem [shape: f32[1,16], index: 1, kind: output, shape index: {0}]   ;;  %s260_s2 = inlined_call_operand.vmem [shape: f32[1,16], index: 2, kind: output, shape index: {1}]  }
   0x1   :  { %15 = vst.msk [vmem:[%s259_s1] sm:$0x1] %vm14_vm0, %v140_v0  ;;  %v17_v1 = vld [vmem:[%s258_s0] sm:$0xff]  ;;  %v18_v2 = vld [vmem:[%s258_s0 + $0x8] sm:$0xff]  ;;  %v19_v3 = vld [vmem:[%s258_s0 + $0x10] sm:$0xff] }
   0x2   :  { %16 = vst.msk [vmem:[%s260_s2] sm:$0x1] %vm14_vm0, %v140_v0  ;;  %v35_v4 = vsel %vm34_vm1, %v17_v1, 0.0  ;;  %v36_v5 = vsel %vm34_vm1, %v18_v2, 0.0  ;;  %v38_v6 = vsel %vm34_vm1, %v19_v3, 0.0  ;;  %v20_v7 = vld [vmem:[%s258_s0 + $0x18] sm:$0xff]  ;;  %v76_v15 = vmul.f32 %v17_v1, %v17_v1 }
   0x3   :  { %v37_v8 = vadd.f32 %v36_v5, %v35_v4  ;;  %v40_v9 = vsel %vm34_vm1, %v20_v7, 0.0  ;;  %v21_v10 = vld [vmem:[%s258_s0 + $0x20] sm:$0xff]  ;;  %v22_v13 = vld [vmem:[%s258_s0 + $0x28] sm:$0xff]  ;;  %v77_v16 = vmul.f32 %v18_v2, %v18_v2  ;;  %v78_v17 = vmul.f32 %v19_v3, %v19_v3  ;;  %v23_v19 = vld [vmem:[%s258_s0 + $0x30] sm:$0xff] }
   0x4   :  { %v42_v12 = vsel %vm34_vm1, %v21_v10, 0.0  ;;  %v44_v18 = vsel %vm34_vm1, %v22_v13, 0.0  ;;  %v79_v21 = vmul.f32 %v20_v7, %v20_v7  ;;  %v46_v22 = vsel %vm34_vm1, %v23_v19, 0.0  ;;  %v24_v24 = vld [vmem:[%s258_s0 + $0x38] sm:$0xff]  ;;  %v25_v31 = vld [vmem:[%s258_s0 + $0x40] sm:$0xff]  ;;  %v26_v37 = vld [vmem:[%s258_s0 + $0x48] sm:$0xff] }
   0x5   :  { %v39_v11 = vadd.f32 %v38_v6, %v37_v8  ;;  %v80_v23 = vmul.f32 %v21_v10, %v21_v10  ;;  %v92_v26 = vsel %vm34_vm1, %v76_v15, 0.0  ;;  %v93_v27 = vsel %vm34_vm1, %v77_v16, 0.0  ;;  %v27_v43 = vld [vmem:[%s258_s0 + $0x50] sm:$0xff]  ;;  %v28_v49 = vld [vmem:[%s258_s0 + $0x58] sm:$0xff]  ;;  %v29_v55 = vld [vmem:[%s258_s0 + $0x60] sm:$0xff] }
   0x6   :  { %v95_v28 = vsel %vm34_vm1, %v78_v17, 0.0  ;;  %v48_v29 = vsel %vm34_vm1, %v24_v24, 0.0  ;;  %v94_v30 = vadd.f32 %v93_v27, %v92_v26  ;;  %v81_v33 = vmul.f32 %v22_v13, %v22_v13  ;;  %v30_v61 = vld [vmem:[%s258_s0 + $0x68] sm:$0xff]  ;;  %v31_v3 = vld [vmem:[%s258_s0 + $0x70] sm:$0xff] }
   0x7   :  { %v41_v14 = vadd.f32 %v40_v9, %v39_v11  ;;  %v97_v34 = vsel %vm34_vm1, %v79_v21, 0.0  ;;  %v50_v35 = vsel %vm34_vm1, %v25_v31, 0.0  ;;  %v82_v39 = vmul.f32 %v23_v19, %v23_v19  ;;  %v32_v9 = vld [vmem:[%s258_s0 + $0x78] sm:$0xff] }
   0x8   :  { %v96_v36 = vadd.f32 %v95_v28, %v94_v30  ;;  %v99_v40 = vsel %vm34_vm1, %v80_v23, 0.0  ;;  %v52_v41 = vsel %vm34_vm1, %v26_v37, 0.0  ;;  %v83_v45 = vmul.f32 %v24_v24, %v24_v24 }
   0x9   :  { %v43_v20 = vadd.f32 %v42_v12, %v41_v14  ;;  %v101_v46 = vsel %vm34_vm1, %v81_v33, 0.0  ;;  %v54_v47 = vsel %vm34_vm1, %v27_v43, 0.0  ;;  %v84_v51 = vmul.f32 %v25_v31, %v25_v31 }
   0xa   :  { %v98_v42 = vadd.f32 %v97_v34, %v96_v36  ;;  %v103_v52 = vsel %vm34_vm1, %v82_v39, 0.0  ;;  %v56_v53 = vsel %vm34_vm1, %v28_v49, 0.0  ;;  %v85_v57 = vmul.f32 %v26_v37, %v26_v37  ;;  %v33_v36 = vld [vmem:[%s259_s1] sm:$0x1] }
   0xb   :  { %v45_v25 = vadd.f32 %v44_v18, %v43_v20  ;;  %v105_v58 = vsel %vm34_vm1, %v83_v45, 0.0  ;;  %v58_v59 = vsel %vm34_vm1, %v29_v55, 0.0  ;;  %v86_v63 = vmul.f32 %v27_v43, %v27_v43 }
   0xc   :  { %v100_v48 = vadd.f32 %v99_v40, %v98_v42  ;;  %v107_v0 = vsel %vm34_vm1, %v84_v51, 0.0  ;;  %v60_v1 = vsel %vm34_vm1, %v30_v61, 0.0  ;;  %v87_v5 = vmul.f32 %v28_v49, %v28_v49 }
   0xd   :  { %v47_v32 = vadd.f32 %v46_v22, %v45_v25  ;;  %v109_v6 = vsel %vm34_vm1, %v85_v57, 0.0  ;;  %v62_v7 = vsel %vm34_vm1, %v31_v3, 0.0  ;;  %v88_v11 = vmul.f32 %v29_v55, %v29_v55 }
   0xe   :  { %v102_v54 = vadd.f32 %v101_v46, %v100_v48  ;;  %v111_v12 = vsel %vm34_vm1, %v86_v63, 0.0  ;;  %v64_v13 = vsel %vm34_vm1, %v32_v9, 0.0  ;;  %v89_v16 = vmul.f32 %v30_v61, %v30_v61 }
   0xf   :  { %v49_v38 = vadd.f32 %v48_v29, %v47_v32  ;;  %v113_v17 = vsel %vm34_vm1, %v87_v5, 0.0  ;;  %v90_v20 = vmul.f32 %v31_v3, %v31_v3  ;;  %v115_v21 = vsel %vm34_vm1, %v88_v11, 0.0 }
  0x10   :  { %v104_v60 = vadd.f32 %v103_v52, %v102_v54  ;;  %v91_v24 = vmul.f32 %v32_v9, %v32_v9  ;;  %v117_v25 = vsel %vm34_vm1, %v89_v16, 0.0 }
  0x11   :  { %v51_v44 = vadd.f32 %v50_v35, %v49_v38  ;;  %v119_v28 = vsel %vm34_vm1, %v90_v20, 0.0 }
  0x12   :  { %v106_v2 = vadd.f32 %v105_v58, %v104_v60  ;;  %v121_v31 = vsel %vm34_vm1, %v91_v24, 0.0 }
  0x13   :  { %v53_v50 = vadd.f32 %v52_v41, %v51_v44  ;;  %v75_v44 = vld [vmem:[%s260_s2] sm:$0x1] }
  0x14   :  { %v108_v8 = vadd.f32 %v107_v0, %v106_v2 }
  0x15   :  { %v55_v56 = vadd.f32 %v54_v47, %v53_v50 }
  0x16   :  { %v110_v14 = vadd.f32 %v109_v6, %v108_v8 }
  0x17   :  { %v57_v62 = vadd.f32 %v56_v53, %v55_v56 }
  0x18   :  { %v112_v18 = vadd.f32 %v111_v12, %v110_v14 }
  0x19   :  { %v59_v4 = vadd.f32 %v58_v59, %v57_v62 }
  0x1a   :  { %v114_v22 = vadd.f32 %v113_v17, %v112_v18 }
  0x1b   :  { %v61_v10 = vadd.f32 %v60_v1, %v59_v4 }
  0x1c   :  { %v116_v26 = vadd.f32 %v115_v21, %v114_v22 }
  0x1d   :  { %v63_v15 = vadd.f32 %v62_v7, %v61_v10 }
  0x1e   :  { %v118_v29 = vadd.f32 %v117_v25, %v116_v26 }
  0x1f   :  { %v65_v19 = vadd.f32 %v64_v13, %v63_v15 }
  0x20   :  { %v120_v32 = vadd.f32 %v119_v28, %v118_v29 }
  0x21   :  { %v66_v23 = vrot.slane %v65_v19, 4 }
  0x22   :  { %v122_v34 = vadd.f32 %v121_v31, %v120_v32 }
  0x23   :  { %v67_v27 = vadd.f32 %v66_v23, %v65_v19 }
  0x24   :  { %v123_v37 = vrot.slane %v122_v34, 4 }
  0x25   :  { %v68_v30 = vrot.slane %v67_v27, 2 }
  0x26   :  { %v124_v39 = vadd.f32 %v123_v37, %v122_v34 }
  0x27   :  { %v69_v33 = vadd.f32 %v68_v30, %v67_v27 }
  0x28   :  { %v125_v41 = vrot.slane %v124_v39, 2 }
  0x29   :  { %v70_v35 = vrot.slane %v69_v33, 1 }
  0x2a   :  { %v126_v42 = vadd.f32 %v125_v41, %v124_v39 }
  0x2b   :  { %v71_v38 = vadd.f32 %v70_v35, %v69_v33 }
  0x2c   :  { %v127_v43 = vrot.slane %v126_v42, 1 }
  0x2d   :  { %v72_v40 = vadd.f32 %v71_v38, %v33_v36 }
  0x2e   :  { %v128_v45 = vadd.f32 %v127_v43, %v126_v42 }
  0x2f   :  { %74 = vst.msk [vmem:[%s259_s1] sm:$0x1] %vm14_vm0, %v72_v40 }
  0x30   :  { %v129_v46 = vadd.f32 %v128_v45, %v75_v44 }
  0x32   :  { %130 = vst.msk [vmem:[%s260_s2] sm:$0x1] %vm14_vm0, %v129_v46 }

// kernel: encoder_block_forward.5
= control target key start
LH: loop header
LB: loop body
LE: loop exit
PB: predicated region body
PF: predicated region fallthrough
CT: control target
= control target key end

     0   :  { %s2410_s18 = smov 0   ;;  %s2999_s0 = inlined_call_operand.vmem [shape: bf16[2,8,8,8], index: 0, kind: input, shape index: {}]   ;;  %s3000_s1 = inlined_call_operand.vmem [shape: f32[1,8], index: 1, kind: input, shape index: {}]   ;;  %s3001_s2 = inlined_call_operand.vmem [shape: f32[1,8], index: 2, kind: input, shape index: {}]   ;;  %s3002_s3 = inlined_call_operand.vmem [shape: bf16[72,8], index: 3, kind: input, shape index: {}]   ;;  %s3003_s4 = inlined_call_operand.vmem [shape: f32[1,8], index: 4, kind: input, shape index: {}]   ;;  %s3004_s5 = inlined_call_operand.vmem [shape: f32[2,8,8,8], index: 5, kind: output, shape index: {}]  }
   0x1 LB: > { %s2057_s19 = sadd.s32 4294967295, %s2377_s18   ;;  %p2061_p0 = scmp.ge.s32.totalorder %s2377_s18, 1  ;;  %s2377_s18 = sphi %s2410_s18, %s15_s18  }
   0x2   : > { %p187_p1 = scmp.lt.s32.totalorder %s2377_s18, 3 }
   0x4   : > { %p188_p2 = pnand %p2061_p0, %p187_p1 }
   0x5   : > { %p2421_p3 = scmp.lt.s32.totalorder (!%p188_p2), %s2057_s19, 1 }
   0x6   : > { %191 = sbr.rel (%p188_p2) target bundleno = 355 (0x163), region = 40 }
   0xb   : > { %v617_v0 = vld [vmem:[%s3002_s3 + $0x4] sm:$0xf]  ;;  %vm643_vm0 = vcmask 1043456   ;;  %vm226_vm1 = vcmask 60416   ;;  %v2379_v2 = vmov 0   ;;  %vm228_vm2 = vcmask 57344  }
   0xc   : > { %2342 = vmatprep.subr.msk.bf16.mxu1 %vm643_vm0, %v617_v0  ;;  %2341 = vmatprep.subr.msk.bf16.mxu0 %vm643_vm0, %v617_v0  ;;  %v645_v1 = vsel %vm643_vm0, %v617_v0, 0  ;;  %227 = vst.msk [vmem:[#allocation2] sm:$0xf] %vm226_vm1, %v2379_v2  ;;  %230 = vst.msk [vmem:[#allocation2 + $0x8] sm:$0xf] %vm226_vm1, %v2379_v2  ;;  %s3015_s19 = smov (!%p2421_p3, %s2057_s19), 1 }
   0xd   : > { %232 = vst.msk [vmem:[#allocation2 + $0x10] sm:$0xf] %vm226_vm1, %v2379_v2  ;;  %234 = vst.msk [vmem:[#allocation2 + $0x18] sm:$0xf] %vm226_vm1, %v2379_v2  ;;  %2340 = vmatpush3.bf16.msra.mxu1 %v645_v1  ;;  %2250 = vmatpush3.bf16.msra.mxu0 %v645_v1  ;;  %v2455_v3 = vld [vmem:[%s3002_s3] sm:$0xf] }
   0xe   : > { %236 = vst.msk [vmem:[#allocation2 + $0x20] sm:$0xf] %vm226_vm1, %v2379_v2  ;;  %238 = vst.msk [vmem:[#allocation2 + $0x28] sm:$0xf] %vm226_vm1, %v2379_v2  ;;  %s2175_s25 = sshll.u32 %s3015_s19, 5  ;;  %2343 = vmatprep.subr.msk.bf16.mxu1 %vm643_vm0, %v2455_v3  ;;  %vm836_vm13 = vcmask 1042432  }
   0xf   : > { %240 = vst.msk [vmem:[#allocation2 + $0x30] sm:$0xf] %vm226_vm1, %v2379_v2  ;;  %242 = vst.msk [vmem:[#allocation2 + $0x38] sm:$0xf] %vm226_vm1, %v2379_v2  ;;  %v2463_v4 = vld [vmem:[%s3002_s3 + $0x8] sm:$0xf]  ;;  %s219_s30 = scalar_lea.vmem %s2999_s0, %s2175_s25 }
  0x10   : > { %244 = vst.msk [vmem:[#allocation2 + $0x40] sm:$0xf] %vm226_vm1, %v2379_v2  ;;  %246 = vst.msk [vmem:[#allocation2 + $0x48] sm:$0xf] %vm226_vm1, %v2379_v2  ;;  %v2471_v5 = vld [vmem:[%s3000_s1] ss:$0 sm:$0xff]  ;;  %2344 = vmatprep.subr.msk.bf16.mxu0 %vm643_vm0, %v2463_v4 }
  0x11   : > { %229 = vst.msk [vmem:[#allocation2 + $0x4] sm:$0x1] %vm228_vm2, %v2379_v2  ;;  %231 = vst.msk [vmem:[#allocation2 + $0xc] sm:$0x1] %vm228_vm2, %v2379_v2  ;;  %v2186_v6 = vld [vmem:[%s219_s30] sm:$0xff]   ;;  %v2201_v7 = vld [vmem:[%s219_s30 + $0x8] sm:$0xff]  }
  0x12   : > { %233 = vst.msk [vmem:[#allocation2 + $0x14] sm:$0x1] %vm228_vm2, %v2379_v2  ;;  %235 = vst.msk [vmem:[#allocation2 + $0x1c] sm:$0x1] %vm228_vm2, %v2379_v2  ;;  %v2202_v8 = vld [vmem:[%s219_s30 + $0x10] sm:$0xff]   ;;  %v2187_v9 = vunpack.c.l.bf16 %v2186_v6  ;;  %v2188_v10 = vunpack.c.h.bf16 %v2186_v6  ;;  %v2192_v11 = vunpack.c.h.bf16 %v2201_v7  ;;  %v2191_v14 = vunpack.c.l.bf16 %v2201_v7  ;;  %v2482_v16 = vld [vmem:[%s219_s30 + $0x18] sm:$0xff]  }
  0x13   : > { %237 = vst.msk [vmem:[#allocation2 + $0x24] sm:$0x1] %vm228_vm2, %v2379_v2  ;;  %239 = vst.msk [vmem:[#allocation2 + $0x2c] sm:$0x1] %vm228_vm2, %v2379_v2  ;;  %v2478_v12 = vld [vmem:[%s3001_s2] ss:$0 sm:$0xff]  ;;  %v2195_v15 = vunpack.c.l.bf16 %v2202_v8  ;;  %v2196_v22 = vunpack.c.h.bf16 %v2202_v8  ;;  %v2199_v28 = vunpack.c.l.bf16 %v2482_v16 }
  0x14   : > { %241 = vst.msk [vmem:[#allocation2 + $0x34] sm:$0x1] %vm228_vm2, %v2379_v2  ;;  %243 = vst.msk [vmem:[#allocation2 + $0x3c] sm:$0x1] %vm228_vm2, %v2379_v2  ;;  %v2480_v13 = vld [vmem:[#allocation2] sm:$0xf]  ;;  %v271_v17 = vmul.f32 %v2187_v9, %v2471_v5  ;;  %v274_v20 = vmul.f32 %v2192_v11, %v2471_v5  ;;  %v272_v24 = vmul.f32 %v2188_v10, %v2471_v5 }
  0x15   : > { %245 = vst.msk [vmem:[#allocation2 + $0x44] sm:$0x1] %vm228_vm2, %v2379_v2  ;;  %247 = vst.msk [vmem:[#allocation2 + $0x4c] sm:$0x1] %vm228_vm2, %v2379_v2  ;;  %vm432_vm3 = vsmask.f32 7938  ;;  %v275_v23 = vmul.f32 %v2195_v15, %v2471_v5  ;;  %v273_v31 = vmul.f32 %v2191_v14, %v2471_v5  ;;  %v276_v51 = vmul.f32 %v2196_v22, %v2471_v5 }
  0x16   : > { %v506_v18 = vshrl.u32 %v2480_v13, 16  ;;  %v509_v19 = vshll.u32 %v2480_v13, 16  ;;  %vm438_vm4 = vsmask.f32 256  ;;  %v286_v25 = vadd.f32 %v2478_v12, %v271_v17  ;;  %v434_v52 = vld [vmem:[#allocation2 + $0x8] sm:$0xf]  ;;  %vm2510_vm12 = vmand %vm226_vm1, %vm432_vm3 }
  0x17   : > { %v289_v27 = vadd.f32 %v2478_v12, %v274_v20  ;;  %v290_v30 = vadd.f32 %v2478_v12, %v275_v23  ;;  %v287_v32 = vadd.f32 %v2478_v12, %v272_v24  ;;  %v288_v37 = vadd.f32 %v2478_v12, %v273_v31  ;;  %v455_v60 = vld [vmem:[#allocation2 + $0x20] sm:$0xf]  ;;  %vm2518_vm15 = vmand %vm228_vm2, %vm438_vm4  ;;  %v461_v7 = vld [vmem:[#allocation2 + $0x28] sm:$0xf]  ;;  %s2176_s24 = sshll.u32 %s3015_s19, 6 }
  0x18   : > { %v2488_v21 = vld [vmem:[#allocation2 + $0x4] sm:$0x1]  ;;  %v2493_v26 = vrot.slane %v506_v18, 4  ;;  %v2497_v29 = vrot.slane %v509_v19, 5  ;;  %vm294_vm5 = vcmp.ge.f32.partialorder %v286_v25, 0.0  ;;  %v277_v0 = vmul.f32 %v2199_v28, %v2471_v5  ;;  %s2977_s29 = scalar_lea.vmem %s3004_s5, %s2176_s24 }
  0x19   : > { %v302_v33 = vmul.f32 0.01, %v286_v25  ;;  %v515_v34 = vshll.u32 %v2488_v21, 16  ;;  %vm297_vm6 = vcmp.ge.f32.partialorder %v289_v27, 0.0  ;;  %vm298_vm7 = vcmp.ge.f32.partialorder %v290_v30, 0.0 }
  0x1a   : > { %v305_v35 = vmul.f32 0.01, %v289_v27  ;;  %v306_v36 = vmul.f32 0.01, %v290_v30  ;;  %v841_v39 = vrot.slane %v2488_v21, 5  ;;  %vm295_vm8 = vcmp.ge.f32.partialorder %v287_v32, 0.0 }
  0x1b   : > { %v310_v38 = vsel %vm294_vm5, %v286_v25, %v302_v33  ;;  %v303_v40 = vmul.f32 0.01, %v287_v32  ;;  %v512_v42 = vor.u32 %v2497_v29, %v2493_v26  ;;  %vm296_vm9 = vcmp.ge.f32.partialorder %v288_v37, 0.0  ;;  %v440_v59 = vld [vmem:[#allocation2 + $0xc] sm:$0x1] }
  0x1c   : > { %v2177_v41 = vpack.c.bf16 %v310_v38, %v310_v38  ;;  %v313_v43 = vsel %vm297_vm6, %v289_v27, %v305_v35  ;;  %v314_v44 = vsel %vm298_vm7, %v290_v30, %v306_v36  ;;  %v304_v47 = vmul.f32 0.01, %v288_v37  ;;  %v458_v61 = vld [vmem:[#allocation2 + $0x24] sm:$0x1]  ;;  %v464_v14 = vld [vmem:[#allocation2 + $0x2c] sm:$0x1] }
  0x1d   : > { %v2180_v45 = vpack.c.bf16 %v313_v43, %v313_v43  ;;  %v2181_v46 = vpack.c.bf16 %v314_v44, %v314_v44  ;;  %v311_v50 = vsel %vm295_vm8, %v287_v32, %v303_v40  ;;  %vm502_vm10 = vsmask.f32 3328  ;;  %v443_v33 = vld [vmem:[#allocation2 + $0x10] sm:$0xf]  ;;  %v446_v35 = vld [vmem:[#allocation2 + $0x14] sm:$0x1] }
  0x1e   : > { %v351_v48 = vshrl.u32 %v2177_v41, 16  ;;  %v354_v49 = vshll.u32 %v2177_v41, 16  ;;  %vm503_vm11 = vsmask.f32 7440  ;;  %v312_v62 = vsel %vm296_vm9, %v288_v37, %v304_v47  ;;  %v449_v36 = vld [vmem:[#allocation2 + $0x18] sm:$0xf] }
  0x1f   : > { %v375_v53 = vshrl.u32 %v2180_v45, 16  ;;  %v378_v54 = vshll.u32 %v2180_v45, 16  ;;  %v383_v55 = vshrl.u32 %v2181_v46, 16  ;;  %v386_v56 = vshll.u32 %v2181_v46, 16  ;;  %v452_v43 = vld [vmem:[#allocation2 + $0x1c] sm:$0x1]  ;;  %vm2556_vm3 = vmor %vm502_vm10, %vm503_vm11 }
  0x20   : > { %v353_v57 = vrot.slane %v351_v48, 7  ;;  %v2178_v63 = vpack.c.bf16 %v311_v50, %v311_v50  ;;  %vm837_vm14 = vcmask 1046532   ;;  %v2179_v8 = vpack.c.bf16 %v312_v62, %v312_v62  ;;  %v812_v47 = vld [vmem:[#allocation2] sm:$0xe] }
  0x21   : > { %v377_v2 = vrot.slane %v375_v53, 7  ;;  %v385_v6 = vrot.slane %v383_v55, 7  ;;  %v291_v9 = vadd.f32 %v2478_v12, %v276_v51  ;;  %v2537_v44 = vrot.slane %v515_v34, 5  ;;  %vm2572_vm4 = vmor %vm836_vm13, %vm837_vm14 }
  0x22   : > { %v356_v10 = vor.u32 %v354_v49, %v353_v57  ;;  %v357_v11 = vrot.slane %v353_v57, 4  ;;  %v359_v15 = vshrl.u32 %v2178_v63, 16  ;;  %v362_v17 = vshll.u32 %v2178_v63, 16 }
  0x23   : > { %v380_v18 = vor.u32 %v378_v54, %v377_v2  ;;  %v381_v19 = vrot.slane %v377_v2, 4  ;;  %v388_v20 = vor.u32 %v386_v56, %v385_v6  ;;  %v389_v22 = vrot.slane %v385_v6, 4  ;;  %v2552_v54 = vld [vmem:[%s3002_s3 + $0x10] sm:$0xf] }
  0x24   : > { %v435_v23 = vsel %vm2510_vm12, %v356_v10, %v434_v52  ;;  %v441_v24 = vsel %vm2518_vm15, %v357_v11, %v440_v59  ;;  %v361_v25 = vrot.slane %v359_v15, 7  ;;  %v367_v27 = vshrl.u32 %v2179_v8, 16 }
  0x25   : > { %436 = vst [vmem:[#allocation2 + $0x8] sm:$0xf] %v435_v23  ;;  %442 = vst [vmem:[#allocation2 + $0xc] sm:$0x1] %v441_v24  ;;  %v456_v28 = vsel %vm2510_vm12, %v380_v18, %v455_v60  ;;  %v459_v30 = vsel %vm2518_vm15, %v381_v19, %v458_v61  ;;  %v462_v31 = vsel %vm2510_vm12, %v388_v20, %v461_v7  ;;  %v370_v41 = vshll.u32 %v2179_v8, 16 }
  0x26   : > { %v465_v32 = vsel %vm2518_vm15, %v389_v22, %v464_v14  ;;  %457 = vst [vmem:[#allocation2 + $0x20] sm:$0xf] %v456_v28  ;;  %460 = vst [vmem:[#allocation2 + $0x24] sm:$0x1] %v459_v30  ;;  %v364_v37 = vor.u32 %v362_v17, %v361_v25  ;;  %v365_v38 = vrot.slane %v361_v25, 4  ;;  %v369_v40 = vrot.slane %v367_v27, 7 }
  0x27   : > { %463 = vst [vmem:[#allocation2 + $0x28] sm:$0xf] %v462_v31  ;;  %466 = vst [vmem:[#allocation2 + $0x2c] sm:$0x1] %v465_v32  ;;  %v292_v45 = vadd.f32 %v2478_v12, %v277_v0  ;;  %vm299_vm1 = vcmp.ge.f32.partialorder %v291_v9, 0.0  ;;  %v2547_v52 = vrot.slane %v512_v42, 4  ;;  %v2200_v17 = vunpack.c.h.bf16 %v2482_v16 }
  0x28   : > { %v307_v46 = vmul.f32 0.01, %v291_v9  ;;  %v372_v48 = vor.u32 %v370_v41, %v369_v40  ;;  %v373_v49 = vrot.slane %v369_v40, 4  ;;  %v444_v50 = vsel %vm2510_vm12, %v364_v37, %v443_v33 }
  0x29   : > { %v447_v51 = vsel %vm2518_vm15, %v365_v38, %v446_v35  ;;  %445 = vst [vmem:[#allocation2 + $0x10] sm:$0xf] %v444_v50  ;;  %vm300_vm2 = vcmp.ge.f32.partialorder %v292_v45, 0.0  ;;  %v308_v34 = vmul.f32 0.01, %v292_v45  ;;  %v2092_v56 = vrot.slane %v812_v47, 9 }
  0x2a   : > { %448 = vst [vmem:[#allocation2 + $0x14] sm:$0x1] %v447_v51  ;;  %v315_v53 = vsel %vm299_vm1, %v291_v9, %v307_v46  ;;  %v450_v26 = vsel %vm2510_vm12, %v372_v48, %v449_v36  ;;  %v453_v29 = vsel %vm2518_vm15, %v373_v49, %v452_v43  ;;  %v2568_v59 = vsel %vm643_vm0, %v2455_v3, 0 }
  0x2b   : > { %v2564_v42 = vpack.c.bf16 %v315_v53, %v315_v53  ;;  %451 = vst [vmem:[#allocation2 + $0x18] sm:$0xf] %v450_v26  ;;  %454 = vst [vmem:[#allocation2 + $0x1c] sm:$0x1] %v453_v29  ;;  %v316_v57 = vsel %vm300_vm2, %v292_v45, %v308_v34  ;;  %v2582_v63 = vsel %vm643_vm0, %v2463_v4, 0  ;;  %v2586_v0 = vsel %vm643_vm0, %v2552_v54, 0 }
  0x2c   : > { %v2576_v61 = vld [vmem:[#allocation2 + $0x8] sm:$0xf]  ;;  %v2578_v62 = vld [vmem:[#allocation2 + $0xc] sm:$0x1]  ;;  %vm630_vm5 = vcmask 64512   ;;  %v518_v4 = vsel %vm2556_vm3, %v2547_v52, %v2537_v44  ;;  %v2604_v14 = vpack.c.bf16 %v316_v57, %v316_v57  ;;  %v2610_v15 = vsel %vm2572_vm4, %v2092_v56, %v841_v39 }
  0x2d   : > { %v520_v3 = vshrl.u32 %v2576_v61, 16  ;;  %v523_v2 = vshll.u32 %v2576_v61, 16  ;;  %v529_v6 = vshll.u32 %v2578_v62, 16  ;;  %v2591_v7 = vld [vmem:[#allocation2 + $0x20] sm:$0xf]  ;;  %v391_v8 = vshrl.u32 %v2564_v42, 16 }
  0x2e   : > { %v2598_v9 = vld [vmem:[#allocation2 + $0x28] sm:$0xf]  ;;  %v2600_v10 = vld [vmem:[#allocation2 + $0x24] sm:$0x1]  ;;  %v2602_v11 = vld [vmem:[#allocation2 + $0x2c] sm:$0x1] }
  0x2f   : > { %v522_v18 = vrot.slane %v520_v3, 4  ;;  %v525_v19 = vrot.slane %v523_v2, 5  ;;  %v562_v20 = vshrl.u32 %v2591_v7, 16  ;;  %v394_v22 = vshll.u32 %v2564_v42, 16  ;;  %v813_v57 = vld [vmem:[#allocation2 + $0x8] sm:$0xe] }
  0x30   : > { %v565_v23 = vshll.u32 %v2591_v7, 16  ;;  %v571_v24 = vshll.u32 %v2600_v10, 16  ;;  %v576_v25 = vshrl.u32 %v2598_v9, 16  ;;  %v579_v21 = vshll.u32 %v2598_v9, 16  ;;  %v2619_v27 = vld [vmem:[#allocation2 + $0x10] sm:$0xf] }
  0x31   : > { %v526_v39 = vor.u32 %v525_v19, %v522_v18  ;;  %v531_v28 = vrot.slane %v529_v6, 5  ;;  %v564_v30 = vrot.slane %v562_v20, 4  ;;  %v585_v31 = vshll.u32 %v2602_v11, 16  ;;  %v2622_v32 = vld [vmem:[#allocation2 + $0x14] sm:$0x1] }
  0x32   : > { %v845_v33 = vrot.slane %v2578_v62, 5  ;;  %v567_v35 = vrot.slane %v565_v23, 5  ;;  %v578_v36 = vrot.slane %v576_v25, 4  ;;  %v581_v37 = vrot.slane %v579_v21, 5  ;;  %v2625_v38 = vld [vmem:[#allocation2 + $0x18] sm:$0xf] }
  0x33   : > { %v527_v40 = vrot.slane %v526_v39, 4  ;;  %v573_v41 = vrot.slane %v571_v24, 5  ;;  %v587_v43 = vrot.slane %v585_v31, 5  ;;  %v534_v44 = vshrl.u32 %v2619_v27, 16  ;;  %v2628_v47 = vld [vmem:[#allocation2 + $0x1c] sm:$0x1] }
  0x34   : > { %v568_v45 = vor.u32 %v567_v35, %v564_v30  ;;  %v582_v46 = vor.u32 %v581_v37, %v578_v36  ;;  %v537_v48 = vshll.u32 %v2619_v27, 16  ;;  %v543_v49 = vshll.u32 %v2622_v32, 16  ;;  %v814_v23 = vld [vmem:[#allocation2 + $0x10] sm:$0xe]  ;;  %v470_v37 = vld [vmem:[#allocation2 + $0x34] sm:$0x1] }
  0x35   : > { %v532_v50 = vsel %vm2556_vm3, %v527_v40, %v531_v28  ;;  %v536_v51 = vrot.slane %v534_v44, 4  ;;  %v548_v52 = vshrl.u32 %v2625_v38, 16  ;;  %v551_v34 = vshll.u32 %v2625_v38, 16  ;;  %v467_v28 = vld [vmem:[#allocation2 + $0x30] sm:$0xf] }
  0x36   : > { %v2076_v53 = vcombine.low %v518_v4, %v532_v50  ;;  %v569_v26 = vrot.slane %v568_v45, 4  ;;  %v583_v29 = vrot.slane %v582_v46, 4  ;;  %v539_v56 = vrot.slane %v537_v48, 5  ;;  %v815_v40 = vld [vmem:[#allocation2 + $0x18] sm:$0xe] }
  0x37   : > { %v857_v62 = vrot.slane %v2600_v10, 5  ;;  %v550_v3 = vrot.slane %v548_v52, 4  ;;  %v553_v2 = vrot.slane %v551_v34, 5  ;;  %v557_v6 = vshll.u32 %v2628_v47, 16  ;;  %v473_v44 = vld [vmem:[#allocation2 + $0x38] sm:$0xf] }
  0x38   : > { %2251 = vmatprep.mubr.msk.bf16.mxu0 %vm630_vm5, %v2076_v53  ;;  %v574_v18 = vsel %vm2556_vm3, %v569_v26, %v573_v41  ;;  %v588_v19 = vsel %vm2556_vm3, %v583_v29, %v587_v43  ;;  %v540_v20 = vor.u32 %v539_v56, %v536_v51  ;;  %v545_v4 = vrot.slane %v543_v49, 5  ;;  %v476_v45 = vld [vmem:[#allocation2 + $0x3c] sm:$0x1]  ;;  %v816_v34 = vld [vmem:[#allocation2 + $0x20] sm:$0xe] }
  0x39   : > { %v2078_v24 = vcombine.low %v574_v18, %v588_v19  ;;  %v554_v25 = vor.u32 %v553_v2, %v550_v3  ;;  %v559_v21 = vrot.slane %v557_v6, 5  ;;  %v849_v39 = vrot.slane %v2622_v32, 5  ;;  %v817_v53 = vld [vmem:[#allocation2 + $0x28] sm:$0xe]  ;;  %v1091_v2 = vld [vmem:[#allocation2 + $0x10] sm:$0xf] }
  0x3a   : > { %v541_v30 = vrot.slane %v540_v20, 4  ;;  %v393_v31 = vrot.slane %v391_v8, 7  ;;  %v399_v35 = vshrl.u32 %v2604_v14, 16  ;;  %v402_v36 = vshll.u32 %v2604_v14, 16  ;;  %v2666_v6 = vld [vmem:[#allocation2 + $0x14] sm:$0x1] }
  0x3b   : > { %2255 = vmatprep.mubr.msk.bf16.mxu1 %vm630_vm5, %v2078_v24  ;;  %v555_v41 = vrot.slane %v554_v25, 4  ;;  %v853_v43 = vrot.slane %v2628_v47, 5  ;;  %v2093_v46 = vrot.slane %v813_v57, 9  ;;  %v2094_v48 = vrot.slane %v814_v23, 9  ;;  %v2659_v57 = vld [vmem:[#allocation2 + $0xc] sm:$0x1] }
  0x3c   : > { %v546_v32 = vsel %vm2556_vm3, %v541_v30, %v545_v4  ;;  %v396_v8 = vor.u32 %v394_v22, %v393_v31  ;;  %v397_v49 = vrot.slane %v393_v31, 4  ;;  %v401_v50 = vrot.slane %v399_v35, 7  ;;  %v1089_v22 = vld [vmem:[#allocation2 + $0x8] sm:$0xf]  ;;  %v2678_v23 = vld [vmem:[#allocation2 + $0x18] sm:$0xf] }
  0x3d   : > { %v861_v14 = vrot.slane %v2602_v11, 5  ;;  %v560_v51 = vsel %vm2556_vm3, %v555_v41, %v559_v21  ;;  %v846_v47 = vsel %vm2572_vm4, %v2093_v46, %v845_v33  ;;  %v2095_v52 = vrot.slane %v815_v40, 9  ;;  %v2683_v25 = vld [vmem:[#allocation2 + $0x1c] sm:$0x1]  ;;  %v2701_v46 = vld [vmem:[%s3002_s3 + $0x18] sm:$0xf] }
  0x3e   : > { %v2077_v26 = vcombine.low %v546_v32, %v560_v51  ;;  %v404_v29 = vor.u32 %v402_v36, %v401_v50  ;;  %v405_v56 = vrot.slane %v401_v50, 4  ;;  %v468_v42 = vsel %vm2510_vm12, %v396_v8, %v467_v28 }
  0x3f   : > { %469 = vst [vmem:[#allocation2 + $0x30] sm:$0xf] %v468_v42  ;;  %v471_v11 = vsel %vm2518_vm15, %v397_v49, %v470_v37  ;;  %v2100_v3 = vcombine.low %v2610_v15, %v846_v47  ;;  %v850_v33 = vsel %vm2572_vm4, %v2094_v48, %v849_v39  ;;  %v278_v18 = vmul.f32 %v2200_v17, %v2471_v5  ;;  %v2694_v37 = vld [vmem:[#allocation2 + $0x20] sm:$0xf] }
  0x40   : > { %2252 = vmatmul.mubr.msk.bf16.vlgmr.msra.gmra.mxu0 %vm630_vm5, %v2077_v26  ;;  %472 = vst [vmem:[#allocation2 + $0x34] sm:$0x1] %v471_v11  ;;  %v474_v19 = vsel %vm2510_vm12, %v404_v29, %v473_v44  ;;  %v477_v20 = vsel %vm2518_vm15, %v405_v56, %v476_v45  ;;  %v854_v15 = vsel %vm2572_vm4, %v2095_v52, %v853_v43  ;;  %v2096_v4 = vrot.slane %v816_v34, 9 }
  0x41   : > { %475 = vst [vmem:[#allocation2 + $0x38] sm:$0xf] %v474_v19  ;;  %478 = vst [vmem:[#allocation2 + $0x3c] sm:$0x1] %v477_v20  ;;  %2270 = vmatpush3.bf16.msra.mxu0 %v2582_v63  ;;  %2271 = vmatprep.mubr.msk.bf16.mxu0 %vm630_vm5, %v2100_v3  ;;  %v2097_v5 = vrot.slane %v817_v53, 9  ;;  %v1106_v16 = vshrl.u32 %v1089_v22, 16  ;;  %v2101_v30 = vcombine.low %v850_v33, %v854_v15 }
  0x42   : > { %v1109_v17 = vshll.u32 %v1089_v22, 16  ;;  %v1115_v24 = vshll.u32 %v2659_v57, 16  ;;  %2346 = vmatprep.subr.msk.bf16.mxu0 %vm643_vm0, %v2552_v54  ;;  %v858_v21 = vsel %vm2572_vm4, %v2096_v4, %v857_v62  ;;  %v1120_v39 = vshrl.u32 %v1091_v2, 16 }
  0x43   : > { %v1123_v28 = vshll.u32 %v1091_v2, 16  ;;  %v1129_v63 = vshll.u32 %v2666_v6, 16  ;;  %v862_v31 = vsel %vm2572_vm4, %v2097_v5, %v861_v14  ;;  %v1108_v35 = vrot.slane %v1106_v16, 4 }
  0x44   : > { %v1111_v36 = vrot.slane %v1109_v17, 5  ;;  %v2102_v40 = vcombine.low %v858_v21, %v862_v31  ;;  %v1117_v41 = vrot.slane %v1115_v24, 5  ;;  %v1122_v54 = vrot.slane %v1120_v39, 4  ;;  %v2726_v17 = vld [vmem:[#allocation2 + $0x24] sm:$0x1] }
  0x45   : > { %v1125_v43 = vrot.slane %v1123_v28, 5  ;;  %v1131_v44 = vrot.slane %v1129_v63, 5  ;;  %v1134_v62 = vshrl.u32 %v2678_v23, 16  ;;  %v1137_v45 = vshll.u32 %v2678_v23, 16  ;;  %v1097_v28 = vld [vmem:[#allocation2 + $0x28] sm:$0xf] }
  0x46   : > { %v1112_v10 = vor.u32 %v1111_v36, %v1108_v35  ;;  %v2703_v48 = vld [vmem:[#allocation2 + $0x30] sm:$0xf]  ;;  %v2084_v32 = vcombine.low %v2480_v13, %v2576_v61  ;;  %v1143_v49 = vshll.u32 %v2683_v25, 16  ;;  %v1148_v50 = vshrl.u32 %v2694_v37, 16 }
  0x47   : > { %v818_v8 = vld [vmem:[#allocation2 + $0x30] sm:$0xe]  ;;  %v500_v14 = vld [vmem:[#allocation2 + $0x34] sm:$0x1]  ;;  %v590_v51 = vshrl.u32 %v2703_v48, 16  ;;  %v593_v47 = vshll.u32 %v2703_v48, 16  ;;  %v1126_v42 = vor.u32 %v1125_v43, %v1122_v54  ;;  %v2715_v22 = vadd.f32 %v2478_v12, %v278_v18 }
  0x48   : > { %v2098_v52 = vrot.slane %v818_v8, 9  ;;  %v1113_v34 = vrot.slane %v1112_v10, 4  ;;  %v2711_v53 = vld [vmem:[#allocation2 + $0x38] sm:$0xf]  ;;  %v501_v26 = vld [vmem:[#allocation2 + $0x3c] sm:$0x1]  ;;  %2272 = vmatmul.mubr.msk.bf16.vlgmr.msra.gmra.mxu0 %vm630_vm5, %v2101_v30 }
  0x49   : > { %v599_v29 = vshll.u32 %v500_v14, 16  ;;  %v865_v56 = vrot.slane %v500_v14, 5  ;;  %v592_v11 = vrot.slane %v590_v51, 4  ;;  %v595_v3 = vrot.slane %v593_v47, 5  ;;  %2290 = vmatpush3.bf16.msra.mxu0 %v2586_v0  ;;  %2275 = vmatprep.mubr.msk.bf16.mxu0 %vm630_vm5, %v2102_v40  ;;  %v819_v19 = vld [vmem:[#allocation2 + $0x38] sm:$0xe] }
  0x4a   : > { %v604_v33 = vshrl.u32 %v2711_v53, 16  ;;  %v607_v2 = vshll.u32 %v2711_v53, 16  ;;  %v613_v15 = vshll.u32 %v501_v26, 16  ;;  %v1151_v23 = vshll.u32 %v2694_v37, 16  ;;  %2348 = vmatprep.subr.msk.bf16.mxu0 %vm643_vm0, %v2701_v46  ;;  %v2734_v43 = vld [vmem:[#allocation2 + $0x2c] sm:$0x1] }
  0x4b   : > { %v601_v20 = vrot.slane %v599_v29, 5  ;;  %v866_v4 = vsel %vm2572_vm4, %v2098_v52, %v865_v56  ;;  %v596_v12 = vor.u32 %v595_v3, %v592_v11  ;;  %v2099_v16 = vrot.slane %v819_v19, 9  ;;  %v1099_v10 = vld [vmem:[#allocation2 + $0x30] sm:$0xf]  ;;  %v980_v56 = vld [vmem:[%s3002_s3 + $0xc] sm:$0xf] }
  0x4c   : > { %v606_v18 = vrot.slane %v604_v33, 4  ;;  %v609_v5 = vrot.slane %v607_v2, 5  ;;  %v615_v0 = vrot.slane %v613_v15, 5  ;;  %v869_v24 = vrot.slane %v501_v26, 5  ;;  %v1101_v33 = vld [vmem:[#allocation2 + $0x38] sm:$0xf] }
  0x4d   : > { %v1118_v21 = vsel %vm2556_vm3, %v1113_v34, %v1117_v41  ;;  %v1127_v39 = vrot.slane %v1126_v42, 4  ;;  %v597_v63 = vrot.slane %v596_v12, 4  ;;  %v1136_v31 = vrot.slane %v1134_v62, 4 }
  0x4e   : > { %v610_v30 = vor.u32 %v609_v5, %v606_v18  ;;  %v1139_v35 = vrot.slane %v1137_v45, 5  ;;  %v870_v36 = vsel %vm2572_vm4, %v2099_v16, %v869_v24  ;;  %v1145_v40 = vrot.slane %v1143_v49, 5 }
  0x4f   : > { %v1132_v37 = vsel %vm2556_vm3, %v1127_v39, %v1131_v44  ;;  %v1150_v54 = vrot.slane %v1148_v50, 4  ;;  %v602_v41 = vsel %vm2556_vm3, %v597_v63, %v601_v20  ;;  %v2103_v14 = vcombine.low %v866_v4, %v870_v36  ;;  %v2742_v44 = vld [vmem:[#allocation2 + $0x34] sm:$0x1] }
  0x50   : > { %v611_v8 = vrot.slane %v610_v30, 4  ;;  %v2116_v51 = vcombine.low %v1118_v21, %v1132_v37  ;;  %v1140_v47 = vor.u32 %v1139_v35, %v1136_v31  ;;  %v1153_v62 = vrot.slane %v1151_v23, 5  ;;  %v2771_v31 = vld [vmem:[%s3002_s3 + $0x20] sm:$0xf] }
  0x51   : > { %v1157_v45 = vshll.u32 %v2726_v17, 16  ;;  %v1162_v52 = vshrl.u32 %v1097_v28, 16  ;;  %2276 = vmatmul.mubr.msk.bf16.gmra.mxu0 %vm630_vm5, %v2103_v14  ;;  %v1165_v49 = vshll.u32 %v1097_v28, 16  ;;  %v1171_v50 = vshll.u32 %v2734_v43, 16  ;;  %v479_v14 = vld [vmem:[#allocation2 + $0x40] sm:$0xf] }
  0x52   : > { %v616_v34 = vsel %vm2556_vm3, %v611_v8, %v615_v0  ;;  %v1176_v26 = vshrl.u32 %v1099_v10, 16  ;;  %2291 = vmatprep.mubr.msk.bf16.mxu0 %vm630_vm5, %v2116_v51  ;;  %v1141_v42 = vrot.slane %v1140_v47, 4  ;;  %v1154_v11 = vor.u32 %v1153_v62, %v1150_v54  ;;  %v2787_v54 = vld [vmem:[#allocation2 + $0x3c] sm:$0x1]  ;;  %v482_v51 = vld [vmem:[#allocation2 + $0x44] sm:$0x1] }
  0x53   : > { %v2079_v29 = vcombine.low %v602_v41, %v616_v34  ;;  %v1159_v3 = vrot.slane %v1157_v45, 5  ;;  %v1164_v2 = vrot.slane %v1162_v52, 4  ;;  %v1167_v19 = vrot.slane %v1165_v49, 5 }
  0x54   : > { %v1178_v20 = vrot.slane %v1176_v26, 4  ;;  %v1146_v15 = vsel %vm2556_vm3, %v1141_v42, %v1145_v40  ;;  %v1155_v4 = vrot.slane %v1154_v11, 4  ;;  %v1179_v23 = vshll.u32 %v1099_v10, 16  ;;  %v1374_v40 = vld [vmem:[%s3002_s3 + $0x14] sm:$0xf] }
  0x55   : > { %2256 = vmatmul.mubr.msk.bf16.vlgmr.msra.gmra.mxu1 %vm630_vm5, %v2079_v29  ;;  %v1185_v12 = vshll.u32 %v2742_v44, 16  ;;  %v1518_v18 = vsel %vm643_vm0, %v2701_v46, 0  ;;  %v1168_v5 = vor.u32 %v1167_v19, %v1164_v2  ;;  %vm301_vm6 = vcmp.ge.f32.partialorder %v2715_v22, 0.0  ;;  %v1318_v26 = vld [vmem:[#allocation2 + $0x8] sm:$0xe] }
  0x56   : > { %2260 = vmatpush3.bf16.msra.mxu1 %v2568_v59  ;;  %2261 = vmatprep.mubr.msk.bf16.mxu1 %vm630_vm5, %v2084_v32  ;;  %v309_v16 = vmul.f32 0.01, %v2715_v22  ;;  %v2085_v0 = vcombine.low %v2619_v27, %v2625_v38  ;;  %v1160_v59 = vsel %vm2556_vm3, %v1155_v4, %v1159_v3  ;;  %v1173_v24 = vrot.slane %v1171_v50, 5  ;;  %v1319_v29 = vld [vmem:[#allocation2 + $0x10] sm:$0xe] }
  0x57   : > { %2345 = vmatprep.subr.msk.bf16.mxu1 %vm643_vm0, %v980_v56  ;;  %v1181_v13 = vrot.slane %v1179_v23, 5  ;;  %v2117_v61 = vcombine.low %v1146_v15, %v1160_v59  ;;  %v1169_v32 = vrot.slane %v1168_v5, 4  ;;  %v1190_v46 = vshrl.u32 %v1101_v33, 16  ;;  %v1320_v42 = vld [vmem:[#allocation2 + $0x18] sm:$0xe] }
  0x58   : > { %v317_v21 = vsel %vm301_vm6, %v2715_v22, %v309_v16  ;;  %v1187_v28 = vrot.slane %v1185_v12, 5  ;;  %v1193_v30 = vshll.u32 %v1101_v33, 16  ;;  %v1014_v27 = vsel %vm643_vm0, %v980_v56, 0  ;;  %v2363_v56 = vld [vmem:[#allocation2 + $0x8] ss:$8 sps:$4 sm:$0xff]  }
  0x59   : > { %v1182_v39 = vor.u32 %v1181_v13, %v1178_v20  ;;  %v2184_v63 = vpack.c.bf16 %v317_v21, %v317_v21  ;;  %v2086_v38 = vcombine.low %v2591_v7, %v2598_v9  ;;  %2292 = vmatmul.mubr.msk.bf16.vlgmr.msra.gmra.mxu0 %vm630_vm5, %v2117_v61  ;;  %v1174_v22 = vsel %vm2556_vm3, %v1169_v32, %v1173_v24  ;;  %v1321_v11 = vld [vmem:[#allocation2 + $0x20] sm:$0xe]  ;;  %v1595_v15 = vld [vmem:[#allocation2 + $0x18] sm:$0xf]  ;;  %v2810_v59 = vld [vmem:[#allocation2 + $0x30] sm:$0xe] }
  0x5a   : > { %2310 = vmatpush3.bf16.msra.mxu0 %v1518_v18  ;;  %v1192_v10 = vrot.slane %v1190_v46, 4  ;;  %v1195_v41 = vrot.slane %v1193_v30, 5  ;;  %v1199_v45 = vshll.u32 %v2787_v54, 16  ;;  %v2087_v52 = vcombine.low %v2703_v48, %v2711_v53  ;;  %v1593_v53 = vld [vmem:[#allocation2 + $0x10] sm:$0xf] }
  0x5b   : > { %v1183_v35 = vrot.slane %v1182_v39, 4  ;;  %v407_v36 = vshrl.u32 %v2184_v63, 16  ;;  %v410_v37 = vshll.u32 %v2184_v63, 16  ;;  %2350 = vmatprep.subr.msk.bf16.mxu0 %vm643_vm0, %v2771_v31  ;;  %v2124_v33 = vrot.slane %v1318_v26, 9  ;;  %v1322_v18 = vld [vmem:[#allocation2 + $0x28] sm:$0xe] }
  0x5c   : > { %v1196_v50 = vor.u32 %v1195_v41, %v1192_v10  ;;  %v2799_v3 = vrot.slane %v1199_v45, 5  ;;  %v1344_v2 = vrot.slane %v2659_v57, 5  ;;  %v2125_v48 = vrot.slane %v1319_v29, 9  ;;  %v2364_v57 = vld [vmem:[#allocation2 + $0x18] ss:$8 sps:$4 sm:$0xff]  }
  0x5d   : > { %2262 = vmatmul.mubr.msk.bf16.vlgmr.msra.gmra.mxu1 %vm630_vm5, %v2085_v0  ;;  %v1188_v7 = vsel %vm2556_vm3, %v1183_v35, %v1187_v28  ;;  %v409_v9 = vrot.slane %v407_v36, 7  ;;  %v1348_v1 = vrot.slane %v2666_v6, 5  ;;  %v2126_v19 = vrot.slane %v1320_v42, 9  ;;  %v2365_v0 = vld [vmem:[#allocation2 + $0x28] ss:$8 sps:$4 sm:$0xff]  }
  0x5e   : > { %2280 = vmatpush3.bf16.msra.mxu1 %v1014_v27  ;;  %2265 = vmatprep.mubr.msk.bf16.mxu1 %vm630_vm5, %v2086_v38  ;;  %v2118_v8 = vcombine.low %v1174_v22, %v1188_v7  ;;  %v2803_v58 = vrot.slane %v1196_v50, 4  ;;  %v1352_v20 = vrot.slane %v2683_v25, 5  ;;  %v1400_v4 = vsel %vm643_vm0, %v1374_v40, 0  ;;  %v2812_v24 = vld [vmem:[#allocation2 + $0x14] sm:$0x1] }
  0x5f   : > { %2347 = vmatprep.subr.msk.bf16.mxu1 %vm643_vm0, %v1374_v40  ;;  %v412_v47 = vor.u32 %v410_v37, %v409_v9  ;;  %v413_v62 = vrot.slane %v409_v9, 4  ;;  %v2127_v23 = vrot.slane %v1321_v11, 9  ;;  %v1356_v12 = vrot.slane %v2726_v17, 5  ;;  %v2830_v46 = vld [vmem:[#allocation2 + $0x1c] sm:$0x1] }
  0x60   : > { %2295 = vmatprep.mubr.msk.bf16.mxu0 %vm630_vm5, %v2118_v8  ;;  %v1610_v5 = vshrl.u32 %v1593_v53, 16  ;;  %v1613_v16 = vshll.u32 %v1593_v53, 16  ;;  %v1624_v6 = vshrl.u32 %v1595_v15, 16  ;;  %v1627_v13 = vshll.u32 %v1595_v15, 16  ;;  %v2837_v30 = vld [vmem:[%s3002_s3 + $0x1c] sm:$0xf] }
  0x61   : > { %v480_v34 = vsel %vm2510_vm12, %v412_v47, %v479_v14  ;;  %v483_v49 = vsel %vm2518_vm15, %v413_v62, %v482_v51  ;;  %v1202_v61 = vsel %vm2556_vm3, %v2803_v58, %v2799_v3  ;;  %v2820_v17 = vsel %vm2572_vm4, %v2124_v33, %v1344_v2  ;;  %v1324_v9 = vld [vmem:[#allocation2 + $0x38] sm:$0xe]  ;;  %v1597_v62 = vld [vmem:[#allocation2 + $0x20] sm:$0xf]  ;;  %v1599_v3 = vld [vmem:[#allocation2 + $0x28] sm:$0xf] }
  0x62   : > { %481 = vst [vmem:[#allocation2 + $0x40] sm:$0xf] %v480_v34  ;;  %484 = vst [vmem:[#allocation2 + $0x44] sm:$0x1] %v483_v49  ;;  %v2824_v32 = vsel %vm2572_vm4, %v2125_v48, %v1348_v1  ;;  %v2828_v21 = vsel %vm2572_vm4, %v2126_v19, %v1352_v20  ;;  %v2841_v27 = vsel %vm2572_vm4, %v2127_v23, %v1356_v12  ;;  %v2128_v38 = vrot.slane %v1322_v18, 9 }
  0x63   : > { %v1360_v35 = vrot.slane %v2734_v43, 5  ;;  %v1612_v36 = vrot.slane %v1610_v5, 4  ;;  %v1615_v37 = vrot.slane %v1613_v16, 5  ;;  %v1626_v10 = vrot.slane %v1624_v6, 4  ;;  %v1822_v43 = vld [vmem:[#allocation2 + $0x10] sm:$0xe] }
  0x64   : > { %v1629_v41 = vrot.slane %v1627_v13, 5  ;;  %v2132_v8 = vcombine.low %v2820_v17, %v2824_v32  ;;  %v2133_v14 = vcombine.low %v2828_v21, %v2841_v27  ;;  %v2129_v51 = vrot.slane %v2810_v59, 9  ;;  %v1823_v50 = vld [vmem:[#allocation2 + $0x18] sm:$0xe]  ;;  %v1601_v58 = vld [vmem:[#allocation2 + $0x30] sm:$0xf] }
  0x65   : > { %2266 = vmatmul.mubr.msk.bf16.gmra.mxu1 %vm630_vm5, %v2087_v52  ;;  %v1619_v47 = vshll.u32 %v2812_v24, 16  ;;  %v1364_v34 = vrot.slane %v2742_v44, 5  ;;  %v1633_v49 = vshll.u32 %v2830_v46, 16  ;;  %v2859_v26 = vsel %vm2572_vm4, %v2128_v38, %v1360_v35  ;;  %v2367_v2 = vld [vmem:[#allocation2 + $0x10] ss:$8 sps:$4 sm:$0xff]  }
  0x66   : > { %2281 = vmatprep.mubr.msk.bf16.mxu1 %vm630_vm5, %v2363_v56  ;;  %v2130_v56 = vrot.slane %v1324_v9, 9  ;;  %v1368_v42 = vrot.slane %v2787_v54, 5  ;;  %v1616_v11 = vor.u32 %v1615_v37, %v1612_v36  ;;  %v1630_v48 = vor.u32 %v1629_v41, %v1626_v10  ;;  %v1603_v18 = vld [vmem:[#allocation2 + $0x38] sm:$0xf]  ;;  %v2891_v37 = vld [vmem:[#allocation2 + $0x2c] sm:$0x1] }
  0x67   : > { %v1638_v44 = vshrl.u32 %v1597_v62, 16  ;;  %v1641_v53 = vshll.u32 %v1597_v62, 16  ;;  %v1621_v19 = vrot.slane %v1619_v47, 5  ;;  %v2156_v20 = vrot.slane %v1822_v43, 9  ;;  %v2898_v47 = vld [vmem:[#allocation2 + $0x34] sm:$0x1] }
  0x68   : > { %v1848_v15 = vrot.slane %v2812_v24, 5  ;;  %v1852_v54 = vrot.slane %v2830_v46, 5  ;;  %v1655_v59 = vshll.u32 %v1599_v3, 16  ;;  %v1617_v6 = vrot.slane %v1616_v11, 4  ;;  %v2869_v24 = vld [vmem:[#allocation2 + $0x24] sm:$0x1] }
  0x69   : > { %v1103_v25 = vld [vmem:[#allocation2 + $0x40] sm:$0xf]  ;;  %v2832_v39 = vld [vmem:[#allocation2 + $0x44] sm:$0x1]  ;;  %v1631_v13 = vrot.slane %v1630_v48, 4  ;;  %v1643_v17 = vrot.slane %v1641_v53, 5 }
  0x6a   : > { %v1204_v28 = vshrl.u32 %v1103_v25, 16  ;;  %v1207_v63 = vshll.u32 %v1103_v25, 16  ;;  %v1213_v22 = vshll.u32 %v2832_v39, 16  ;;  %v1325_v29 = vld [vmem:[#allocation2 + $0x40] sm:$0xe]  ;;  %v1372_v16 = vrot.slane %v2832_v39, 5 }
  0x6b   : > { %v2366_v1 = vld [vmem:[#allocation2 + $0x38] ss:$8 sps:$4 sm:$0xff]   ;;  %v2131_v12 = vrot.slane %v1325_v29, 9  ;;  %v1640_v25 = vrot.slane %v1638_v44, 4  ;;  %v1666_v32 = vshrl.u32 %v1601_v58, 16  ;;  %v1683_v46 = vshll.u32 %v1603_v18, 16 }
  0x6c   : > { %v1206_v40 = vrot.slane %v1204_v28, 4  ;;  %v1209_v7 = vrot.slane %v1207_v63, 5  ;;  %v1215_v52 = vrot.slane %v1213_v22, 5  ;;  %v1669_v28 = vshll.u32 %v1601_v58, 16  ;;  %v2368_v22 = vld [vmem:[#allocation2 + $0x20] ss:$8 sps:$4 sm:$0xff]  }
  0x6d   : > { %2282 = vmatmul.mubr.msk.bf16.vlgmr.msra.gmra.mxu1 %vm630_vm5, %v2364_v57  ;;  %v1635_v57 = vrot.slane %v1633_v49, 5  ;;  %v1680_v63 = vshrl.u32 %v1603_v18, 16  ;;  %v2877_v39 = vsel %vm2572_vm4, %v2130_v56, %v1368_v42  ;;  %v2881_v38 = vsel %vm2572_vm4, %v2156_v20, %v1848_v15  ;;  %v2900_v43 = vld [vmem:[#allocation2 + $0x3c] sm:$0x1]  ;;  %v1607_v42 = vld [vmem:[#allocation2 + $0x48] sm:$0xf] }
  0x6e   : > { %2300 = vmatpush3.bf16.msra.mxu1 %v1400_v4  ;;  %2285 = vmatprep.mubr.msk.bf16.mxu1 %vm630_vm5, %v2365_v0  ;;  %v1210_v45 = vor.u32 %v1209_v7, %v1206_v40  ;;  %v2157_v4 = vrot.slane %v1823_v50, 9  ;;  %v1652_v0 = vshrl.u32 %v1599_v3, 16  ;;  %v2885_v35 = vsel %vm2572_vm4, %v2131_v12, %v1372_v16  ;;  %v2369_v11 = vld [vmem:[#allocation2 + $0x30] ss:$8 sps:$4 sm:$0xff]   ;;  %v1605_v44 = vld [vmem:[#allocation2 + $0x40] sm:$0xf] }
  0x6f   : > { %2349 = vmatprep.subr.msk.bf16.mxu1 %vm643_vm0, %v2837_v30  ;;  %v1657_v7 = vrot.slane %v1655_v59, 5  ;;  %v1622_v9 = vsel %vm2556_vm3, %v1617_v6, %v1621_v19  ;;  %v1636_v10 = vsel %vm2556_vm3, %v1631_v13, %v1635_v57  ;;  %v1644_v41 = vor.u32 %v1643_v17, %v1640_v25  ;;  %v2370_v16 = vld [vmem:[#allocation2 + $0x40] ss:$8 sps:$4 sm:$0xff]  }
  0x70   : > { %v1211_v33 = vrot.slane %v1210_v45, 4  ;;  %v2889_v36 = vsel %vm2572_vm4, %v2157_v4, %v1852_v54  ;;  %v1654_v40 = vrot.slane %v1652_v0, 4  ;;  %v1668_v62 = vrot.slane %v1666_v32, 4  ;;  %v1826_v4 = vld [vmem:[#allocation2 + $0x30] sm:$0xe] }
  0x71   : > { %v1671_v45 = vrot.slane %v1669_v28, 5  ;;  %v1747_v49 = vsel %vm643_vm0, %v2837_v30, 0  ;;  %v1904_v50 = vsel %vm643_vm0, %v2771_v31, 0  ;;  %v2164_v56 = vcombine.low %v2881_v38, %v2889_v36  ;;  %v1825_v30 = vld [vmem:[#allocation2 + $0x28] sm:$0xe] }
  0x72   : > { %v1216_v23 = vsel %vm2556_vm3, %v1211_v33, %v1215_v52  ;;  %v1682_v52 = vrot.slane %v1680_v63, 4  ;;  %v2135_v3 = vcombine.low %v2877_v39, %v2885_v35  ;;  %v2148_v33 = vcombine.low %v1622_v9, %v1636_v10  ;;  %v1606_v28 = vld [vmem:[#allocation2 + $0x44] sm:$0x1]  ;;  %v1608_v63 = vld [vmem:[#allocation2 + $0x4c] sm:$0x1] }
  0x73   : > { %v2119_v5 = vcombine.low %v1202_v61, %v1216_v23  ;;  %v1365_v61 = vsel %vm2572_vm4, %v2129_v51, %v1364_v34  ;;  %v1824_v51 = vld [vmem:[#allocation2 + $0x20] sm:$0xe]  ;;  %v1685_v34 = vrot.slane %v1683_v46, 5  ;;  %v1661_v48 = vshll.u32 %v2891_v37, 16  ;;  %v1827_v23 = vld [vmem:[#allocation2 + $0x38] sm:$0xe] }
  0x74   : > { %v2134_v29 = vcombine.low %v2859_v26, %v1365_v61  ;;  %v2158_v58 = vrot.slane %v1824_v51, 9  ;;  %v1675_v31 = vshll.u32 %v2898_v47, 16  ;;  %v1689_v26 = vshll.u32 %v2900_v43, 16 }
  0x75   : > { %2286 = vmatmul.mubr.msk.bf16.gmra.mxu1 %vm630_vm5, %v2366_v1  ;;  %2296 = vmatmul.mubr.msk.bf16.gmra.mxu0 %vm630_vm5, %v2119_v5  ;;  %v1645_v1 = vrot.slane %v1644_v41, 4  ;;  %v1856_v19 = vrot.slane %v2869_v24, 5  ;;  %v1672_v20 = vor.u32 %v1671_v45, %v1668_v62  ;;  %v1686_v15 = vor.u32 %v1685_v34, %v1682_v52  ;;  %v1829_v62 = vld [vmem:[#allocation2 + $0x48] sm:$0xe] }
  0x76   : > { %2301 = vmatprep.mubr.msk.bf16.mxu1 %vm630_vm5, %v2132_v8  ;;  %2311 = vmatprep.mubr.msk.bf16.mxu0 %vm630_vm5, %v2367_v2  ;;  %v1647_v8 = vshll.u32 %v2869_v24, 16  ;;  %v1658_v2 = vor.u32 %v1657_v7, %v1654_v40  ;;  %v1694_v12 = vshrl.u32 %v1605_v44, 16  ;;  %v1697_v57 = vshll.u32 %v1605_v44, 16 }
  0x77   : > { %v1708_v54 = vshrl.u32 %v1607_v42, 16  ;;  %v1711_v18 = vshll.u32 %v1607_v42, 16  ;;  %v1663_v27 = vrot.slane %v1661_v48, 5  ;;  %v1860_v5 = vrot.slane %v2891_v37, 5 }
  0x78   : > { %v1649_v53 = vrot.slane %v1647_v8, 5  ;;  %v1659_v21 = vrot.slane %v1658_v2, 4  ;;  %v1677_v0 = vrot.slane %v1675_v31, 5  ;;  %v1691_v59 = vrot.slane %v1689_v26, 5 }
  0x79   : > { %v2160_v6 = vrot.slane %v1826_v4, 9  ;;  %v1864_v13 = vrot.slane %v2898_v47, 5  ;;  %v1673_v25 = vrot.slane %v1672_v20, 4  ;;  %v1687_v17 = vrot.slane %v1686_v15, 4 }
  0x7a   : > { %v2161_v24 = vrot.slane %v1827_v23, 9  ;;  %v1868_v32 = vrot.slane %v2900_v43, 5  ;;  %v1696_v46 = vrot.slane %v1694_v12, 4  ;;  %v1699_v61 = vrot.slane %v1697_v57, 5  ;;  %v1828_v43 = vld [vmem:[#allocation2 + $0x40] sm:$0xe] }
  0x7b   : > { %v1710_v39 = vrot.slane %v1708_v54, 4  ;;  %v1713_v38 = vrot.slane %v1711_v18, 5  ;;  %v1664_v35 = vsel %vm2556_vm3, %v1659_v21, %v1663_v27  ;;  %v1857_v36 = vsel %vm2572_vm4, %v2158_v58, %v1856_v19 }
  0x7c   : > { %v1703_v40 = vshll.u32 %v1606_v28, 16  ;;  %v1678_v7 = vsel %vm2556_vm3, %v1673_v25, %v1677_v0  ;;  %v1865_v9 = vsel %vm2572_vm4, %v2160_v6, %v1864_v13  ;;  %v1869_v10 = vsel %vm2572_vm4, %v2161_v24, %v1868_v32 }
  0x7d   : > { %2302 = vmatmul.mubr.msk.bf16.vlgmr.msra.gmra.mxu1 %vm630_vm5, %v2133_v14  ;;  %2312 = vmatmul.mubr.msk.bf16.vlgmr.msra.gmra.mxu0 %vm630_vm5, %v2368_v22  ;;  %v2159_v14 = vrot.slane %v1825_v30, 9  ;;  %v1650_v22 = vsel %vm2556_vm3, %v1645_v1, %v1649_v53  ;;  %v1717_v41 = vshll.u32 %v1608_v63, 16  ;;  %v1692_v8 = vsel %vm2556_vm3, %v1687_v17, %v1691_v59 }
  0x7e   : > { %2320 = vmatpush3.bf16.msra.mxu1 %v1747_v49  ;;  %2330 = vmatpush3.bf16.msra.mxu0 %v1904_v50  ;;  %v1700_v51 = vor.u32 %v1699_v61, %v1696_v46  ;;  %v1714_v47 = vor.u32 %v1713_v38, %v1710_v39  ;;  %v2149_v45 = vcombine.low %v1650_v22, %v1664_v35  ;;  %v1705_v49 = vrot.slane %v1703_v40, 5 }
  0x7f   : > { %2305 = vmatprep.mubr.msk.bf16.mxu1 %vm630_vm5, %v2134_v29  ;;  %2315 = vmatprep.mubr.msk.bf16.mxu0 %vm630_vm5, %v2369_v11  ;;  %v1861_v37 = vsel %vm2572_vm4, %v2159_v14, %v1860_v5  ;;  %v2166_v34 = vcombine.low %v1865_v9, %v1869_v10  ;;  %v2150_v50 = vcombine.low %v1678_v7, %v1692_v8  ;;  %v1719_v29 = vrot.slane %v1717_v41, 5 }
  0x80   : > { %v2165_v52 = vcombine.low %v1857_v36, %v1861_v37  ;;  %v2162_v42 = vrot.slane %v1828_v43, 9  ;;  %v1872_v11 = vrot.slane %v1606_v28, 5  ;;  %v1715_v2 = vrot.slane %v1714_v47, 4 }
  0x81   : > { %v1876_v48 = vrot.slane %v1608_v63, 5 }
  0x82   : > { %v1720_v53 = vsel %vm2556_vm3, %v1715_v2, %v1719_v29 }
  0x85   : > { %2306 = vmatmul.mubr.msk.bf16.gmra.mxu1 %vm630_vm5, %v2135_v3  ;;  %2316 = vmatmul.mubr.msk.bf16.gmra.mxu0 %vm630_vm5, %v2370_v16  ;;  %v1701_v3 = vrot.slane %v1700_v51, 4 }
  0x86   : > { %2321 = vmatprep.mubr.msk.bf16.mxu1 %vm630_vm5, %v2148_v33  ;;  %2331 = vmatprep.mubr.msk.bf16.mxu0 %vm630_vm5, %v2164_v56  ;;  %v2163_v33 = vrot.slane %v1829_v62, 9  ;;  %v1873_v56 = vsel %vm2572_vm4, %v2162_v42, %v1872_v11 }
  0x87   : > { %v1706_v44 = vsel %vm2556_vm3, %v1701_v3, %v1705_v49 }
  0x88   : > { %v1877_v30 = vsel %vm2572_vm4, %v2163_v33, %v1876_v48  ;;  %v2151_v58 = vcombine.low %v1706_v44, %v1720_v53 }
  0x89   : > { %v2167_v31 = vcombine.low %v1873_v56, %v1877_v30 }
  0x8d   : > { %2322 = vmatmul.mubr.msk.bf16.vlgmr.msra.gmra.mxu1 %vm630_vm5, %v2149_v45  ;;  %2332 = vmatmul.mubr.msk.bf16.vlgmr.msra.gmra.mxu0 %vm630_vm5, %v2165_v52 }
  0x8e   : > { %2325 = vmatprep.mubr.msk.bf16.mxu1 %vm630_vm5, %v2150_v50  ;;  %2335 = vmatprep.mubr.msk.bf16.mxu0 %vm630_vm5, %v2166_v34 }
  0x95   : > { %2326 = vmatmul.mubr.msk.bf16.gmra.mxu1 %vm630_vm5, %v2151_v58  ;;  %2336 = vmatmul.mubr.msk.bf16.gmra.mxu0 %vm630_vm5, %v2167_v31 }
 0x100   : > { %v2253_v26 = vpop.f32.mrf.mxu0 }
 0x102   : > { %v681_v1 = vpop.f32.mrf.mxu0 }
 0x104   : > { %v2254_v19 = vpop.f32.mrf.mxu0 }
 0x106   : > { %v684_v20 = vpop.f32.mrf.mxu0 }
 0x108   : > { %v2273_v15 = vpop.f32.mrf.mxu0 }
 0x10a   : > { %v933_v4 = vpop.f32.mrf.mxu0 }
 0x10c   : > { %v2274_v23 = vpop.f32.mrf.mxu0 }
 0x10e   : > { %v936_v12 = vpop.f32.mrf.mxu0 }
 0x111   : > { %v2277_v55 = vpop.f32.mrf.mxu0 }
 0x113   : > { %v949_v60 = vpop.f32.mrf.mxu0 }
 0x115   : > { %v2257_v57 = vpop.f32.mrf.mxu1  ;;  %v2959_v14 = vpop.f32.mrf.mxu0 }
 0x117   : > { %v697_v54 = vpop.f32.mrf.mxu1  ;;  %v2961_v0 = vpop.f32.mrf.mxu0 }
 0x119   : > { %v2258_v18 = vpop.f32.mrf.mxu1  ;;  %v2293_v13 = vpop.f32.mrf.mxu0 }
 0x11b   : > { %v700_v21 = vpop.f32.mrf.mxu1  ;;  %v1279_v24 = vpop.f32.mrf.mxu0 }
 0x11d   : > { %v2263_v27 = vpop.f32.mrf.mxu1  ;;  %v2294_v63 = vpop.f32.mrf.mxu0 }
 0x11e   : > { %v790_v41 = vadd.f32 %v2263_v27, %v2253_v26 }
 0x11f   : > { %v781_v5 = vpop.f32.mrf.mxu1  ;;  %v1282_v39 = vpop.f32.mrf.mxu0 }
 0x120   : > { %v782_v47 = vadd.f32 %v781_v5, %v681_v1  ;;  %v966_v45 = vadd.f32 %v2273_v15, %v790_v41 }
 0x121   : > { %v2264_v16 = vpop.f32.mrf.mxu1 }
 0x122   : > { %v793_v52 = vadd.f32 %v2264_v16, %v2254_v19  ;;  %v964_v50 = vadd.f32 %v933_v4, %v782_v47 }
 0x123   : > { %v784_v59 = vpop.f32.mrf.mxu1 }
 0x124   : > { %v785_v29 = vadd.f32 %v784_v59, %v684_v20  ;;  %v967_v33 = vadd.f32 %v2274_v23, %v793_v52 }
 0x125   : > { %v2267_v6 = vpop.f32.mrf.mxu1 }
 0x126   : > { %v806_v11 = vadd.f32 %v2267_v6, %v2257_v57  ;;  %v965_v30 = vadd.f32 %v936_v12, %v785_v29 }
 0x127   : > { %v797_v25 = vpop.f32.mrf.mxu1 }
 0x128   : > { %v798_v56 = vadd.f32 %v797_v25, %v697_v54  ;;  %v970_v26 = vadd.f32 %v2277_v55, %v806_v11 }
 0x129   : > { %v2268_v17 = vpop.f32.mrf.mxu1 }
 0x12a   : > { %v809_v1 = vadd.f32 %v2268_v17, %v2258_v18  ;;  %v968_v20 = vadd.f32 %v949_v60, %v798_v56 }
 0x12b   : > { %v800_v32 = vpop.f32.mrf.mxu1 }
 0x12c   : > { %v801_v16 = vadd.f32 %v800_v32, %v700_v21  ;;  %v971_v54 = vadd.f32 %v2959_v14, %v809_v1  ;;  %v2172_v14 = vld [vmem:[%s3003_s4] ss:$0 sm:$0xff] }
 0x12d   : > { %v2283_v28 = vpop.f32.mrf.mxu1 }
 0x12e   : > { %v1083_v42 = vadd.f32 %v2283_v28, %v966_v45 }
 0x12f   : > { %v1050_v46 = vpop.f32.mrf.mxu1 }
 0x130   : > { %v1081_v48 = vadd.f32 %v1050_v46, %v964_v50  ;;  %v1312_v58 = vadd.f32 %v2293_v13, %v1083_v42 }
 0x131   : > { %v2284_v61 = vpop.f32.mrf.mxu1 }
 0x132   : > { %v1084_v31 = vadd.f32 %v2284_v61, %v967_v33  ;;  %v1310_v27 = vadd.f32 %v1279_v24, %v1081_v48  ;;  %v969_v24 = vadd.f32 %v2961_v0, %v801_v16 }
 0x133   : > { %v1053_v38 = vpop.f32.mrf.mxu1 }
 0x134   : > { %v1082_v5 = vadd.f32 %v1053_v38, %v965_v30  ;;  %v1313_v23 = vadd.f32 %v2294_v63, %v1084_v31 }
 0x135   : > { %v2287_v22 = vpop.f32.mrf.mxu1  ;;  %v2297_v35 = vpop.f32.mrf.mxu0 }
 0x136   : > { %v1087_v57 = vadd.f32 %v2287_v22, %v970_v26  ;;  %v1311_v55 = vadd.f32 %v1282_v39, %v1082_v5 }
 0x137   : > { %v1066_v36 = vpop.f32.mrf.mxu1  ;;  %v1295_v37 = vpop.f32.mrf.mxu0 }
 0x138   : > { %v1085_v12 = vadd.f32 %v1066_v36, %v968_v20  ;;  %v1316_v46 = vadd.f32 %v2297_v35, %v1087_v57 }
 0x139   : > { %v2288_v40 = vpop.f32.mrf.mxu1  ;;  %v2963_v7 = vpop.f32.mrf.mxu0 }
 0x13a   : > { %v1088_v61 = vadd.f32 %v2288_v40, %v971_v54  ;;  %v1314_v63 = vadd.f32 %v1295_v37, %v1085_v12 }
 0x13b   : > { %v1069_v9 = vpop.f32.mrf.mxu1  ;;  %v2965_v10 = vpop.f32.mrf.mxu0 }
 0x13c   : > { %v1086_v41 = vadd.f32 %v1069_v9, %v969_v24  ;;  %v1317_v35 = vadd.f32 %v2963_v7, %v1088_v61 }
 0x13d   : > { %v2303_v8 = vpop.f32.mrf.mxu1  ;;  %v2313_v51 = vpop.f32.mrf.mxu0 }
 0x13e   : > { %v1469_v4 = vadd.f32 %v2303_v8, %v1312_v58 }
 0x13f   : > { %v1436_v43 = vpop.f32.mrf.mxu1  ;;  %v1554_v62 = vpop.f32.mrf.mxu0 }
 0x140   : > { %v1467_v28 = vadd.f32 %v1436_v43, %v1310_v27  ;;  %v1587_v18 = vadd.f32 %v2313_v51, %v1469_v4 }
 0x141   : > { %v2304_v34 = vpop.f32.mrf.mxu1  ;;  %v2314_v49 = vpop.f32.mrf.mxu0 }
 0x142   : > { %v1470_v17 = vadd.f32 %v2304_v34, %v1313_v23  ;;  %v1585_v32 = vadd.f32 %v1554_v62, %v1467_v28  ;;  %v1315_v34 = vadd.f32 %v2965_v10, %v1086_v41 }
 0x143   : > { %v1439_v3 = vpop.f32.mrf.mxu1  ;;  %v1557_v2 = vpop.f32.mrf.mxu0 }
 0x144   : > { %v1468_v38 = vadd.f32 %v1439_v3, %v1311_v55  ;;  %v1588_v51 = vadd.f32 %v2314_v49, %v1470_v17 }
 0x145   : > { %v2307_v44 = vpop.f32.mrf.mxu1  ;;  %v2317_v53 = vpop.f32.mrf.mxu0 }
 0x146   : > { %v1473_v8 = vadd.f32 %v2307_v44, %v1316_v46  ;;  %v1586_v43 = vadd.f32 %v1557_v2, %v1468_v38 }
 0x147   : > { %v1452_v15 = vpop.f32.mrf.mxu1  ;;  %v1570_v19 = vpop.f32.mrf.mxu0 }
 0x148   : > { %v1471_v40 = vadd.f32 %v1452_v15, %v1314_v63  ;;  %v1591_v49 = vadd.f32 %v2317_v53, %v1473_v8 }
 0x149   : > { %v2308_v59 = vpop.f32.mrf.mxu1  ;;  %v2318_v6 = vpop.f32.mrf.mxu0 }
 0x14a   : > { %v1474_v7 = vadd.f32 %v2308_v59, %v1317_v35  ;;  %v1589_v33 = vadd.f32 %v1570_v19, %v1471_v40 }
 0x14b   : > { %v1455_v13 = vpop.f32.mrf.mxu1  ;;  %v1573_v25 = vpop.f32.mrf.mxu0 }
 0x14c   : > { %v1472_v2 = vadd.f32 %v1455_v13, %v1315_v34  ;;  %v1592_v31 = vadd.f32 %v2318_v6, %v1474_v7 }
 0x14d   : > { %v2323_v60 = vpop.f32.mrf.mxu1  ;;  %v2333_v21 = vpop.f32.mrf.mxu0 }
 0x14e   : > { %v1816_v22 = vadd.f32 %v2323_v60, %v1587_v18  ;;  %v1590_v5 = vadd.f32 %v1573_v25, %v1472_v2 }
 0x14f   : > { %v1783_v39 = vpop.f32.mrf.mxu1  ;;  %v1940_v36 = vpop.f32.mrf.mxu0 }
 0x150   : > { %v1973_v47 = vadd.f32 %v2333_v21, %v1816_v22  ;;  %v1814_v0 = vadd.f32 %v1783_v39, %v1585_v32 }
 0x151   : > { %v2324_v37 = vpop.f32.mrf.mxu1  ;;  %v2334_v9 = vpop.f32.mrf.mxu0 }
 0x152   : > { %v1988_v62 = vadd.f32 %v2172_v14, %v1973_v47  ;;  %v1971_v45 = vadd.f32 %v1940_v36, %v1814_v0  ;;  %v1817_v52 = vadd.f32 %v2324_v37, %v1588_v51 }
 0x153   : > { %v1786_v50 = vpop.f32.mrf.mxu1  ;;  %v1943_v29 = vpop.f32.mrf.mxu0 }
 0x154   : > { %1996 = vst.msk [vmem:[%s2977_s29 + $0x10] sm:$0xff] %vm630_vm5, %v1988_v62  ;;  %v1986_v42 = vadd.f32 %v2172_v14, %v1971_v45  ;;  %v1974_v11 = vadd.f32 %v2334_v9, %v1817_v52  ;;  %v1815_v3 = vadd.f32 %v1786_v50, %v1586_v43 }
 0x155   : > { %v2327_v48 = vpop.f32.mrf.mxu1  ;;  %v2337_v56 = vpop.f32.mrf.mxu0 }
 0x156   : > { %1994 = vst.msk [vmem:[%s2977_s29] sm:$0xff] %vm630_vm5, %v1986_v42  ;;  %v1989_v44 = vadd.f32 %v2172_v14, %v1974_v11  ;;  %v1972_v30 = vadd.f32 %v1943_v29, %v1815_v3  ;;  %v1820_v10 = vadd.f32 %v2327_v48, %v1591_v49 }
 0x157   : > { %v1799_v53 = vpop.f32.mrf.mxu1  ;;  %v1956_v58 = vpop.f32.mrf.mxu0 }
 0x158   : > { %1997 = vst.msk [vmem:[%s2977_s29 + $0x18] sm:$0xff] %vm630_vm5, %v1989_v44  ;;  %v1987_v26 = vadd.f32 %v2172_v14, %v1972_v30  ;;  %v1977_v1 = vadd.f32 %v2337_v56, %v1820_v10  ;;  %v1818_v15 = vadd.f32 %v1799_v53, %v1589_v33 }
 0x159   : > { %v2328_v19 = vpop.f32.mrf.mxu1  ;;  %v2338_v27 = vpop.f32.mrf.mxu0 }
 0x15a   : > { %1995 = vst.msk [vmem:[%s2977_s29 + $0x8] sm:$0xff] %vm630_vm5, %v1987_v26  ;;  %v1992_v4 = vadd.f32 %v2172_v14, %v1977_v1  ;;  %v1975_v20 = vadd.f32 %v1956_v58, %v1818_v15  ;;  %v1821_v16 = vadd.f32 %v2328_v19, %v1592_v31 }
 0x15b   : > { %v1802_v57 = vpop.f32.mrf.mxu1  ;;  %v1959_v28 = vpop.f32.mrf.mxu0 }
 0x15c   : > { %2000 = vst.msk [vmem:[%s2977_s29 + $0x30] sm:$0xff] %vm630_vm5, %v1992_v4  ;;  %v1990_v59 = vadd.f32 %v2172_v14, %v1975_v20  ;;  %v1978_v6 = vadd.f32 %v2338_v27, %v1821_v16  ;;  %v1819_v23 = vadd.f32 %v1802_v57, %v1590_v5 }
 0x15e   : > { %1998 = vst.msk [vmem:[%s2977_s29 + $0x20] sm:$0xff] %vm630_vm5, %v1990_v59  ;;  %v1993_v54 = vadd.f32 %v2172_v14, %v1978_v6  ;;  %v1976_v12 = vadd.f32 %v1959_v28, %v1819_v23 }
 0x160   : > { %2001 = vst.msk [vmem:[%s2977_s29 + $0x38] sm:$0xff] %vm630_vm5, %v1993_v54  ;;  %v1991_v13 = vadd.f32 %v2172_v14, %v1976_v12 }
 0x162   : > { %1999 = vst.msk [vmem:[%s2977_s29 + $0x28] sm:$0xff] %vm630_vm5, %v1991_v13 }
 0x163 PF: > { %s15_s18 = sadd.s32 1, %s2377_s18  }
 0x164   : > { %p12_p4 = scmp.ge.s32.totalorder %s15_s18, 4  }
 0x166   :  { %14 = sbr.rel (!%p12_p4) target bundleno = 1 (0x1), region = 72 }

// kernel: encoder_block_forward.4
= control target key start
LH: loop header
LB: loop body
LE: loop exit
PB: predicated region body
PF: predicated region fallthrough
CT: control target
= control target key end

     0   :  { %s2622_s24 = smov 0   ;;  %s3214_s0 = inlined_call_operand.vmem [shape: f32[2,8,8,16], index: 0, kind: input, shape index: {}]   ;;  %s3215_s1 = inlined_call_operand.vmem [shape: f32[1,16], index: 1, kind: input, shape index: {}]   ;;  %s3216_s2 = inlined_call_operand.vmem [shape: f32[1,16], index: 2, kind: input, shape index: {}]   ;;  %s3217_s3 = inlined_call_operand.vmem [shape: bf16[144,8], index: 3, kind: input, shape index: {}]   ;;  %s3218_s4 = inlined_call_operand.vmem [shape: f32[1,8], index: 4, kind: input, shape index: {}]   ;;  %s3219_s5 = inlined_call_operand.vmem [shape: bf16[2,8,8,8], index: 5, kind: output, shape index: {0}]   ;;  %s3220_s6 = inlined_call_operand.vmem [shape: f32[1,8], index: 6, kind: output, shape index: {1}]   ;;  %s3221_s7 = inlined_call_operand.vmem [shape: f32[1,8], index: 7, kind: output, shape index: {2}]  }
   0x1 LB: > { %s2251_s25 = sadd.s32 4294967295, %s2578_s24   ;;  %p2255_p0 = scmp.ge.s32.totalorder %s2578_s24, 1  ;;  %s2578_s24 = sphi %s2622_s24, %s18_s24  }
   0x2   : > { %p232_p1 = scmp.lt.s32.totalorder %s2578_s24, 3 }
   0x4   : > { %p233_p2 = pnand %p2255_p0, %p232_p1 }
   0x5   : > { %p264_p3 = scmp.lt.s32.totalorder (!%p233_p2), %s2251_s25, 1  ;;  %p2260_p4 = scmp.ne.s32.totalorder (!%p233_p2), %s2251_s25, 0 }
   0x6   : > { %236 = sbr.rel (%p233_p2) target bundleno = 386 (0x182), region = 40 }
   0xb   : > { %s265_s26 = scalar_select %p264_p3, %s2251_s25, 1 }
   0xc   : > { %278 = sbr.rel (%p2260_p4) target bundleno = 19 (0x13), region = 44 }
   0xd   : > { %s2387_s27 = sshll.u32 %s265_s26, 6  ;;  %s2388_s28 = sshll.u32 %s265_s26, 5 }
   0xe   : > { %s2633_s8 = scalar_lea.vmem %s3214_s0, %s2387_s27  ;;  %s2638_s11 = scalar_lea.vmem %s3219_s5, %s2388_s28 }
  0x11   : > { %vm279_vm0 = vcmask 57344   ;;  %v2580_v0 = vmov 0.0  }
  0x12   : > { %280 = vst.msk [vmem:[%s3220_s6] sm:$0x1] %vm279_vm0, %v2580_v0  ;;  %281 = vst.msk [vmem:[%s3221_s7] sm:$0x1] %vm279_vm0, %v2580_v0 }
  0x13 PF: > { %v2552_v1 = vld [vmem:[%s3217_s3 + $0x8] sm:$0xff]   ;;  %vm282_vm1 = vcmask 125952   ;;  %vm284_vm2 = vcmask 122880   ;;  %v304_v2 = vld [vmem:[%s2633_s8] sm:$0xff]  ;;  %v2581_v4 = vmov 0   ;;  %v307_v7 = vld [vmem:[%s2633_s8 + $0x18] sm:$0xff] }
  0x14   : > { %v2653_v3 = vld [vmem:[%s3215_s1] ss:$0 sm:$0xff]  ;;  %2540 = vmatprep.subr.bf16.mxu1 %v2552_v1  ;;  %2450 = vmatprep.subr.bf16.mxu0 %v2552_v1  ;;  %283 = vst.msk [vmem:[#allocation2] sm:$0xf] %vm282_vm1, %v2581_v4  ;;  %286 = vst.msk [vmem:[#allocation2 + $0x8] sm:$0xf] %vm282_vm1, %v2581_v4 }
  0x15   : > { %285 = vst.msk [vmem:[#allocation2 + $0x4] sm:$0x1] %vm284_vm2, %v2581_v4  ;;  %287 = vst.msk [vmem:[#allocation2 + $0xc] sm:$0x1] %vm284_vm2, %v2581_v4  ;;  %v319_v5 = vmul.f32 %v2653_v3, %v304_v2  ;;  %v2663_v6 = vld [vmem:[%s3216_s2] ss:$0 sm:$0xff]  ;;  %2541 = vmatpush3.bf16.msra.mxu1 %v2552_v1  ;;  %2451 = vmatpush3.bf16.msra.mxu0 %v2552_v1  ;;  %v322_v10 = vmul.f32 %v2653_v3, %v307_v7 }
  0x16   : > { %288 = vst.msk [vmem:[#allocation2 + $0x10] sm:$0xf] %vm282_vm1, %v2581_v4  ;;  %290 = vst.msk [vmem:[#allocation2 + $0x18] sm:$0xf] %vm282_vm1, %v2581_v4  ;;  %v308_v8 = vld [vmem:[%s2633_s8 + $0x20] sm:$0xff]  ;;  %v305_v13 = vld [vmem:[%s2633_s8 + $0x8] sm:$0xff] }
  0x17   : > { %289 = vst.msk [vmem:[#allocation2 + $0x14] sm:$0x1] %vm284_vm2, %v2581_v4  ;;  %291 = vst.msk [vmem:[#allocation2 + $0x1c] sm:$0x1] %vm284_vm2, %v2581_v4  ;;  %v334_v9 = vadd.f32 %v2663_v6, %v319_v5  ;;  %v323_v11 = vmul.f32 %v2653_v3, %v308_v8  ;;  %vm480_vm3 = vsmask.f32 7938  ;;  %v337_v15 = vadd.f32 %v2663_v6, %v322_v10 }
  0x18   : > { %292 = vst.msk [vmem:[#allocation2 + $0x20] sm:$0xf] %vm282_vm1, %v2581_v4  ;;  %294 = vst.msk [vmem:[#allocation2 + $0x28] sm:$0xf] %vm282_vm1, %v2581_v4  ;;  %vm486_vm4 = vsmask.f32 256  ;;  %v320_v20 = vmul.f32 %v2653_v3, %v305_v13 }
  0x19   : > { %293 = vst.msk [vmem:[#allocation2 + $0x24] sm:$0x1] %vm284_vm2, %v2581_v4  ;;  %295 = vst.msk [vmem:[#allocation2 + $0x2c] sm:$0x1] %vm284_vm2, %v2581_v4  ;;  %v2689_v12 = vld [vmem:[%s3217_s3] sm:$0xff]   ;;  %vm342_vm5 = vcmp.ge.f32.partialorder %v334_v9, 0.0  ;;  %v338_v16 = vadd.f32 %v2663_v6, %v323_v11 }
  0x1a   : > { %296 = vst.msk [vmem:[#allocation2 + $0x30] sm:$0xf] %vm282_vm1, %v2581_v4  ;;  %298 = vst.msk [vmem:[#allocation2 + $0x38] sm:$0xf] %vm282_vm1, %v2581_v4  ;;  %v350_v14 = vmul.f32 0.01, %v334_v9  ;;  %2460 = vmatprep.subr.bf16.mxu1 %v2689_v12  ;;  %v335_v28 = vadd.f32 %v2663_v6, %v320_v20 }
  0x1b   : > { %297 = vst.msk [vmem:[#allocation2 + $0x34] sm:$0x1] %vm284_vm2, %v2581_v4  ;;  %299 = vst.msk [vmem:[#allocation2 + $0x3c] sm:$0x1] %vm284_vm2, %v2581_v4  ;;  %v306_v17 = vld [vmem:[%s2633_s8 + $0x10] sm:$0xff]  ;;  %v309_v18 = vld [vmem:[%s2633_s8 + $0x28] sm:$0xff] }
  0x1c   : > { %300 = vst.msk [vmem:[#allocation2 + $0x40] sm:$0xf] %vm282_vm1, %v2581_v4  ;;  %302 = vst.msk [vmem:[#allocation2 + $0x48] sm:$0xf] %vm282_vm1, %v2581_v4  ;;  %v310_v19 = vld [vmem:[%s2633_s8 + $0x30] sm:$0xff]  ;;  %v321_v21 = vmul.f32 %v2653_v3, %v306_v17  ;;  %v358_v23 = vsel %vm342_vm5, %v334_v9, %v350_v14  ;;  %vm345_vm6 = vcmp.ge.f32.partialorder %v337_v15, 0.0  ;;  %v324_v25 = vmul.f32 %v2653_v3, %v309_v18 }
  0x1d   : > { %301 = vst.msk [vmem:[#allocation2 + $0x44] sm:$0x1] %vm284_vm2, %v2581_v4  ;;  %303 = vst.msk [vmem:[#allocation2 + $0x4c] sm:$0x1] %vm284_vm2, %v2581_v4  ;;  %v2703_v22 = vld [vmem:[%s3217_s3 + $0x10] sm:$0xff]   ;;  %v2389_v26 = vpack.c.bf16 %v358_v23, %v358_v23  ;;  %vm346_vm7 = vcmp.ge.f32.partialorder %v338_v16, 0.0  ;;  %v325_v29 = vmul.f32 %v2653_v3, %v310_v19 }
  0x1e   : > { %v353_v24 = vmul.f32 0.01, %v337_v15  ;;  %v2706_v27 = vld [vmem:[#allocation2] sm:$0xf]  ;;  %2470 = vmatprep.subr.bf16.mxu0 %v2703_v22  ;;  %v2711_v30 = vld [vmem:[#allocation2 + $0x4] sm:$0x1]  ;;  %v336_v38 = vadd.f32 %v2663_v6, %v321_v21  ;;  %v2719_v42 = vadd.f32 %v2663_v6, %v324_v25  ;;  %vm2723_vm8 = vmand %vm282_vm1, %vm480_vm3 }
  0x1f   : > { %v555_v31 = vshrl.u32 %v2706_v27, 16  ;;  %v558_v32 = vshll.u32 %v2706_v27, 16  ;;  %v354_v33 = vmul.f32 0.01, %v338_v16  ;;  %v399_v35 = vshrl.u32 %v2389_v26, 16  ;;  %vm2729_vm9 = vmand %vm284_vm2, %vm486_vm4 }
  0x20   : > { %v361_v34 = vsel %vm345_vm6, %v337_v15, %v353_v24  ;;  %v402_v36 = vshll.u32 %v2389_v26, 16  ;;  %v564_v37 = vshll.u32 %v2711_v30, 16  ;;  %v896_v39 = vrot.slane %v2711_v30, 5  ;;  %v482_v45 = vld [vmem:[#allocation2 + $0x8] sm:$0xf] }
  0x21   : > { %v362_v40 = vsel %vm346_vm7, %v338_v16, %v354_v33  ;;  %v2392_v41 = vpack.c.bf16 %v361_v34, %v361_v34  ;;  %v401_v43 = vrot.slane %v399_v35, 7  ;;  %v557_v46 = vrot.slane %v555_v31, 4  ;;  %v488_v50 = vld [vmem:[#allocation2 + $0xc] sm:$0x1]  ;;  %v503_v1 = vld [vmem:[#allocation2 + $0x20] sm:$0xf] }
  0x22   : > { %v560_v47 = vrot.slane %v558_v32, 5  ;;  %v2393_v48 = vpack.c.bf16 %v362_v40, %v362_v40  ;;  %v2733_v51 = vrot.slane %v564_v37, 5  ;;  %vm343_vm10 = vcmp.ge.f32.partialorder %v335_v28, 0.0  ;;  %v506_v2 = vld [vmem:[#allocation2 + $0x24] sm:$0x1] }
  0x23   : > { %v423_v52 = vshrl.u32 %v2392_v41, 16  ;;  %v426_v53 = vshll.u32 %v2392_v41, 16  ;;  %v404_v54 = vor.u32 %v402_v36, %v401_v43  ;;  %v405_v55 = vrot.slane %v401_v43, 4  ;;  %v509_v7 = vld [vmem:[#allocation2 + $0x28] sm:$0xf] }
  0x24   : > { %vm551_vm11 = vsmask.f32 3328  ;;  %vm552_vm12 = vsmask.f32 7440  ;;  %v431_v56 = vshrl.u32 %v2393_v48, 16  ;;  %v434_v57 = vshll.u32 %v2393_v48, 16 }
  0x25   : > { %v425_v58 = vrot.slane %v423_v52, 7  ;;  %vm344_vm13 = vcmp.ge.f32.partialorder %v336_v38, 0.0  ;;  %v351_v59 = vmul.f32 0.01, %v335_v28  ;;  %v352_v60 = vmul.f32 0.01, %v336_v38  ;;  %vm2764_vm2 = vmor %vm551_vm11, %vm552_vm12 }
  0x26   : > { %v483_v61 = vsel %vm2723_vm8, %v404_v54, %v482_v45  ;;  %v489_v62 = vsel %vm2729_vm9, %v405_v55, %v488_v50  ;;  %v561_v63 = vor.u32 %v560_v47, %v557_v46  ;;  %v433_v0 = vrot.slane %v431_v56, 7  ;;  %v512_v8 = vld [vmem:[#allocation2 + $0x2c] sm:$0x1]  ;;  %v491_v26 = vld [vmem:[#allocation2 + $0x10] sm:$0xf] }
  0x27   : > { %484 = vst [vmem:[#allocation2 + $0x8] sm:$0xf] %v483_v61  ;;  %490 = vst [vmem:[#allocation2 + $0xc] sm:$0x1] %v489_v62  ;;  %v428_v4 = vor.u32 %v426_v53, %v425_v58  ;;  %v429_v5 = vrot.slane %v425_v58, 4  ;;  %v359_v9 = vsel %vm343_vm10, %v335_v28, %v351_v59  ;;  %v340_v10 = vadd.f32 %v2663_v6, %v325_v29 }
  0x28   : > { %v436_v11 = vor.u32 %v434_v57, %v433_v0  ;;  %v437_v13 = vrot.slane %v433_v0, 4  ;;  %v360_v14 = vsel %vm344_vm13, %v336_v38, %v352_v60  ;;  %v2390_v15 = vpack.c.bf16 %v359_v9, %v359_v9  ;;  %v494_v28 = vld [vmem:[#allocation2 + $0x14] sm:$0x1]  ;;  %v2752_v31 = vld [vmem:[#allocation2] sm:$0xe] }
  0x29   : > { %v504_v16 = vsel %vm2723_vm8, %v428_v4, %v503_v1  ;;  %v507_v17 = vsel %vm2729_vm9, %v429_v5, %v506_v2  ;;  %v2391_v18 = vpack.c.bf16 %v360_v14, %v360_v14  ;;  %vm347_vm14 = vcmp.ge.f32.partialorder %v2719_v42, 0.0  ;;  %v497_v36 = vld [vmem:[#allocation2 + $0x18] sm:$0xf]  ;;  %v500_v52 = vld [vmem:[#allocation2 + $0x1c] sm:$0x1] }
  0x2a   : > { %505 = vst [vmem:[#allocation2 + $0x20] sm:$0xf] %v504_v16  ;;  %508 = vst [vmem:[#allocation2 + $0x24] sm:$0x1] %v507_v17  ;;  %v510_v19 = vsel %vm2723_vm8, %v436_v11, %v509_v7  ;;  %v513_v20 = vsel %vm2729_vm9, %v437_v13, %v512_v8  ;;  %v407_v21 = vshrl.u32 %v2390_v15, 16  ;;  %v410_v23 = vshll.u32 %v2390_v15, 16 }
  0x2b   : > { %511 = vst [vmem:[#allocation2 + $0x28] sm:$0xf] %v510_v19  ;;  %514 = vst [vmem:[#allocation2 + $0x2c] sm:$0x1] %v513_v20  ;;  %v415_v24 = vshrl.u32 %v2391_v18, 16  ;;  %v418_v25 = vshll.u32 %v2391_v18, 16 }
  0x2c   : > { %v355_v29 = vmul.f32 0.01, %v2719_v42  ;;  %v409_v32 = vrot.slane %v407_v21, 7  ;;  %vm348_vm15 = vcmp.ge.f32.partialorder %v340_v10, 0.0  ;;  %v356_v33 = vmul.f32 0.01, %v340_v10 }
  0x2d   : > { %vm891_vm0 = vcmask 1042432   ;;  %vm892_vm1 = vcmask 1046532   ;;  %v562_v34 = vrot.slane %v561_v63, 4  ;;  %v417_v35 = vrot.slane %v415_v24, 7 }
  0x2e   : > { %v2754_v37 = vld [vmem:[#allocation2 + $0x8] sm:$0xf]  ;;  %v2756_v38 = vld [vmem:[#allocation2 + $0xc] sm:$0x1]  ;;  %v412_v40 = vor.u32 %v410_v23, %v409_v32  ;;  %v413_v41 = vrot.slane %v409_v32, 4  ;;  %v363_v43 = vsel %vm347_vm14, %v2719_v42, %v355_v29  ;;  %v2289_v45 = vrot.slane %v2752_v31, 9  ;;  %vm2807_vm4 = vmor %vm891_vm0, %vm892_vm1 }
  0x2f   : > { %v569_v47 = vshrl.u32 %v2754_v37, 16  ;;  %v572_v48 = vshll.u32 %v2754_v37, 16  ;;  %v578_v50 = vshll.u32 %v2756_v38, 16  ;;  %vm686_vm3 = vcmask 130048  }
  0x30   : > { %v364_v53 = vsel %vm348_vm15, %v340_v10, %v356_v33  ;;  %v420_v54 = vor.u32 %v418_v25, %v417_v35  ;;  %v421_v42 = vrot.slane %v417_v35, 4  ;;  %v492_v55 = vsel %vm2723_vm8, %v412_v40, %v491_v26 }
  0x31   : > { %v495_v56 = vsel %vm2729_vm9, %v413_v41, %v494_v28  ;;  %v571_v57 = vrot.slane %v569_v47, 4  ;;  %v574_v58 = vrot.slane %v572_v48, 5  ;;  %v580_v59 = vrot.slane %v578_v50, 5  ;;  %v2777_v61 = vld [vmem:[#allocation2 + $0x20] sm:$0xf] }
  0x32   : > { %v900_v60 = vrot.slane %v2756_v38, 5  ;;  %493 = vst [vmem:[#allocation2 + $0x10] sm:$0xf] %v492_v55  ;;  %496 = vst [vmem:[#allocation2 + $0x14] sm:$0x1] %v495_v56  ;;  %v567_v62 = vsel %vm2764_vm2, %v562_v34, %v2733_v51  ;;  %v498_v2 = vsel %vm2723_vm8, %v420_v54, %v497_v36  ;;  %v501_v4 = vsel %vm2729_vm9, %v421_v42, %v500_v52 }
  0x33   : > { %v2782_v63 = vld [vmem:[#allocation2 + $0x28] sm:$0xf]  ;;  %v2784_v0 = vld [vmem:[#allocation2 + $0x24] sm:$0x1]  ;;  %v2786_v1 = vld [vmem:[#allocation2 + $0x2c] sm:$0x1]  ;;  %v2792_v5 = vpack.c.bf16 %v363_v43, %v363_v43  ;;  %v575_v7 = vor.u32 %v574_v58, %v571_v57  ;;  %v2395_v14 = vpack.c.bf16 %v364_v53, %v364_v53  ;;  %v2830_v42 = vsel %vm2807_vm4, %v2289_v45, %v896_v39 }
  0x34   : > { %v611_v8 = vshrl.u32 %v2777_v61, 16  ;;  %v614_v9 = vshll.u32 %v2777_v61, 16  ;;  %v620_v51 = vshll.u32 %v2784_v0, 16  ;;  %499 = vst [vmem:[#allocation2 + $0x18] sm:$0xf] %v498_v2  ;;  %v625_v10 = vshrl.u32 %v2782_v63, 16 }
  0x35   : > { %502 = vst [vmem:[#allocation2 + $0x1c] sm:$0x1] %v501_v4  ;;  %v628_v11 = vshll.u32 %v2782_v63, 16  ;;  %v634_v13 = vshll.u32 %v2786_v1, 16  ;;  %v576_v15 = vrot.slane %v575_v7, 4  ;;  %v912_v18 = vrot.slane %v2784_v0, 5 }
  0x36   : > { %v613_v16 = vrot.slane %v611_v8, 4  ;;  %v616_v17 = vrot.slane %v614_v9, 5  ;;  %v622_v19 = vrot.slane %v620_v51, 5  ;;  %v627_v20 = vrot.slane %v625_v10, 4  ;;  %v515_v4 = vld [vmem:[#allocation2 + $0x30] sm:$0xf] }
  0x37   : > { %v630_v21 = vrot.slane %v628_v11, 5  ;;  %v636_v23 = vrot.slane %v634_v13, 5  ;;  %v581_v24 = vsel %vm2764_vm2, %v576_v15, %v580_v59  ;;  %v916_v26 = vrot.slane %v2786_v1, 5  ;;  %v868_v59 = vld [vmem:[#allocation2 + $0x8] sm:$0xe] }
  0x38   : > { %v617_v25 = vor.u32 %v616_v17, %v613_v16  ;;  %v439_v28 = vshrl.u32 %v2792_v5, 16  ;;  %v2271_v32 = vcombine.low %v567_v62, %v581_v24  ;;  %v442_v36 = vshll.u32 %v2792_v5, 16  ;;  %v518_v39 = vld [vmem:[#allocation2 + $0x34] sm:$0x1]  ;;  %v521_v9 = vld [vmem:[#allocation2 + $0x38] sm:$0xf] }
  0x39   : > { %v631_v33 = vor.u32 %v630_v21, %v627_v20  ;;  %v2811_v34 = vld [vmem:[#allocation2 + $0x10] sm:$0xf]  ;;  %v2813_v35 = vld [vmem:[#allocation2 + $0x14] sm:$0x1]  ;;  %v447_v40 = vshrl.u32 %v2395_v14, 16  ;;  %v450_v54 = vshll.u32 %v2395_v14, 16  ;;  %v2280_v1 = vcombine.low %v2706_v27, %v2754_v37 }
  0x3a   : > { %v618_v41 = vrot.slane %v617_v25, 4  ;;  %v583_v43 = vshrl.u32 %v2811_v34, 16  ;;  %v586_v47 = vshll.u32 %v2811_v34, 16  ;;  %v592_v48 = vshll.u32 %v2813_v35, 16  ;;  %2452 = vmatprep.mubr.msk.bf16.mxu0 %vm686_vm3, %v2271_v32  ;;  %v524_v51 = vld [vmem:[#allocation2 + $0x3c] sm:$0x1] }
  0x3b   : > { %v632_v50 = vrot.slane %v631_v33, 4  ;;  %v2820_v52 = vld [vmem:[#allocation2 + $0x18] sm:$0xf]  ;;  %v904_v58 = vrot.slane %v2813_v35, 5  ;;  %v441_v8 = vrot.slane %v439_v28, 7  ;;  %v449_v14 = vrot.slane %v447_v40, 7 }
  0x3c   : > { %v2822_v53 = vld [vmem:[#allocation2 + $0x1c] sm:$0x1]  ;;  %v623_v55 = vsel %vm2764_vm2, %v618_v41, %v622_v19  ;;  %v585_v56 = vrot.slane %v583_v43, 4  ;;  %v588_v57 = vrot.slane %v586_v47, 5  ;;  %v597_v2 = vshrl.u32 %v2820_v52, 16 }
  0x3d   : > { %v637_v62 = vsel %vm2764_vm2, %v632_v50, %v636_v23  ;;  %v600_v30 = vshll.u32 %v2820_v52, 16  ;;  %v606_v31 = vshll.u32 %v2822_v53, 16  ;;  %v594_v7 = vrot.slane %v592_v48, 5  ;;  %v871_v15 = vld [vmem:[#allocation2 + $0x20] sm:$0xe] }
  0x3e   : > { %v2273_v45 = vcombine.low %v623_v55, %v637_v62  ;;  %v589_v5 = vor.u32 %v588_v57, %v585_v56  ;;  %v599_v10 = vrot.slane %v597_v2, 4  ;;  %v908_v13 = vrot.slane %v2822_v53, 5  ;;  %v872_v16 = vld [vmem:[#allocation2 + $0x28] sm:$0xe]  ;;  %v869_v33 = vld [vmem:[#allocation2 + $0x10] sm:$0xe] }
  0x3f   : > { %v602_v11 = vrot.slane %v600_v30, 5  ;;  %v444_v19 = vor.u32 %v442_v36, %v441_v8  ;;  %v445_v20 = vrot.slane %v441_v8, 4  ;;  %v2290_v21 = vrot.slane %v868_v59, 9  ;;  %v1152_v23 = vld [vmem:[#allocation2 + $0x8] sm:$0xf]  ;;  %v311_v55 = vld [vmem:[%s2633_s8 + $0x38] sm:$0xff] }
  0x40   : > { %2456 = vmatprep.mubr.msk.bf16.mxu1 %vm686_vm3, %v2273_v45  ;;  %v590_v17 = vrot.slane %v589_v5, 4  ;;  %v608_v25 = vrot.slane %v606_v31, 5  ;;  %v452_v28 = vor.u32 %v450_v54, %v449_v14  ;;  %v453_v32 = vrot.slane %v449_v14, 4  ;;  %v870_v35 = vld [vmem:[#allocation2 + $0x18] sm:$0xe]  ;;  %v2557_v62 = vld [vmem:[%s3217_s3 + $0x20] sm:$0xff]  }
  0x41   : > { %v603_v24 = vor.u32 %v602_v11, %v599_v10  ;;  %v516_v40 = vsel %vm2723_vm8, %v444_v19, %v515_v4  ;;  %v519_v43 = vsel %vm2729_vm9, %v445_v20, %v518_v39  ;;  %v901_v36 = vsel %vm2807_vm4, %v2290_v21, %v900_v60  ;;  %v2852_v47 = vld [vmem:[#allocation2 + $0xc] sm:$0x1]  ;;  %v1154_v2 = vld [vmem:[#allocation2 + $0x10] sm:$0xf]  ;;  %v2866_v39 = vld [vmem:[#allocation2 + $0x14] sm:$0x1] }
  0x42   : > { %v595_v41 = vsel %vm2764_vm2, %v590_v17, %v594_v7  ;;  %517 = vst [vmem:[#allocation2 + $0x30] sm:$0xf] %v516_v40  ;;  %520 = vst [vmem:[#allocation2 + $0x34] sm:$0x1] %v519_v43  ;;  %v522_v50 = vsel %vm2723_vm8, %v452_v28, %v521_v9  ;;  %v525_v53 = vsel %vm2729_vm9, %v453_v32, %v524_v51  ;;  %v2291_v38 = vrot.slane %v869_v33, 9 }
  0x43   : > { %v604_v48 = vrot.slane %v603_v24, 4  ;;  %v2297_v54 = vcombine.low %v2830_v42, %v901_v36  ;;  %523 = vst [vmem:[#allocation2 + $0x38] sm:$0xf] %v522_v50  ;;  %526 = vst [vmem:[#allocation2 + $0x3c] sm:$0x1] %v525_v53  ;;  %v2292_v56 = vrot.slane %v870_v35, 9  ;;  %v326_v5 = vmul.f32 %v2653_v3, %v311_v55 }
  0x44   : > { %v2293_v57 = vrot.slane %v871_v15, 9  ;;  %v2294_v60 = vrot.slane %v872_v16, 9  ;;  %v1169_v30 = vshrl.u32 %v1152_v23, 16  ;;  %v1172_v31 = vshll.u32 %v1152_v23, 16  ;;  %v2868_v45 = vld [vmem:[#allocation2 + $0x18] sm:$0xf] }
  0x45   : > { %v609_v59 = vsel %vm2764_vm2, %v604_v48, %v608_v25  ;;  %v1178_v4 = vshll.u32 %v2852_v47, 16  ;;  %v905_v7 = vsel %vm2807_vm4, %v2291_v38, %v904_v58  ;;  %v909_v8 = vsel %vm2807_vm4, %v2292_v56, %v908_v13 }
  0x46   : > { %v2272_v42 = vcombine.low %v595_v41, %v609_v59  ;;  %v1171_v9 = vrot.slane %v1169_v30, 4  ;;  %v1174_v51 = vrot.slane %v1172_v31, 5  ;;  %v913_v10 = vsel %vm2807_vm4, %v2293_v57, %v912_v18  ;;  %v2910_v31 = vld [vmem:[#allocation2 + $0x1c] sm:$0x1] }
  0x47   : > { %v917_v3 = vsel %vm2807_vm4, %v2294_v60, %v916_v26  ;;  %v2884_v11 = vrot.slane %v1178_v4, 5  ;;  %v1183_v58 = vshrl.u32 %v1154_v2, 16  ;;  %v1186_v13 = vshll.u32 %v1154_v2, 16 }
  0x48   : > { %2453 = vmatmul.mubr.msk.bf16.vlgmr.msra.gmra.mxu0 %vm686_vm3, %v2272_v42  ;;  %v1192_v14 = vshll.u32 %v2866_v39, 16  ;;  %v1197_v0 = vshrl.u32 %v2868_v45, 16  ;;  %v2298_v16 = vcombine.low %v905_v7, %v909_v8  ;;  %v2895_v17 = vadd.f32 %v2663_v6, %v326_v5  ;;  %v1158_v7 = vld [vmem:[#allocation2 + $0x20] sm:$0xf] }
  0x49   : > { %2471 = vmatpush3.bf16.msra.mxu0 %v2703_v22  ;;  %2472 = vmatprep.mubr.msk.bf16.mxu0 %vm686_vm3, %v2297_v54  ;;  %v2890_v15 = vld [vmem:[#allocation2 + $0x30] sm:$0xf]  ;;  %v549_v18 = vld [vmem:[#allocation2 + $0x34] sm:$0x1]  ;;  %v2299_v23 = vcombine.low %v913_v10, %v917_v3  ;;  %v1175_v24 = vor.u32 %v1174_v51, %v1171_v9  ;;  %v1200_v43 = vshll.u32 %v2868_v45, 16  ;;  %v1185_v2 = vrot.slane %v1183_v58, 4 }
  0x4a   : > { %2490 = vmatprep.subr.bf16.mxu0 %v2557_v62  ;;  %v873_v26 = vld [vmem:[#allocation2 + $0x30] sm:$0xe]  ;;  %v2897_v22 = vld [vmem:[#allocation2 + $0x38] sm:$0xf]  ;;  %v550_v19 = vld [vmem:[#allocation2 + $0x3c] sm:$0x1] }
  0x4b   : > { %v639_v20 = vshrl.u32 %v2890_v15, 16  ;;  %v642_v21 = vshll.u32 %v2890_v15, 16  ;;  %v648_v25 = vshll.u32 %v549_v18, 16  ;;  %v653_v28 = vshrl.u32 %v2897_v22, 16  ;;  %v874_v35 = vld [vmem:[#allocation2 + $0x38] sm:$0xe] }
  0x4c   : > { %v656_v32 = vshll.u32 %v2897_v22, 16  ;;  %v662_v33 = vshll.u32 %v550_v19, 16  ;;  %v2295_v6 = vrot.slane %v873_v26, 9  ;;  %v2907_v54 = vld [vmem:[%s3217_s3 + $0x30] sm:$0xff]   ;;  %v920_v38 = vrot.slane %v549_v18, 5 }
  0x4d   : > { %v641_v41 = vrot.slane %v639_v20, 4  ;;  %v644_v40 = vrot.slane %v642_v21, 5  ;;  %v650_v36 = vrot.slane %v648_v25, 5  ;;  %v655_v48 = vrot.slane %v653_v28, 4  ;;  %v2920_v3 = vld [vmem:[#allocation2 + $0x24] sm:$0x1] }
  0x4e   : > { %v658_v50 = vrot.slane %v656_v32, 5  ;;  %v664_v53 = vrot.slane %v662_v33, 5  ;;  %v2296_v56 = vrot.slane %v874_v35, 9  ;;  %v924_v57 = vrot.slane %v550_v19, 5  ;;  %v1162_v26 = vld [vmem:[#allocation2 + $0x30] sm:$0xf] }
  0x4f   : > { %v645_v55 = vor.u32 %v644_v40, %v641_v41  ;;  %v1176_v59 = vrot.slane %v1175_v24, 4  ;;  %v1188_v30 = vrot.slane %v1186_v13, 5  ;;  %v921_v42 = vsel %vm2807_vm4, %v2295_v6, %v920_v38  ;;  %v2934_v32 = vld [vmem:[#allocation2 + $0x34] sm:$0x1] }
  0x50   : > { %v659_v60 = vor.u32 %v658_v50, %v655_v48  ;;  %2473 = vmatmul.mubr.msk.bf16.vlgmr.msra.gmra.mxu0 %vm686_vm3, %v2298_v16  ;;  %v925_v45 = vsel %vm2807_vm4, %v2296_v56, %v924_v57  ;;  %v1194_v5 = vrot.slane %v1192_v14, 5  ;;  %v1199_v13 = vrot.slane %v1197_v0, 4  ;;  %v2926_v16 = vld [vmem:[#allocation2 + $0x2c] sm:$0x1] }
  0x51   : > { %v646_v4 = vrot.slane %v645_v55, 4  ;;  %2491 = vmatpush3.bf16.msra.mxu0 %v2557_v62  ;;  %2476 = vmatprep.mubr.msk.bf16.mxu0 %vm686_vm3, %v2299_v23  ;;  %v2300_v9 = vcombine.low %v921_v42, %v925_v45  ;;  %v1181_v51 = vsel %vm2764_vm2, %v1176_v59, %v2884_v11  ;;  %v1189_v10 = vor.u32 %v1188_v30, %v1185_v2  ;;  %v1160_v62 = vld [vmem:[#allocation2 + $0x28] sm:$0xf]  ;;  %v2555_v11 = vld [vmem:[%s3217_s3 + $0x18] sm:$0xff]  }
  0x52   : > { %v660_v8 = vrot.slane %v659_v60, 4  ;;  %2510 = vmatprep.subr.bf16.mxu0 %v2907_v54  ;;  %v1202_v18 = vrot.slane %v1200_v43, 5  ;;  %v1206_v14 = vshll.u32 %v2910_v31, 16  ;;  %v1211_v21 = vshrl.u32 %v1158_v7, 16  ;;  %v1164_v45 = vld [vmem:[#allocation2 + $0x38] sm:$0xf] }
  0x53   : > { %v651_v58 = vsel %vm2764_vm2, %v646_v4, %v650_v36  ;;  %v1190_v20 = vrot.slane %v1189_v10, 4  ;;  %v1214_v23 = vshll.u32 %v1158_v7, 16  ;;  %v1220_v0 = vshll.u32 %v2920_v3, 16 }
  0x54   : > { %v665_v19 = vsel %vm2764_vm2, %v660_v8, %v664_v53  ;;  %v1203_v25 = vor.u32 %v1202_v18, %v1199_v13  ;;  %v1208_v28 = vrot.slane %v1206_v14, 5  ;;  %v1213_v35 = vrot.slane %v1211_v21, 4  ;;  %v2970_v13 = vld [vmem:[%s3217_s3 + $0x40] sm:$0xff]  }
  0x55   : > { %v2274_v24 = vcombine.low %v651_v58, %v665_v19  ;;  %v1195_v33 = vsel %vm2764_vm2, %v1190_v20, %v1194_v5  ;;  %v1216_v41 = vrot.slane %v1214_v23, 5  ;;  %v1225_v40 = vshrl.u32 %v1160_v62, 16  ;;  %v2961_v5 = vld [vmem:[%s3217_s3 + $0x28] sm:$0xff]   ;;  %v527_v21 = vld [vmem:[#allocation2 + $0x40] sm:$0xf] }
  0x56   : > { %v2315_v6 = vcombine.low %v1181_v51, %v1195_v33  ;;  %v1204_v43 = vrot.slane %v1203_v25, 4  ;;  %v1222_v36 = vrot.slane %v1220_v0, 5  ;;  %v1228_v48 = vshll.u32 %v1160_v62, 16  ;;  %v2560_v25 = vld [vmem:[#allocation2 + $0x8] ss:$8 sps:$4 sm:$0xff]  }
  0x57   : > { %2457 = vmatmul.mubr.msk.bf16.vlgmr.msra.gmra.mxu1 %vm686_vm3, %v2274_v24  ;;  %v1217_v50 = vor.u32 %v1216_v41, %v1213_v35  ;;  %v1227_v53 = vrot.slane %v1225_v40, 4  ;;  %v1234_v55 = vshll.u32 %v2926_v16, 16  ;;  %v1239_v38 = vshrl.u32 %v1162_v26, 16  ;;  %v2982_v33 = vld [vmem:[#allocation2 + $0x3c] sm:$0x1] }
  0x58   : > { %2461 = vmatpush3.bf16.msra.mxu1 %v2689_v12  ;;  %2462 = vmatprep.mubr.msk.bf16.mxu1 %vm686_vm3, %v2280_v1  ;;  %v2281_v56 = vcombine.low %v2811_v34, %v2820_v52  ;;  %v1230_v57 = vrot.slane %v1228_v48, 5  ;;  %v1242_v60 = vshll.u32 %v1162_v26, 16  ;;  %v1248_v12 = vshll.u32 %v2934_v32, 16  ;;  %v1385_v35 = vld [vmem:[#allocation2 + $0x8] sm:$0xe] }
  0x59   : > { %2480 = vmatprep.subr.bf16.mxu1 %v2555_v11  ;;  %2477 = vmatmul.mubr.msk.bf16.gmra.mxu0 %vm686_vm3, %v2300_v9  ;;  %v1209_v27 = vsel %vm2764_vm2, %v1204_v43, %v1208_v28  ;;  %v1218_v37 = vrot.slane %v1217_v50, 4  ;;  %v1241_v1 = vrot.slane %v1239_v38, 4  ;;  %vm349_vm5 = vcmp.ge.f32.partialorder %v2895_v17, 0.0  ;;  %v1388_v40 = vld [vmem:[#allocation2 + $0x20] sm:$0xe] }
  0x5a   : > { %2492 = vmatprep.mubr.msk.bf16.mxu0 %vm686_vm3, %v2315_v6  ;;  %v1231_v59 = vor.u32 %v1230_v57, %v1227_v53  ;;  %v1236_v2 = vrot.slane %v1234_v55, 5  ;;  %v1244_v30 = vrot.slane %v1242_v60, 5  ;;  %v357_v34 = vmul.f32 0.01, %v2895_v17  ;;  %v1668_v57 = vld [vmem:[#allocation2 + $0x10] sm:$0xf] }
  0x5b   : > { %v2282_v52 = vcombine.low %v2777_v61, %v2782_v63  ;;  %v1223_v4 = vsel %vm2764_vm2, %v1218_v37, %v1222_v36  ;;  %v1250_v42 = vrot.slane %v1248_v12, 5  ;;  %v1253_v62 = vshrl.u32 %v1164_v45, 16  ;;  %v2562_v60 = vld [vmem:[#allocation2 + $0x18] ss:$8 sps:$4 sm:$0xff]  }
  0x5c   : > { %v2316_v7 = vcombine.low %v1209_v27, %v1223_v4  ;;  %v1232_v8 = vrot.slane %v1231_v59, 4  ;;  %v1245_v9 = vor.u32 %v1244_v30, %v1241_v1  ;;  %v365_v51 = vsel %vm349_vm5, %v2895_v17, %v357_v34  ;;  %v1670_v37 = vld [vmem:[#allocation2 + $0x18] sm:$0xf]  ;;  %v2564_v1 = vld [vmem:[#allocation2 + $0x28] ss:$8 sps:$4 sm:$0xff]  }
  0x5d   : > { %v2396_v10 = vpack.c.bf16 %v365_v51, %v365_v51  ;;  %v1256_v58 = vshll.u32 %v1164_v45, 16  ;;  %v2283_v20 = vcombine.low %v2890_v15, %v2897_v22  ;;  %v1255_v23 = vrot.slane %v1253_v62, 4  ;;  %v1387_v22 = vld [vmem:[#allocation2 + $0x18] sm:$0xe]  ;;  %v1390_v30 = vld [vmem:[#allocation2 + $0x30] sm:$0xe] }
  0x5e   : > { %v1237_v61 = vsel %vm2764_vm2, %v1232_v8, %v1236_v2  ;;  %v1246_v63 = vrot.slane %v1245_v9, 4  ;;  %v1262_v43 = vshll.u32 %v2982_v33, 16  ;;  %v2324_v36 = vrot.slane %v1385_v35, 9  ;;  %v1671_v45 = vld [vmem:[#allocation2 + $0x1c] sm:$0x1] }
  0x5f   : > { %2463 = vmatmul.mubr.msk.bf16.vlgmr.msra.gmra.mxu1 %vm686_vm3, %v2281_v56  ;;  %v455_v18 = vshrl.u32 %v2396_v10, 16  ;;  %v458_v14 = vshll.u32 %v2396_v10, 16  ;;  %v1258_v24 = vrot.slane %v1256_v58, 5  ;;  %v1411_v48 = vrot.slane %v2852_v47, 5  ;;  %v1389_v56 = vld [vmem:[#allocation2 + $0x28] sm:$0xe] }
  0x60   : > { %2481 = vmatpush3.bf16.msra.mxu1 %v2555_v11  ;;  %2466 = vmatprep.mubr.msk.bf16.mxu1 %vm686_vm3, %v2282_v52  ;;  %v1251_v17 = vsel %vm2764_vm2, %v1246_v63, %v1250_v42  ;;  %v530_v11 = vld [vmem:[#allocation2 + $0x44] sm:$0x1]  ;;  %v1415_v44 = vrot.slane %v2866_v39, 5  ;;  %v2326_v53 = vrot.slane %v1387_v22, 9  ;;  %v1419_v49 = vrot.slane %v2910_v31, 5  ;;  %v3010_v31 = vld [vmem:[%s3217_s3 + $0x38] sm:$0xff]  }
  0x61   : > { %2500 = vmatprep.subr.bf16.mxu1 %v2961_v5  ;;  %2493 = vmatmul.mubr.msk.bf16.vlgmr.msra.gmra.mxu0 %vm686_vm3, %v2316_v7  ;;  %v2317_v26 = vcombine.low %v1237_v61, %v1251_v17  ;;  %v457_v19 = vrot.slane %v455_v18, 7  ;;  %v1259_v6 = vor.u32 %v1258_v24, %v1255_v23  ;;  %v2327_v55 = vrot.slane %v1388_v40, 9  ;;  %v3021_v52 = vld [vmem:[#allocation2 + $0x14] sm:$0x1]  ;;  %v3037_v17 = vld [vmem:[#allocation2 + $0x38] sm:$0xe] }
  0x62   : > { %2511 = vmatpush3.bf16.msra.mxu0 %v2907_v54  ;;  %v1386_v54 = vld [vmem:[#allocation2 + $0x10] sm:$0xe]  ;;  %v1423_v38 = vrot.slane %v2920_v3, 5  ;;  %v2997_v27 = vrot.slane %v1262_v43, 5  ;;  %v3001_v47 = vsel %vm2807_vm4, %v2324_v36, %v1411_v48  ;;  %v2328_v3 = vrot.slane %v1389_v56, 9 }
  0x63   : > { %2530 = vmatprep.subr.bf16.mxu0 %v2970_v13  ;;  %2496 = vmatprep.mubr.msk.bf16.mxu0 %vm686_vm3, %v2317_v26  ;;  %v460_v28 = vor.u32 %v458_v14, %v457_v19  ;;  %v461_v0 = vrot.slane %v457_v19, 4  ;;  %v2325_v50 = vrot.slane %v1386_v54, 9  ;;  %v2995_v12 = vrot.slane %v1259_v6, 4  ;;  %v1902_v26 = vld [vmem:[#allocation2 + $0x18] sm:$0xe] }
  0x64   : > { %v3014_v59 = vsel %vm2807_vm4, %v2326_v53, %v1419_v49  ;;  %v3018_v2 = vsel %vm2807_vm4, %v2327_v55, %v1423_v38  ;;  %v1427_v34 = vrot.slane %v2926_v16, 5  ;;  %v1685_v4 = vshrl.u32 %v1668_v57, 16  ;;  %v1901_v16 = vld [vmem:[#allocation2 + $0x10] sm:$0xe]  ;;  %v1678_v49 = vld [vmem:[#allocation2 + $0x38] sm:$0xf] }
  0x65   : > { %v528_v41 = vsel %vm2723_vm8, %v460_v28, %v527_v21  ;;  %v531_v15 = vsel %vm2729_vm9, %v461_v0, %v530_v11  ;;  %v3005_v39 = vsel %vm2807_vm4, %v2325_v50, %v1415_v44  ;;  %v1688_v7 = vshll.u32 %v1668_v57, 16  ;;  %v1672_v11 = vld [vmem:[#allocation2 + $0x20] sm:$0xf]  ;;  %v1674_v0 = vld [vmem:[#allocation2 + $0x28] sm:$0xf] }
  0x66   : > { %529 = vst [vmem:[#allocation2 + $0x40] sm:$0xf] %v528_v41  ;;  %532 = vst [vmem:[#allocation2 + $0x44] sm:$0x1] %v531_v15  ;;  %v1699_v8 = vshrl.u32 %v1670_v37, 16  ;;  %v1265_v51 = vsel %vm2764_vm2, %v2995_v12, %v2997_v27  ;;  %v1702_v63 = vshll.u32 %v1670_v37, 16  ;;  %v2332_v58 = vcombine.low %v3001_v47, %v3005_v39 }
  0x67   : > { %2467 = vmatmul.mubr.msk.bf16.gmra.mxu1 %vm686_vm3, %v2283_v20  ;;  %v2333_v18 = vcombine.low %v3014_v59, %v3018_v2  ;;  %v2329_v14 = vrot.slane %v1390_v30, 9  ;;  %v1431_v21 = vrot.slane %v2934_v32, 5  ;;  %v1687_v23 = vrot.slane %v1685_v4, 4  ;;  %v1676_v48 = vld [vmem:[#allocation2 + $0x30] sm:$0xf] }
  0x68   : > { %2482 = vmatprep.mubr.msk.bf16.mxu1 %vm686_vm3, %v2560_v25  ;;  %v1690_v24 = vrot.slane %v1688_v7, 5  ;;  %v1694_v25 = vshll.u32 %v3021_v52, 16  ;;  %v1701_v28 = vrot.slane %v1699_v8, 4  ;;  %v1704_v15 = vrot.slane %v1702_v63, 5  ;;  %v2566_v27 = vld [vmem:[#allocation2 + $0x10] ss:$8 sps:$4 sm:$0xff]  }
  0x69   : > { %v1708_v22 = vshll.u32 %v1671_v45, 16  ;;  %v2359_v40 = vrot.slane %v1901_v16, 9  ;;  %v1927_v6 = vrot.slane %v3021_v52, 5  ;;  %v2360_v43 = vrot.slane %v1902_v26, 9  ;;  %v3068_v63 = vld [vmem:[#allocation2 + $0x24] sm:$0x1] }
  0x6a   : > { %v1931_v36 = vrot.slane %v1671_v45, 5  ;;  %v1432_v32 = vsel %vm2807_vm4, %v2329_v14, %v1431_v21  ;;  %v2330_v44 = vrot.slane %v3037_v17, 9  ;;  %v1435_v53 = vrot.slane %v2982_v33, 5  ;;  %v3073_v26 = vld [vmem:[#allocation2 + $0x2c] sm:$0x1] }
  0x6b   : > { %v1691_v38 = vor.u32 %v1690_v24, %v1687_v23  ;;  %v3051_v56 = vrot.slane %v1694_v25, 5  ;;  %v1713_v57 = vshrl.u32 %v1672_v11, 16  ;;  %v1705_v37 = vor.u32 %v1704_v15, %v1701_v28 }
  0x6c   : > { %v1730_v47 = vshll.u32 %v1674_v0, 16  ;;  %v1710_v33 = vrot.slane %v1708_v22, 5  ;;  %v3063_v30 = vsel %vm2807_vm4, %v2360_v43, %v1931_v36  ;;  %v1741_v52 = vshrl.u32 %v1676_v48, 16 }
  0x6d   : > { %v1166_v42 = vld [vmem:[#allocation2 + $0x40] sm:$0xf]  ;;  %v3024_v9 = vld [vmem:[#allocation2 + $0x44] sm:$0x1]  ;;  %v1744_v4 = vshll.u32 %v1676_v48, 16  ;;  %v1715_v7 = vrot.slane %v1713_v57, 4  ;;  %v1436_v17 = vsel %vm2807_vm4, %v2330_v44, %v1435_v53 }
  0x6e   : > { %v1267_v10 = vshrl.u32 %v1166_v42, 16  ;;  %v1270_v61 = vshll.u32 %v1166_v42, 16  ;;  %v1276_v62 = vshll.u32 %v3024_v9, 16  ;;  %v2565_v35 = vld [vmem:[#allocation2 + $0x38] ss:$8 sps:$4 sm:$0xff]   ;;  %v1755_v42 = vshrl.u32 %v1678_v49, 16 }
  0x6f   : > { %2483 = vmatmul.mubr.msk.bf16.vlgmr.msra.gmra.mxu1 %vm686_vm3, %v2562_v60  ;;  %v1392_v55 = vld [vmem:[#allocation2 + $0x40] sm:$0xe]  ;;  %v1716_v60 = vshll.u32 %v1672_v11, 16  ;;  %v1439_v45 = vrot.slane %v3024_v9, 5  ;;  %v1682_v9 = vld [vmem:[#allocation2 + $0x48] sm:$0xf] }
  0x70   : > { %2501 = vmatpush3.bf16.msra.mxu1 %v2961_v5  ;;  %2486 = vmatprep.mubr.msk.bf16.mxu1 %vm686_vm3, %v2564_v1  ;;  %v1269_v19 = vrot.slane %v1267_v10, 4  ;;  %v1272_v20 = vrot.slane %v1270_v61, 5  ;;  %v3042_v5 = vsel %vm2807_vm4, %v2328_v3, %v1427_v34  ;;  %v1278_v41 = vrot.slane %v1276_v62, 5  ;;  %v1680_v23 = vld [vmem:[#allocation2 + $0x40] sm:$0xf] }
  0x71   : > { %2520 = vmatprep.subr.bf16.mxu1 %v3010_v31  ;;  %v1727_v1 = vshrl.u32 %v1674_v0, 16  ;;  %v3059_v3 = vsel %vm2807_vm4, %v2359_v40, %v1927_v6  ;;  %v2331_v34 = vrot.slane %v1392_v55, 9  ;;  %v1718_v8 = vrot.slane %v1716_v60, 5  ;;  %v3080_v0 = vld [vmem:[#allocation2 + $0x34] sm:$0x1] }
  0x72   : > { %v1273_v54 = vor.u32 %v1272_v20, %v1269_v19  ;;  %v1692_v10 = vrot.slane %v1691_v38, 4  ;;  %v1706_v61 = vrot.slane %v1705_v37, 4  ;;  %v1732_v62 = vrot.slane %v1730_v47, 5  ;;  %v1903_v6 = vld [vmem:[#allocation2 + $0x20] sm:$0xe] }
  0x73   : > { %v1729_v16 = vrot.slane %v1727_v1, 4  ;;  %v2334_v14 = vcombine.low %v3042_v5, %v1432_v32  ;;  %v1743_v19 = vrot.slane %v1741_v52, 4  ;;  %v1746_v20 = vrot.slane %v1744_v4, 5  ;;  %v1905_v38 = vld [vmem:[#allocation2 + $0x30] sm:$0xe] }
  0x74   : > { %v1274_v50 = vrot.slane %v1273_v54, 4  ;;  %v1757_v21 = vrot.slane %v1755_v42, 4  ;;  %v1440_v24 = vsel %vm2807_vm4, %v2331_v34, %v1439_v45  ;;  %v2367_v25 = vcombine.low %v3059_v3, %v3063_v30  ;;  %v2570_v54 = vld [vmem:[#allocation2 + $0x30] ss:$8 sps:$4 sm:$0xff]   ;;  %v1681_v37 = vld [vmem:[#allocation2 + $0x44] sm:$0x1] }
  0x75   : > { %v1719_v28 = vor.u32 %v1718_v8, %v1715_v7  ;;  %v1722_v5 = vshll.u32 %v3068_v63, 16  ;;  %v1711_v15 = vsel %vm2764_vm2, %v1706_v61, %v1710_v33  ;;  %v1733_v22 = vor.u32 %v1732_v62, %v1729_v16  ;;  %v1683_v45 = vld [vmem:[#allocation2 + $0x4c] sm:$0x1]  ;;  %v2571_v7 = vld [vmem:[#allocation2 + $0x40] ss:$8 sps:$4 sm:$0xff]  }
  0x76   : > { %v1279_v12 = vsel %vm2764_vm2, %v1274_v50, %v1278_v41  ;;  %v1697_v41 = vsel %vm2764_vm2, %v1692_v10, %v3051_v56  ;;  %v1736_v40 = vshll.u32 %v3073_v26, 16  ;;  %v1769_v43 = vshrl.u32 %v1680_v23, 16 }
  0x77   : > { %2487 = vmatmul.mubr.msk.bf16.gmra.mxu1 %vm686_vm3, %v2565_v35  ;;  %v2318_v39 = vcombine.low %v1265_v51, %v1279_v12  ;;  %v1758_v51 = vshll.u32 %v1678_v49, 16  ;;  %v3082_v35 = vld [vmem:[#allocation2 + $0x3c] sm:$0x1]  ;;  %v1772_v59 = vshll.u32 %v1680_v23, 16  ;;  %v1783_v2 = vshrl.u32 %v1682_v9, 16 }
  0x78   : > { %2502 = vmatprep.mubr.msk.bf16.mxu1 %vm686_vm3, %v2332_v58  ;;  %v2568_v58 = vld [vmem:[#allocation2 + $0x20] ss:$8 sps:$4 sm:$0xff]   ;;  %v1747_v36 = vor.u32 %v1746_v20, %v1743_v19  ;;  %v1750_v48 = vshll.u32 %v3080_v0, 16  ;;  %v1764_v32 = vshll.u32 %v3082_v35, 16  ;;  %v2335_v44 = vcombine.low %v1436_v17, %v1440_v24 }
  0x79   : > { %2497 = vmatmul.mubr.msk.bf16.gmra.mxu0 %vm686_vm3, %v2318_v39  ;;  %v1760_v11 = vrot.slane %v1758_v51, 5  ;;  %v2350_v53 = vcombine.low %v1697_v41, %v1711_v15  ;;  %v1720_v49 = vrot.slane %v1719_v28, 4  ;;  %v1724_v55 = vrot.slane %v1722_v5, 5  ;;  %v1908_v5 = vld [vmem:[#allocation2 + $0x48] sm:$0xe] }
  0x7a   : > { %2512 = vmatprep.mubr.msk.bf16.mxu0 %vm686_vm3, %v2566_v27  ;;  %v1734_v56 = vrot.slane %v1733_v22, 4  ;;  %v1738_v57 = vrot.slane %v1736_v40, 5  ;;  %v2361_v60 = vrot.slane %v1903_v6, 9  ;;  %v1935_v12 = vrot.slane %v3068_v63, 5  ;;  %v1906_v27 = vld [vmem:[#allocation2 + $0x38] sm:$0xe] }
  0x7b   : > { %v1761_v50 = vor.u32 %v1760_v11, %v1757_v21  ;;  %v1771_v1 = vrot.slane %v1769_v43, 4  ;;  %v1774_v47 = vrot.slane %v1772_v59, 5  ;;  %v1785_v39 = vrot.slane %v1783_v2, 4  ;;  %v1907_v15 = vld [vmem:[#allocation2 + $0x40] sm:$0xe] }
  0x7c   : > { %v1748_v34 = vrot.slane %v1747_v36, 4  ;;  %v1752_v52 = vrot.slane %v1750_v48, 5  ;;  %v1766_v42 = vrot.slane %v1764_v32, 5  ;;  %v1939_v51 = vrot.slane %v3073_v26, 5 }
  0x7d   : > { %v1762_v4 = vrot.slane %v1761_v50, 4  ;;  %v2363_v10 = vrot.slane %v1905_v38, 9  ;;  %v1943_v61 = vrot.slane %v3080_v0, 5  ;;  %v2364_v63 = vrot.slane %v1906_v27, 9 }
  0x7e   : > { %v1947_v16 = vrot.slane %v3082_v35, 5  ;;  %v1778_v62 = vshll.u32 %v1681_v37, 16  ;;  %v1753_v26 = vsel %vm2764_vm2, %v1748_v34, %v1752_v52  ;;  %v1936_v20 = vsel %vm2807_vm4, %v2361_v60, %v1935_v12 }
  0x7f   : > { %2503 = vmatmul.mubr.msk.bf16.vlgmr.msra.gmra.mxu1 %vm686_vm3, %v2333_v18  ;;  %v1786_v18 = vshll.u32 %v1682_v9, 16  ;;  %v1792_v9 = vshll.u32 %v1683_v45, 16  ;;  %v1767_v19 = vsel %vm2764_vm2, %v1762_v4, %v1766_v42  ;;  %v1944_v23 = vsel %vm2807_vm4, %v2363_v10, %v1943_v61 }
  0x80   : > { %2521 = vmatpush3.bf16.msra.mxu1 %v3010_v31  ;;  %2506 = vmatprep.mubr.msk.bf16.mxu1 %vm686_vm3, %v2334_v14  ;;  %v1904_v31 = vld [vmem:[#allocation2 + $0x28] sm:$0xe]  ;;  %v1775_v14 = vor.u32 %v1774_v47, %v1771_v1  ;;  %v1948_v24 = vsel %vm2807_vm4, %v2364_v63, %v1947_v16  ;;  %v1780_v28 = vrot.slane %v1778_v62, 5  ;;  %v2352_v0 = vcombine.low %v1753_v26, %v1767_v19 }
  0x81   : > { %2513 = vmatmul.mubr.msk.bf16.vlgmr.msra.gmra.mxu0 %vm686_vm3, %v2568_v58  ;;  %v1788_v33 = vrot.slane %v1786_v18, 5  ;;  %v2362_v8 = vrot.slane %v1904_v31, 9  ;;  %v1739_v58 = vsel %vm2764_vm2, %v1734_v56, %v1738_v57  ;;  %v1794_v41 = vrot.slane %v1792_v9, 5 }
  0x82   : > { %2531 = vmatpush3.bf16.msra.mxu0 %v2970_v13  ;;  %2516 = vmatprep.mubr.msk.bf16.mxu0 %vm686_vm3, %v2570_v54  ;;  %v1725_v13 = vsel %vm2764_vm2, %v1720_v49, %v1724_v55  ;;  %v1776_v35 = vrot.slane %v1775_v14, 4  ;;  %v2369_v40 = vcombine.low %v1944_v23, %v1948_v24  ;;  %v2365_v3 = vrot.slane %v1907_v15, 9 }
  0x83   : > { %v1789_v17 = vor.u32 %v1788_v33, %v1785_v39  ;;  %v1940_v21 = vsel %vm2807_vm4, %v2362_v8, %v1939_v51  ;;  %v2351_v11 = vcombine.low %v1725_v13, %v1739_v58  ;;  %v1951_v30 = vrot.slane %v1681_v37, 5 }
  0x84   : > { %v2368_v22 = vcombine.low %v1936_v20, %v1940_v21  ;;  %v1955_v6 = vrot.slane %v1683_v45, 5  ;;  %v1781_v43 = vsel %vm2764_vm2, %v1776_v35, %v1780_v28  ;;  %vm2109_vm6 = vcmask 60416  }
  0x85   : > { %v1790_v54 = vrot.slane %v1789_v17, 4  ;;  %v1952_v18 = vsel %vm2807_vm4, %v2365_v3, %v1951_v30  ;;  %vm2127_vm7 = vcmask 64512   ;;  %vm2150_vm8 = vcmask 57344  }
  0x87   : > { %2507 = vmatmul.mubr.msk.bf16.gmra.mxu1 %vm686_vm3, %v2335_v44  ;;  %v1795_v59 = vsel %vm2764_vm2, %v1790_v54, %v1794_v41 }
  0x88   : > { %2522 = vmatprep.mubr.msk.bf16.mxu1 %vm686_vm3, %v2350_v53  ;;  %v2353_v2 = vcombine.low %v1781_v43, %v1795_v59 }
  0x89   : > { %2517 = vmatmul.mubr.msk.bf16.gmra.mxu0 %vm686_vm3, %v2571_v7 }
  0x8a   : > { %2532 = vmatprep.mubr.msk.bf16.mxu0 %vm686_vm3, %v2367_v25  ;;  %v2366_v25 = vrot.slane %v1908_v5, 9 }
  0x8c   : > { %v1956_v36 = vsel %vm2807_vm4, %v2366_v25, %v1955_v6 }
  0x8d   : > { %v2370_v48 = vcombine.low %v1952_v18, %v1956_v36 }
  0x8f   : > { %2523 = vmatmul.mubr.msk.bf16.vlgmr.msra.gmra.mxu1 %vm686_vm3, %v2351_v11 }
  0x90   : > { %2526 = vmatprep.mubr.msk.bf16.mxu1 %vm686_vm3, %v2352_v0 }
  0x91   : > { %2533 = vmatmul.mubr.msk.bf16.vlgmr.msra.gmra.mxu0 %vm686_vm3, %v2368_v22 }
  0x92   : > { %2536 = vmatprep.mubr.msk.bf16.mxu0 %vm686_vm3, %v2369_v40 }
  0x97   : > { %2527 = vmatmul.mubr.msk.bf16.gmra.mxu1 %vm686_vm3, %v2353_v2 }
  0x99   : > { %2537 = vmatmul.mubr.msk.bf16.gmra.mxu0 %vm686_vm3, %v2370_v48 }
 0x108   : > { %v2454_v50 = vpop.f32.mrf.mxu0 }
 0x10a   : > { %v733_v32 = vpop.f32.mrf.mxu0 }
 0x10c   : > { %v2455_v46 = vpop.f32.mrf.mxu0 }
 0x10e   : > { %v736_v44 = vpop.f32.mrf.mxu0 }
 0x110   : > { %v2474_v53 = vpop.f32.mrf.mxu0 }
 0x112   : > { %v992_v49 = vpop.f32.mrf.mxu0 }
 0x114   : > { %v2475_v55 = vpop.f32.mrf.mxu0 }
 0x116   : > { %v995_v31 = vpop.f32.mrf.mxu0 }
 0x117   : > { %v2458_v38 = vpop.f32.mrf.mxu1 }
 0x119   : > { %v749_v56 = vpop.f32.mrf.mxu1  ;;  %v2478_v57 = vpop.f32.mrf.mxu0 }
 0x11b   : > { %v2459_v60 = vpop.f32.mrf.mxu1  ;;  %v1008_v29 = vpop.f32.mrf.mxu0 }
 0x11d   : > { %v752_v12 = vpop.f32.mrf.mxu1  ;;  %v3142_v1 = vpop.f32.mrf.mxu0 }
 0x11f   : > { %v2464_v27 = vpop.f32.mrf.mxu1  ;;  %v3144_v33 = vpop.f32.mrf.mxu0 }
 0x120   : > { %v845_v26 = vadd.f32 %v2464_v27, %v2454_v50 }
 0x121   : > { %v836_v37 = vpop.f32.mrf.mxu1  ;;  %v2494_v4 = vpop.f32.mrf.mxu0 }
 0x122   : > { %v837_v21 = vadd.f32 %v836_v37, %v733_v32  ;;  %v1025_v24 = vadd.f32 %v2474_v53, %v845_v26 }
 0x123   : > { %v2465_v47 = vpop.f32.mrf.mxu1  ;;  %v1346_v7 = vpop.f32.mrf.mxu0 }
 0x124   : > { %v848_v28 = vadd.f32 %v2465_v47, %v2455_v46  ;;  %v1023_v35 = vadd.f32 %v992_v49, %v837_v21 }
 0x125   : > { %v839_v39 = vpop.f32.mrf.mxu1  ;;  %v2495_v51 = vpop.f32.mrf.mxu0 }
 0x126   : > { %v840_v54 = vadd.f32 %v839_v39, %v736_v44  ;;  %v1026_v3 = vadd.f32 %v2475_v55, %v848_v28 }
 0x127   : > { %v2468_v34 = vpop.f32.mrf.mxu1  ;;  %v1349_v63 = vpop.f32.mrf.mxu0 }
 0x128   : > { %v861_v22 = vadd.f32 %v2468_v34, %v2458_v38  ;;  %v1024_v59 = vadd.f32 %v995_v31, %v840_v54 }
 0x129   : > { %v852_v52 = vpop.f32.mrf.mxu1 }
 0x12a   : > { %v853_v6 = vadd.f32 %v852_v52, %v749_v56  ;;  %v1029_v48 = vadd.f32 %v2478_v57, %v861_v22 }
 0x12b   : > { %v2469_v42 = vpop.f32.mrf.mxu1 }
 0x12c   : > { %v864_v32 = vadd.f32 %v2469_v42, %v2459_v60  ;;  %v1027_v27 = vadd.f32 %v1008_v29, %v853_v6 }
 0x12d   : > { %v855_v45 = vpop.f32.mrf.mxu1 }
 0x12e   : > { %v856_v37 = vadd.f32 %v855_v45, %v752_v12  ;;  %v1030_v31 = vadd.f32 %v3142_v1, %v864_v32  ;;  %v3155_v1 = vld [vmem:[%s3218_s4] ss:$0 sm:$0xff] }
 0x12f   : > { %v2484_v13 = vpop.f32.mrf.mxu1 }
 0x130   : > { %v1146_v41 = vadd.f32 %v2484_v13, %v1025_v24  ;;  %v1028_v60 = vadd.f32 %v3144_v33, %v856_v37 }
 0x131   : > { %v1113_v8 = vpop.f32.mrf.mxu1 }
 0x132   : > { %v1144_v30 = vadd.f32 %v1113_v8, %v1023_v35  ;;  %v1379_v2 = vadd.f32 %v2494_v4, %v1146_v41 }
 0x133   : > { %v2485_v10 = vpop.f32.mrf.mxu1 }
 0x134   : > { %v1147_v18 = vadd.f32 %v2485_v10, %v1026_v3  ;;  %v1377_v46 = vadd.f32 %v1346_v7, %v1144_v30 }
 0x135   : > { %v1116_v61 = vpop.f32.mrf.mxu1 }
 0x136   : > { %v1145_v53 = vadd.f32 %v1116_v61, %v1024_v59  ;;  %v1380_v55 = vadd.f32 %v2495_v51, %v1147_v18 }
 0x137   : > { %v2488_v16 = vpop.f32.mrf.mxu1 }
 0x138   : > { %v1150_v38 = vadd.f32 %v2488_v16, %v1029_v48  ;;  %v1378_v4 = vadd.f32 %v1349_v63, %v1145_v53 }
 0x139   : > { %v1129_v62 = vpop.f32.mrf.mxu1  ;;  %v2498_v58 = vpop.f32.mrf.mxu0 }
 0x13a   : > { %v1148_v56 = vadd.f32 %v1129_v62, %v1027_v27  ;;  %v1383_v42 = vadd.f32 %v2498_v58, %v1150_v38 }
 0x13b   : > { %v2489_v14 = vpop.f32.mrf.mxu1  ;;  %v1362_v17 = vpop.f32.mrf.mxu0 }
 0x13c   : > { %v1151_v10 = vadd.f32 %v2489_v14, %v1030_v31  ;;  %v1381_v51 = vadd.f32 %v1362_v17, %v1148_v56 }
 0x13d   : > { %v1132_v9 = vpop.f32.mrf.mxu1  ;;  %v3146_v19 = vpop.f32.mrf.mxu0 }
 0x13e   : > { %v1149_v26 = vadd.f32 %v1132_v9, %v1028_v60  ;;  %v1384_v14 = vadd.f32 %v3146_v19, %v1151_v10 }
 0x13f   : > { %v2504_v20 = vpop.f32.mrf.mxu1  ;;  %v3148_v11 = vpop.f32.mrf.mxu0 }
 0x140   : > { %v1540_v49 = vadd.f32 %v2504_v20, %v1379_v2  ;;  %v1382_v35 = vadd.f32 %v3148_v11, %v1149_v26 }
 0x141   : > { %v1507_v23 = vpop.f32.mrf.mxu1  ;;  %v2514_v5 = vpop.f32.mrf.mxu0 }
 0x142   : > { %v1538_v39 = vadd.f32 %v1507_v23, %v1377_v46  ;;  %v1662_v13 = vadd.f32 %v2514_v5, %v1540_v49 }
 0x143   : > { %v2505_v0 = vpop.f32.mrf.mxu1  ;;  %v1629_v15 = vpop.f32.mrf.mxu0 }
 0x144   : > { %v1541_v57 = vadd.f32 %v2505_v0, %v1380_v55  ;;  %v1660_v29 = vadd.f32 %v1629_v15, %v1538_v39 }
 0x145   : > { %v1510_v40 = vpop.f32.mrf.mxu1  ;;  %v2515_v25 = vpop.f32.mrf.mxu0 }
 0x146   : > { %v1539_v12 = vadd.f32 %v1510_v40, %v1378_v4  ;;  %v1663_v62 = vadd.f32 %v2515_v25, %v1541_v57 }
 0x147   : > { %v2508_v43 = vpop.f32.mrf.mxu1  ;;  %v1632_v36 = vpop.f32.mrf.mxu0 }
 0x148   : > { %v1544_v20 = vadd.f32 %v2508_v43, %v1383_v42  ;;  %v1661_v23 = vadd.f32 %v1632_v36, %v1539_v12 }
 0x149   : > { %v1523_v50 = vpop.f32.mrf.mxu1  ;;  %v2518_v44 = vpop.f32.mrf.mxu0 }
 0x14a   : > { %v1542_v24 = vadd.f32 %v1523_v50, %v1381_v51  ;;  %v1666_v54 = vadd.f32 %v2518_v44, %v1544_v20 }
 0x14b   : > { %v2509_v47 = vpop.f32.mrf.mxu1  ;;  %v1645_v34 = vpop.f32.mrf.mxu0 }
 0x14c   : > { %v1545_v41 = vadd.f32 %v2509_v47, %v1384_v14  ;;  %v1664_v25 = vadd.f32 %v1645_v34, %v1542_v24 }
 0x14d   : > { %v1526_v52 = vpop.f32.mrf.mxu1  ;;  %v2519_v8 = vpop.f32.mrf.mxu0 }
 0x14e   : > { %v1543_v6 = vadd.f32 %v1526_v52, %v1382_v35  ;;  %v1667_v48 = vadd.f32 %v2519_v8, %v1545_v41 }
 0x14f   : > { %v2524_v7 = vpop.f32.mrf.mxu1  ;;  %v1648_v45 = vpop.f32.mrf.mxu0 }
 0x150   : > { %v1895_v61 = vadd.f32 %v2524_v7, %v1662_v13  ;;  %v1665_v37 = vadd.f32 %v1648_v45, %v1543_v6 }
 0x151   : > { %v1862_v16 = vpop.f32.mrf.mxu1  ;;  %v2534_v21 = vpop.f32.mrf.mxu0 }
 0x152   : > { %v1893_v63 = vadd.f32 %v1862_v16, %v1660_v29  ;;  %v2056_v33 = vadd.f32 %v2534_v21, %v1895_v61 }
 0x153   : > { %v2525_v58 = vpop.f32.mrf.mxu1  ;;  %v2023_v28 = vpop.f32.mrf.mxu0 }
 0x154   : > { %v1896_v5 = vadd.f32 %v2525_v58, %v1663_v62  ;;  %v2071_v17 = vadd.f32 %v3155_v1, %v2056_v33  ;;  %v2054_v9 = vadd.f32 %v2023_v28, %v1893_v63 }
 0x155   : > { %v1865_v0 = vpop.f32.mrf.mxu1  ;;  %v2535_v15 = vpop.f32.mrf.mxu0 }
 0x156   : > { %v1894_v22 = vadd.f32 %v1865_v0, %v1661_v23  ;;  %v2399_v40 = vpack.c.bf16 %v2071_v17, %v2071_v17  ;;  %v2069_v19 = vadd.f32 %v3155_v1, %v2054_v9  ;;  %v2057_v3 = vadd.f32 %v2535_v15, %v1896_v5 }
 0x157   : > { %v2528_v30 = vpop.f32.mrf.mxu1  ;;  %v2026_v43 = vpop.f32.mrf.mxu0 }
 0x158   : > { %v1899_v59 = vadd.f32 %v2528_v30, %v1666_v54  ;;  %2112 = vst.msk [vmem:[%s2638_s11 + $0x8] sm:$0xf] %vm2109_vm6, %v2399_v40  ;;  %v2397_v2 = vpack.c.bf16 %v2069_v19, %v2069_v19  ;;  %v2072_v11 = vadd.f32 %v3155_v1, %v2057_v3  ;;  %v2055_v18 = vadd.f32 %v2026_v43, %v1894_v22 }
 0x159   : > { %v1878_v36 = vpop.f32.mrf.mxu1  ;;  %v2538_v50 = vpop.f32.mrf.mxu0 }
 0x15a   : > { %v1897_v32 = vadd.f32 %v1878_v36, %v1664_v25  ;;  %2110 = vst.msk [vmem:[%s2638_s11] sm:$0xf] %vm2109_vm6, %v2397_v2  ;;  %v2078_v46 = vpack.c.bf16 %v2072_v11, %v2071_v17  ;;  %v2400_v53 = vpack.c.bf16 %v2072_v11, %v2072_v11  ;;  %v2070_v49 = vadd.f32 %v3155_v1, %v2055_v18 }
 0x15b   : > { %v2060_v44 = vadd.f32 %v2538_v50, %v1899_v59  ;;  %v2529_v27 = vpop.f32.mrf.mxu1  ;;  %v2039_v38 = vpop.f32.mrf.mxu0 }
 0x15c   : > { %2113 = vst.msk [vmem:[%s2638_s11 + $0xc] sm:$0xf] %vm2109_vm6, %v2400_v53  ;;  %v2120_v47 = vunpack.c.l.bf16 %v2078_v46  ;;  %v2077_v55 = vpack.c.bf16 %v2070_v49, %v2069_v19  ;;  %v2398_v39 = vpack.c.bf16 %v2070_v49, %v2070_v49  ;;  %v1900_v34 = vadd.f32 %v2529_v27, %v1667_v48 }
 0x15d   : > { %v1881_v56 = vpop.f32.mrf.mxu1  ;;  %v2075_v52 = vadd.f32 %v3155_v1, %v2060_v44  ;;  %v2058_v31 = vadd.f32 %v2039_v38, %v1897_v32  ;;  %v2539_v4 = vpop.f32.mrf.mxu0  ;;  %v2121_v57 = vunpack.c.h.bf16 %v2078_v46 }
 0x15e   : > { %v1898_v13 = vadd.f32 %v1881_v56, %v1665_v37  ;;  %2111 = vst.msk [vmem:[%s2638_s11 + $0x4] sm:$0xf] %vm2109_vm6, %v2398_v39  ;;  %v2118_v8 = vunpack.c.l.bf16 %v2077_v55  ;;  %v2119_v60 = vunpack.c.h.bf16 %v2077_v55  ;;  %v2155_v29 = vmul.f32 %v2120_v47, %v2120_v47 }
 0x15f   : > { %v2403_v42 = vpack.c.bf16 %v2075_v52, %v2075_v52  ;;  %v2073_v7 = vadd.f32 %v3155_v1, %v2058_v31  ;;  %v2042_v10 = vpop.f32.mrf.mxu0  ;;  %v2061_v12 = vadd.f32 %v2539_v4, %v1900_v34  ;;  %v2131_v33 = vsel %vm2127_vm7, %v2120_v47, 0.0 }
 0x160   : > { %v2059_v45 = vadd.f32 %v2042_v10, %v1898_v13  ;;  %v2128_v61 = vsel %vm2127_vm7, %v2118_v8, 0.0  ;;  %v2129_v51 = vsel %vm2127_vm7, %v2119_v60, 0.0  ;;  %v2153_v16 = vmul.f32 %v2118_v8, %v2118_v8  ;;  %v2152_v10 = vld [vmem:[%s3221_s7] sm:$0x1] }
 0x161   : > { %v2154_v26 = vmul.f32 %v2119_v60, %v2119_v60  ;;  %2116 = vst.msk [vmem:[%s2638_s11 + $0x18] sm:$0xf] %vm2109_vm6, %v2403_v42  ;;  %v2130_v62 = vadd.f32 %v2129_v51, %v2128_v61  ;;  %v2401_v20 = vpack.c.bf16 %v2073_v7, %v2073_v7  ;;  %v2076_v21 = vadd.f32 %v3155_v1, %v2061_v12  ;;  %v2126_v60 = vld [vmem:[%s3220_s6] sm:$0x1] }
 0x162   : > { %v2074_v63 = vadd.f32 %v3155_v1, %v2059_v45  ;;  %v2156_v58 = vmul.f32 %v2121_v57, %v2121_v57  ;;  %v2161_v14 = vsel %vm2127_vm7, %v2153_v16, 0.0  ;;  %v2164_v9 = vsel %vm2127_vm7, %v2155_v29, 0.0 }
 0x163   : > { %v2162_v23 = vsel %vm2127_vm7, %v2154_v26, 0.0  ;;  %v2132_v24 = vadd.f32 %v2131_v33, %v2130_v62  ;;  %2114 = vst.msk [vmem:[%s2638_s11 + $0x10] sm:$0xf] %vm2109_vm6, %v2401_v20  ;;  %v2080_v5 = vpack.c.bf16 %v2076_v21, %v2075_v52  ;;  %v2404_v17 = vpack.c.bf16 %v2076_v21, %v2076_v21 }
 0x164   : > { %v2163_v28 = vadd.f32 %v2162_v23, %v2161_v14  ;;  %v2079_v0 = vpack.c.bf16 %v2074_v63, %v2073_v7  ;;  %v2402_v35 = vpack.c.bf16 %v2074_v63, %v2074_v63  ;;  %v2133_v1 = vsel %vm2127_vm7, %v2121_v57, 0.0 }
 0x165   : > { %2117 = vst.msk [vmem:[%s2638_s11 + $0x1c] sm:$0xf] %vm2109_vm6, %v2404_v17  ;;  %v2124_v41 = vunpack.c.l.bf16 %v2080_v5  ;;  %v2166_v40 = vsel %vm2127_vm7, %v2156_v58, 0.0  ;;  %v2134_v19 = vadd.f32 %v2133_v1, %v2132_v24  ;;  %v2125_v3 = vunpack.c.h.bf16 %v2080_v5 }
 0x166   : > { %v2165_v54 = vadd.f32 %v2164_v9, %v2163_v28  ;;  %2115 = vst.msk [vmem:[%s2638_s11 + $0x14] sm:$0xf] %vm2109_vm6, %v2402_v35  ;;  %v2122_v15 = vunpack.c.l.bf16 %v2079_v0  ;;  %v2123_v22 = vunpack.c.h.bf16 %v2079_v0 }
 0x167   : > { %v2159_v2 = vmul.f32 %v2124_v41, %v2124_v41  ;;  %v2139_v50 = vsel %vm2127_vm7, %v2124_v41, 0.0  ;;  %v2160_v32 = vmul.f32 %v2125_v3, %v2125_v3  ;;  %v2141_v44 = vsel %vm2127_vm7, %v2125_v3, 0.0 }
 0x168   : > { %v2135_v30 = vsel %vm2127_vm7, %v2122_v15, 0.0  ;;  %v2157_v25 = vmul.f32 %v2122_v15, %v2122_v15  ;;  %v2158_v6 = vmul.f32 %v2123_v22, %v2123_v22  ;;  %v2167_v59 = vadd.f32 %v2166_v40, %v2165_v54 }
 0x169   : > { %v2136_v43 = vadd.f32 %v2135_v30, %v2134_v19  ;;  %v2137_v11 = vsel %vm2127_vm7, %v2123_v22, 0.0  ;;  %v2172_v27 = vsel %vm2127_vm7, %v2159_v2, 0.0  ;;  %v2174_v47 = vsel %vm2127_vm7, %v2160_v32, 0.0 }
 0x16a   : > { %v2168_v18 = vsel %vm2127_vm7, %v2157_v25, 0.0  ;;  %v2170_v46 = vsel %vm2127_vm7, %v2158_v6, 0.0 }
 0x16b   : > { %v2138_v36 = vadd.f32 %v2137_v11, %v2136_v43  ;;  %v2169_v48 = vadd.f32 %v2168_v18, %v2167_v59 }
 0x16d   : > { %v2140_v53 = vadd.f32 %v2139_v50, %v2138_v36  ;;  %v2171_v49 = vadd.f32 %v2170_v46, %v2169_v48 }
 0x16f   : > { %v2142_v37 = vadd.f32 %v2141_v44, %v2140_v53  ;;  %v2173_v38 = vadd.f32 %v2172_v27, %v2171_v49 }
 0x171   : > { %v2143_v55 = vrot.slane %v2142_v37, 4  ;;  %v2175_v39 = vadd.f32 %v2174_v47, %v2173_v38 }
 0x173   : > { %v2144_v34 = vadd.f32 %v2143_v55, %v2142_v37  ;;  %v2176_v56 = vrot.slane %v2175_v39, 4 }
 0x175   : > { %v2145_v52 = vrot.slane %v2144_v34, 2  ;;  %v2177_v31 = vadd.f32 %v2176_v56, %v2175_v39 }
 0x177   : > { %v2146_v4 = vadd.f32 %v2145_v52, %v2144_v34  ;;  %v2178_v13 = vrot.slane %v2177_v31, 2 }
 0x179   : > { %v2147_v57 = vrot.slane %v2146_v4, 1  ;;  %v2179_v8 = vadd.f32 %v2178_v13, %v2177_v31 }
 0x17b   : > { %v2148_v42 = vadd.f32 %v2147_v57, %v2146_v4  ;;  %v2180_v7 = vrot.slane %v2179_v8, 1 }
 0x17d   : > { %v2149_v29 = vadd.f32 %v2148_v42, %v2126_v60  ;;  %v2181_v12 = vadd.f32 %v2180_v7, %v2179_v8 }
 0x17f   : > { %2151 = vst.msk [vmem:[%s3220_s6] sm:$0x1] %vm2150_vm8, %v2149_v29  ;;  %v2182_v45 = vadd.f32 %v2181_v12, %v2152_v10 }
 0x181   : > { %2183 = vst.msk [vmem:[%s3221_s7] sm:$0x1] %vm2150_vm8, %v2182_v45 }
 0x182 PF: > { %s18_s24 = sadd.s32 1, %s2578_s24  }
 0x183   : > { %p15_p5 = scmp.ge.s32.totalorder %s18_s24, 4  }
 0x185   :  { %17 = sbr.rel (!%p15_p5) target bundleno = 1 (0x1), region = 92 }

</bundles_post_ra>
